<compile_context>
chip_gen: v5e
topology: v5e:2x2
jax: 0.10.0
libtpu: 0.0.40
codegen_flags: <defaults>
</compile_context>

<pallas_src>
import jax
import jax.numpy as jnp
from jax import lax
from jax.experimental import pallas as pl
from jax.experimental.pallas import tpu as pltpu

EPS = 1e-5
# Matmul operand dtype.  Set to jnp.bfloat16 on v6e/v7x for ~2x MXU throughput
# (accumulation stays f32 via preferred_element_type); kept f32 here so the
# result stays well inside the 1e-3 reference tolerance on every generation.
MM_DTYPE = jnp.float32
# Explicit scoped-VMEM limit (raises v5e's 16 MiB default; re-derive <= ~48 MiB
# when sizing real-workload tiles for v7x's 64 MiB physical VMEM).
VMEM_LIMIT = 32 * 1024 * 1024


def _mm(a, b):
    return jnp.dot(a.astype(MM_DTYPE), b.astype(MM_DTYPE),
                   preferred_element_type=jnp.float32)


def _pick_rows(total, limit):
    """Largest divisor of `total` that is a multiple of 8 and <= limit (else total)."""
    for t in range(min(total, limit), 7, -1):
        if total % t == 0 and t % 8 == 0:
            return t
    return total


# --------------------------- stage 1: fused 1x1 convs ------------------------
def _stage1_kernel(x_ref, w_ref, y_ref, sum_ref, sq_ref):
    i = pl.program_id(0)
    y = _mm(x_ref[...], w_ref[...])          # (TR, Cout + C4): conv1 | shortcut
    y_ref[...] = y

    @pl.when(i == 0)
    def _():
        sum_ref[...] = jnp.zeros_like(sum_ref)
        sq_ref[...] = jnp.zeros_like(sq_ref)

    sum_ref[...] += jnp.sum(y, axis=0, keepdims=True)
    sq_ref[...] += jnp.sum(y * y, axis=0, keepdims=True)


# ------------------- stage 2: bn1+relu -> conv3x3 -> relu -> conv3 -----------
def _stage2_kernel(a1_ref, s1_ref, t1_ref, w2_ref, w3_ref,
                   y3_ref, sum3_ref, sq3_ref):
    n = pl.program_id(0)
    _, H, W, Cout = a1_ref.shape

    # bn1 as precomputed scale/shift, then relu.
    a = jnp.maximum(a1_ref[0] * s1_ref[...] + t1_ref[...], 0.0)    # (H, W, Cout)

    # conv2: 3x3 SAME, stride 1 -> 9 shifted-tap matmuls on the per-image tile.
    ap = jnp.pad(a, ((1, 1), (1, 1), (0, 0)))
    acc = jnp.zeros((H * W, Cout), jnp.float32)
    for dy in range(3):
        for dx in range(3):
            win = ap[dy:dy + H, dx:dx + W, :].reshape(H * W, Cout)
            acc = acc + _mm(win, w2_ref[dy, dx])
    # bn2 output (outx) is discarded in the reference module; relu the raw conv2.
    a2 = jnp.maximum(acc, 0.0)

    # conv3 (1x1)
    y3 = _mm(a2, w3_ref[...])                                      # (H*W, C4)
    y3_ref[0] = y3

    @pl.when(n == 0)
    def _():
        sum3_ref[...] = jnp.zeros_like(sum3_ref)
        sq3_ref[...] = jnp.zeros_like(sq3_ref)

    sum3_ref[...] += jnp.sum(y3, axis=0, keepdims=True)
    sq3_ref[...] += jnp.sum(y3 * y3, axis=0, keepdims=True)


# ------------- stage 3: lane-dense bn3 + bn_f + residual add + relu ----------
def _stage3_kernel(a_ref, s_ref, sa_ref, ss_ref, tc_ref, o_ref):
    out = a_ref[...] * sa_ref[...] + s_ref[...] * ss_ref[...] + tc_ref[...]
    o_ref[...] = jnp.maximum(out, 0.0)


# ------------------------------ wrapper ---------------------------------------
def _scale_shift(s, sq, count, gamma, beta):
    mean = s / count
    var = sq / count - mean * mean
    scale = gamma * lax.rsqrt(var + EPS)
    shift = beta - mean * scale
    return scale, shift


@jax.jit
def bottleneck_forward(x_nchw, params):
    """x_nchw: [N, C_in, H, W] -> returns [N, 4*C_out, H, W]."""
    x = jnp.transpose(x_nchw, (0, 2, 3, 1)).astype(jnp.float32)    # NCHW -> NHWC
    N, H, W, Cin = x.shape
    Cout = params["w1"].shape[1]
    C4 = params["w3"].shape[1]
    R = N * H * W
    Ctot = Cout + C4

    cp_arb = pltpu.CompilerParams(dimension_semantics=("arbitrary",),
                                  vmem_limit_bytes=VMEM_LIMIT)
    cp_par = pltpu.CompilerParams(dimension_semantics=("parallel",),
                                  vmem_limit_bytes=VMEM_LIMIT)

    # ---- stage 1: fused conv1 + shortcut conv (single matmul) + bn1/bn_f stats
    w1f = jnp.concatenate([params["w1"], params["wf"]], axis=1)    # (Cin, Ctot)
    x2d = x.reshape(R, Cin)
    TR = _pick_rows(R, 256)
    y1, s1_sum, s1_sq = pl.pallas_call(
        _stage1_kernel,
        out_shape=(jax.ShapeDtypeStruct((R, Ctot), jnp.float32),
                   jax.ShapeDtypeStruct((1, Ctot), jnp.float32),
                   jax.ShapeDtypeStruct((1, Ctot), jnp.float32)),
        grid=(R // TR,),
        in_specs=[pl.BlockSpec((TR, Cin), lambda i: (i, 0)),
                  pl.BlockSpec((Cin, Ctot), lambda i: (0, 0))],
        out_specs=(pl.BlockSpec((TR, Ctot), lambda i: (i, 0)),
                   pl.BlockSpec((1, Ctot), lambda i: (0, 0)),
                   pl.BlockSpec((1, Ctot), lambda i: (0, 0))),
        compiler_params=cp_arb,
    )(x2d, w1f)

    scale1, shift1 = _scale_shift(s1_sum[:, :Cout], s1_sq[:, :Cout], R,
                                  params["g1"], params["b1"])
    scalef, shiftf = _scale_shift(s1_sum[:, Cout:], s1_sq[:, Cout:], R,
                                  params["gf"], params["bf"])

    # ---- stage 2: per-image conv2/conv3 + bn3 stats (no halo needed) --------
    a1 = y1[:, :Cout].reshape(N, H, W, Cout)
    y3, s3_sum, s3_sq = pl.pallas_call(
        _stage2_kernel,
        out_shape=(jax.ShapeDtypeStruct((N, H * W, C4), jnp.float32),
                   jax.ShapeDtypeStruct((1, C4), jnp.float32),
                   jax.ShapeDtypeStruct((1, C4), jnp.float32)),
        grid=(N,),
        in_specs=[pl.BlockSpec((1, H, W, Cout), lambda n: (n, 0, 0, 0)),
                  pl.BlockSpec((1, Cout), lambda n: (0, 0)),
                  pl.BlockSpec((1, Cout), lambda n: (0, 0)),
                  pl.BlockSpec((3, 3, Cout, Cout), lambda n: (0, 0, 0, 0)),
                  pl.BlockSpec((Cout, C4), lambda n: (0, 0))],
        out_specs=(pl.BlockSpec((1, H * W, C4), lambda n: (n, 0, 0)),
                   pl.BlockSpec((1, C4), lambda n: (0, 0)),
                   pl.BlockSpec((1, C4), lambda n: (0, 0))),
        compiler_params=cp_arb,
    )(a1, scale1, shift1, params["w2"], params["w3"])

    scale3, shift3 = _scale_shift(s3_sum, s3_sq, R, params["g3"], params["b3"])

    # ---- stage 3: lane-dense epilogue (last dim = W*C4, multiple of 128) ----
    lanes = W * C4
    y3_2d = y3.reshape(N * H, lanes)                  # free row-major reshape
    ys_2d = y1[:, Cout:].reshape(N * H, lanes)        # shortcut branch, same view
    sa = jnp.tile(scale3, (1, W))                     # per-(w,c) scale, lane-dense
    ss = jnp.tile(scalef, (1, W))
    tc = jnp.tile(shift3 + shiftf, (1, W))

    rows = N * H
    TQ = _pick_rows(rows, 512)
    out2d = pl.pallas_call(
        _stage3_kernel,
        out_shape=jax.ShapeDtypeStruct((rows, lanes), jnp.float32),
        grid=(rows // TQ,),
        in_specs=[pl.BlockSpec((TQ, lanes), lambda i: (i, 0)),
                  pl.BlockSpec((TQ, lanes), lambda i: (i, 0)),
                  pl.BlockSpec((1, lanes), lambda i: (0, 0)),
                  pl.BlockSpec((1, lanes), lambda i: (0, 0)),
                  pl.BlockSpec((1, lanes), lambda i: (0, 0))],
        out_specs=pl.BlockSpec((TQ, lanes), lambda i: (i, 0)),
        compiler_params=cp_par,
    )(y3_2d, ys_2d, sa, ss, tc)

    out = out2d.reshape(N, H, W, C4)
    return jnp.transpose(out, (0, 3, 1, 2))           # NHWC -> NCHW


# --------------------------- pure-JAX reference ------------------------------
def _bn_ref(y_nhwc, gamma, beta):
    mean = jnp.mean(y_nhwc, axis=(0, 1, 2), keepdims=True)
    var = jnp.mean((y_nhwc - mean) ** 2, axis=(0, 1, 2), keepdims=True)
    return gamma.reshape(1, 1, 1, -1) * (y_nhwc - mean) * lax.rsqrt(var + EPS) \
        + beta.reshape(1, 1, 1, -1)


def _conv_ref(x_nhwc, w_hwio):
    return lax.conv_general_dilated(
        x_nhwc, w_hwio, window_strides=(1, 1), padding="SAME",
        dimension_numbers=("NHWC", "HWIO", "NHWC"))


def bottleneck_reference(x_nchw, p):
    x = jnp.transpose(x_nchw, (0, 2, 3, 1)).astype(jnp.float32)
    Cin = x.shape[-1]
    Cout = p["w1"].shape[1]
    C4 = p["w3"].shape[1]
    a = _conv_ref(x, p["w1"].reshape(1, 1, Cin, Cout))
    a = jnp.maximum(_bn_ref(a, p["g1"][0], p["b1"][0]), 0.0)
    a = _conv_ref(a, p["w2"])
    a = jnp.maximum(a, 0.0)                 # bn2 output discarded, as in torch code
    a = _conv_ref(a, p["w3"].reshape(1, 1, Cout, C4))
    a = _bn_ref(a, p["g3"][0], p["b3"][0])
    s = _conv_ref(x, p["wf"].reshape(1, 1, Cin, C4))
    s = _bn_ref(s, p["gf"][0], p["bf"][0])
    out = jnp.maximum(a + s, 0.0)
    return jnp.transpose(out, (0, 3, 1, 2))


# ------------------------------ param init -----------------------------------
def init_params(key, in_channels, out_channels):
    c4 = 4 * out_channels
    ks = jax.random.split(key, 9)
    p = {
        "w1": 0.2 * jax.random.normal(ks[0], (in_channels, out_channels), jnp.float32),
        "g1": 1.0 + 0.1 * jax.random.normal(ks[1], (1, out_channels), jnp.float32),
        "b1": 0.1 * jax.random.normal(ks[2], (1, out_channels), jnp.float32),
        "w2": 0.2 * jax.random.normal(ks[3], (3, 3, out_channels, out_channels), jnp.float32),
        "w3": 0.2 * jax.random.normal(ks[4], (out_channels, c4), jnp.float32),
        "g3": 1.0 + 0.1 * jax.random.normal(ks[5], (1, c4), jnp.float32),
        "b3": 0.1 * jax.random.normal(ks[6], (1, c4), jnp.float32),
        "wf": 0.2 * jax.random.normal(ks[7], (in_channels, c4), jnp.float32),
        "gf": 1.0 + 0.1 * jax.random.normal(ks[8], (1, c4), jnp.float32),
        "bf": jnp.zeros((1, c4), jnp.float32),
    }
    return p


if __name__ == "__main__":
    key = jax.random.PRNGKey(0)
    kx, kp = jax.random.split(key)

    N, C_in, H, W = 2, 4, 16, 16
    C_out = 4                                  # -> block output channels = 16
    x = jax.random.normal(kx, (N, C_in, H, W), jnp.float32)
    params = init_params(kp, C_in, C_out)

    out = jax.block_until_ready(bottleneck_forward(x, params))
    ref = jax.block_until_ready(bottleneck_reference(x, params))

    assert out.shape == (N, 4 * C_out, H, W), out.shape
    assert jnp.allclose(out, ref, atol=1e-3, rtol=1e-3), \
        float(jnp.max(jnp.abs(out - ref)))
    print("KERNEL_OK")
</pallas_src>

<mosaic_0001>
module attributes {stable_mosaic.version = 11 : i64} {
  func.func @_stage1_kernel(%arg0: i32, %arg1: memref<256x4xf32, #tpu.memory_space<vmem>>, %arg2: memref<4x20xf32, #tpu.memory_space<vmem>>, %arg3: memref<256x20xf32, #tpu.memory_space<vmem>>, %arg4: memref<1x20xf32, #tpu.memory_space<vmem>>, %arg5: memref<1x20xf32, #tpu.memory_space<vmem>>) attributes {dimension_semantics = [#tpu.dimension_semantics<arbitrary>], iteration_bounds = array<i64: 2>, scalar_prefetch = 0 : i64, scratch_operands = 0 : i64, tpu.core_type = #tpu.core_type<tc>, window_params = [{transform_indices = @transform_0, window_bounds = array<i64: 256, 4>}, {pipeline_mode = #tpu.pipeline_mode<synchronous>, transform_indices = @transform_1, window_bounds = array<i64: 4, 20>}, {transform_indices = @transform_2, window_bounds = array<i64: 256, 20>}, {pipeline_mode = #tpu.pipeline_mode<synchronous>, transform_indices = @transform_3, window_bounds = array<i64: 1, 20>}, {pipeline_mode = #tpu.pipeline_mode<synchronous>, transform_indices = @transform_4, window_bounds = array<i64: 1, 20>}]} {
    %c0 = arith.constant 0 : index
    %c0_0 = arith.constant 0 : index
    %0 = vector.load %arg1[%c0, %c0_0] : memref<256x4xf32, #tpu.memory_space<vmem>>, vector<256x4xf32>
    %c0_1 = arith.constant 0 : index
    %c0_2 = arith.constant 0 : index
    %1 = vector.load %arg2[%c0_1, %c0_2] : memref<4x20xf32, #tpu.memory_space<vmem>>, vector<4x20xf32>
    %cst = arith.constant dense<0.000000e+00> : vector<256x20xf32>
    %2 = tpu.matmul %0, %1, %cst {dimension_numbers = #tpu.dot_dimension_numbers<[1], [0], [0], [1], [0, 0, 1, 1], [], []>} : vector<256x4xf32>, vector<4x20xf32>, vector<256x20xf32> -> vector<256x20xf32>
    %c0_3 = arith.constant 0 : index
    %c0_4 = arith.constant 0 : index
    %3 = vector.load %arg3[%c0_3, %c0_4] : memref<256x20xf32, #tpu.memory_space<vmem>>, vector<256x20xf32>
    tpu.vector_store %arg3[%c0_3, %c0_4], %2 {strides = array<i32>} : memref<256x20xf32, #tpu.memory_space<vmem>>, vector<256x20xf32>,
    %c0_i32 = arith.constant 0 : i32
    %4 = arith.cmpi eq, %arg0, %c0_i32 : i32
    %5 = arith.extui %4 : i1 to i32
    %c0_i32_5 = arith.constant 0 : i32
    %6 = arith.cmpi ne, %5, %c0_i32_5 : i32
    scf.if %6 {
      %cst_16 = arith.constant 0.000000e+00 : f32
      %18 = vector.broadcast %cst_16 : f32 to vector<1x20xf32>
      %c0_17 = arith.constant 0 : index
      %c0_18 = arith.constant 0 : index
      %19 = vector.load %arg4[%c0_17, %c0_18] : memref<1x20xf32, #tpu.memory_space<vmem>>, vector<1x20xf32>
      tpu.vector_store %arg4[%c0_17, %c0_18], %18 {strides = array<i32>} : memref<1x20xf32, #tpu.memory_space<vmem>>, vector<1x20xf32>,
      %cst_19 = arith.constant 0.000000e+00 : f32
      %20 = vector.broadcast %cst_19 : f32 to vector<1x20xf32>
      %c0_20 = arith.constant 0 : index
      %c0_21 = arith.constant 0 : index
      %21 = vector.load %arg5[%c0_20, %c0_21] : memref<1x20xf32, #tpu.memory_space<vmem>>, vector<1x20xf32>
      tpu.vector_store %arg5[%c0_20, %c0_21], %20 {strides = array<i32>} : memref<1x20xf32, #tpu.memory_space<vmem>>, vector<1x20xf32>,
    } else {
    }
    %c0_6 = arith.constant 0 : index
    %c0_7 = arith.constant 0 : index
    %7 = vector.load %arg4[%c0_6, %c0_7] : memref<1x20xf32, #tpu.memory_space<vmem>>, vector<1x20xf32>
    %cst_8 = arith.constant dense<0.000000e+00> : vector<20xf32>
    %8 = vector.multi_reduction <add>, %2, %cst_8 [0] : vector<256x20xf32> to vector<20xf32>
    %9 = vector.shape_cast %8 : vector<20xf32> to vector<1x20xf32>
    %10 = arith.addf %7, %9 : vector<1x20xf32>
    %c0_9 = arith.constant 0 : index
    %c0_10 = arith.constant 0 : index
    %11 = vector.load %arg4[%c0_9, %c0_10] : memref<1x20xf32, #tpu.memory_space<vmem>>, vector<1x20xf32>
    tpu.vector_store %arg4[%c0_9, %c0_10], %10 {strides = array<i32>} : memref<1x20xf32, #tpu.memory_space<vmem>>, vector<1x20xf32>,
    %c0_11 = arith.constant 0 : index
    %c0_12 = arith.constant 0 : index
    %12 = vector.load %arg5[%c0_11, %c0_12] : memref<1x20xf32, #tpu.memory_space<vmem>>, vector<1x20xf32>
    %13 = arith.mulf %2, %2 : vector<256x20xf32>
    %cst_13 = arith.constant dense<0.000000e+00> : vector<20xf32>
    %14 = vector.multi_reduction <add>, %13, %cst_13 [0] : vector<256x20xf32> to vector<20xf32>
    %15 = vector.shape_cast %14 : vector<20xf32> to vector<1x20xf32>
    %16 = arith.addf %12, %15 : vector<1x20xf32>
    %c0_14 = arith.constant 0 : index
    %c0_15 = arith.constant 0 : index
    %17 = vector.load %arg5[%c0_14, %c0_15] : memref<1x20xf32, #tpu.memory_space<vmem>>, vector<1x20xf32>
    tpu.vector_store %arg5[%c0_14, %c0_15], %16 {strides = array<i32>} : memref<1x20xf32, #tpu.memory_space<vmem>>, vector<1x20xf32>,
    return
  }
  func.func @transform_0(%arg0: i32) -> (i32, i32) {
    %c0_i32 = arith.constant 0 : i32
    %c0_i32_0 = arith.constant 0 : i32
    return %arg0, %c0_i32 : i32, i32
  }
  func.func @transform_1(%arg0: i32) -> (i32, i32) {
    %c0_i32 = arith.constant 0 : i32
    %c0_i32_0 = arith.constant 0 : i32
    %c0_i32_1 = arith.constant 0 : i32
    return %c0_i32, %c0_i32_0 : i32, i32
  }
  func.func @transform_2(%arg0: i32) -> (i32, i32) {
    %c0_i32 = arith.constant 0 : i32
    %c0_i32_0 = arith.constant 0 : i32
    return %arg0, %c0_i32 : i32, i32
  }
  func.func @transform_3(%arg0: i32) -> (i32, i32) {
    %c0_i32 = arith.constant 0 : i32
    %c0_i32_0 = arith.constant 0 : i32
    %c0_i32_1 = arith.constant 0 : i32
    return %c0_i32, %c0_i32_0 : i32, i32
  }
  func.func @transform_4(%arg0: i32) -> (i32, i32) {
    %c0_i32 = arith.constant 0 : i32
    %c0_i32_0 = arith.constant 0 : i32
    %c0_i32_1 = arith.constant 0 : i32
    return %c0_i32, %c0_i32_0 : i32, i32
  }
}

module attributes {stable_mosaic.version = 11 : i64} {
  func.func @_stage2_kernel(%arg0: i32, %arg1: memref<1x16x16x4xf32, #tpu.memory_space<vmem>>, %arg2: memref<1x4xf32, #tpu.memory_space<vmem>>, %arg3: memref<1x4xf32, #tpu.memory_space<vmem>>, %arg4: memref<3x3x4x4xf32, #tpu.memory_space<vmem>>, %arg5: memref<4x16xf32, #tpu.memory_space<vmem>>, %arg6: memref<1x256x16xf32, #tpu.memory_space<vmem>>, %arg7: memref<1x16xf32, #tpu.memory_space<vmem>>, %arg8: memref<1x16xf32, #tpu.memory_space<vmem>>) attributes {dimension_semantics = [#tpu.dimension_semantics<arbitrary>], iteration_bounds = array<i64: 2>, scalar_prefetch = 0 : i64, scratch_operands = 0 : i64, tpu.core_type = #tpu.core_type<tc>, window_params = [{transform_indices = @transform_0, window_bounds = array<i64: 1, 16, 16, 4>}, {pipeline_mode = #tpu.pipeline_mode<synchronous>, transform_indices = @transform_1, window_bounds = array<i64: 1, 4>}, {pipeline_mode = #tpu.pipeline_mode<synchronous>, transform_indices = @transform_2, window_bounds = array<i64: 1, 4>}, {pipeline_mode = #tpu.pipeline_mode<synchronous>, transform_indices = @transform_3, window_bounds = array<i64: 3, 3, 4, 4>}, {pipeline_mode = #tpu.pipeline_mode<synchronous>, transform_indices = @transform_4, window_bounds = array<i64: 4, 16>}, {transform_indices = @transform_5, window_bounds = array<i64: 1, 256, 16>}, {pipeline_mode = #tpu.pipeline_mode<synchronous>, transform_indices = @transform_6, window_bounds = array<i64: 1, 16>}, {pipeline_mode = #tpu.pipeline_mode<synchronous>, transform_indices = @transform_7, window_bounds = array<i64: 1, 16>}]} {
    %c0 = arith.constant 0 : index
    %c0_0 = arith.constant 0 : index
    %c0_1 = arith.constant 0 : index
    %c0_2 = arith.constant 0 : index
    %0 = vector.load %arg1[%c0, %c0_0, %c0_1, %c0_2] : memref<1x16x16x4xf32, #tpu.memory_space<vmem>>, vector<1x16x16x4xf32>
    %1 = vector.shape_cast %0 : vector<1x16x16x4xf32> to vector<16x16x4xf32>
    %c0_3 = arith.constant 0 : index
    %c0_4 = arith.constant 0 : index
    %2 = vector.load %arg2[%c0_3, %c0_4] : memref<1x4xf32, #tpu.memory_space<vmem>>, vector<1x4xf32>
    %3 = vector.shape_cast %2 : vector<1x4xf32> to vector<1x1x4xf32>
    %4 = vector.broadcast %3 : vector<1x1x4xf32> to vector<16x16x4xf32>
    %5 = arith.mulf %1, %4 : vector<16x16x4xf32>
    %c0_5 = arith.constant 0 : index
    %c0_6 = arith.constant 0 : index
    %6 = vector.load %arg3[%c0_5, %c0_6] : memref<1x4xf32, #tpu.memory_space<vmem>>, vector<1x4xf32>
    %7 = vector.shape_cast %6 : vector<1x4xf32> to vector<1x1x4xf32>
    %8 = vector.broadcast %7 : vector<1x1x4xf32> to vector<16x16x4xf32>
    %9 = arith.addf %5, %8 : vector<16x16x4xf32>
    %cst = arith.constant 0.000000e+00 : f32
    %10 = vector.broadcast %cst : f32 to vector<16x16x4xf32>
    %11 = arith.maximumf %9, %10 : vector<16x16x4xf32>
    %c0_i32 = arith.constant 0 : i32
    %12 = arith.sitofp %c0_i32 : i32 to f32
    %13 = vector.broadcast %12 : f32 to vector<1x16x4xf32>
    %14 = tpu.concatenate %13, %11 in 0 : vector<1x16x4xf32>, vector<16x16x4xf32> -> vector<17x16x4xf32>
    %15 = vector.broadcast %12 : f32 to vector<1x16x4xf32>
    %16 = tpu.concatenate %14, %15 in 0 : vector<17x16x4xf32>, vector<1x16x4xf32> -> vector<18x16x4xf32>
    %17 = vector.broadcast %12 : f32 to vector<18x1x4xf32>
    %18 = tpu.concatenate %17, %16 in 1 : vector<18x1x4xf32>, vector<18x16x4xf32> -> vector<18x17x4xf32>
    %19 = vector.broadcast %12 : f32 to vector<18x1x4xf32>
    %20 = tpu.concatenate %18, %19 in 1 : vector<18x17x4xf32>, vector<18x1x4xf32> -> vector<18x18x4xf32>
    %cst_7 = arith.constant 0.000000e+00 : f32
    %21 = vector.broadcast %cst_7 : f32 to vector<256x4xf32>
    %22 = vector.extract_strided_slice %20 {offsets = [0, 0, 0], sizes = [16, 16, 4], strides = [1, 1, 1]} : vector<18x18x4xf32> to vector<16x16x4xf32>
    %23 = vector.shape_cast %22 : vector<16x16x4xf32> to vector<256x4xf32>
    %c0_8 = arith.constant 0 : index
    %c0_9 = arith.constant 0 : index
    %c0_10 = arith.constant 0 : index
    %c0_11 = arith.constant 0 : index
    %24 = vector.load %arg4[%c0_8, %c0_9, %c0_10, %c0_11] : memref<3x3x4x4xf32, #tpu.memory_space<vmem>>, vector<1x1x4x4xf32>
    %25 = vector.shape_cast %24 : vector<1x1x4x4xf32> to vector<4x4xf32>
    %cst_12 = arith.constant dense<0.000000e+00> : vector<256x4xf32>
    %26 = tpu.matmul %23, %25, %cst_12 {dimension_numbers = #tpu.dot_dimension_numbers<[1], [0], [0], [1], [0, 0, 1, 1], [], []>} : vector<256x4xf32>, vector<4x4xf32>, vector<256x4xf32> -> vector<256x4xf32>
    %27 = arith.addf %21, %26 : vector<256x4xf32>
    %28 = vector.extract_strided_slice %20 {offsets = [0, 1, 0], sizes = [16, 16, 4], strides = [1, 1, 1]} : vector<18x18x4xf32> to vector<16x16x4xf32>
    %29 = vector.shape_cast %28 : vector<16x16x4xf32> to vector<256x4xf32>
    %c0_13 = arith.constant 0 : index
    %c1 = arith.constant 1 : index
    %c0_14 = arith.constant 0 : index
    %c0_15 = arith.constant 0 : index
    %30 = vector.load %arg4[%c0_13, %c1, %c0_14, %c0_15] : memref<3x3x4x4xf32, #tpu.memory_space<vmem>>, vector<1x1x4x4xf32>
    %31 = vector.shape_cast %30 : vector<1x1x4x4xf32> to vector<4x4xf32>
    %cst_16 = arith.constant dense<0.000000e+00> : vector<256x4xf32>
    %32 = tpu.matmul %29, %31, %cst_16 {dimension_numbers = #tpu.dot_dimension_numbers<[1], [0], [0], [1], [0, 0, 1, 1], [], []>} : vector<256x4xf32>, vector<4x4xf32>, vector<256x4xf32> -> vector<256x4xf32>
    %33 = arith.addf %27, %32 : vector<256x4xf32>
    %34 = vector.extract_strided_slice %20 {offsets = [0, 2, 0], sizes = [16, 16, 4], strides = [1, 1, 1]} : vector<18x18x4xf32> to vector<16x16x4xf32>
    %35 = vector.shape_cast %34 : vector<16x16x4xf32> to vector<256x4xf32>
    %c0_17 = arith.constant 0 : index
    %c2 = arith.constant 2 : index
    %c0_18 = arith.constant 0 : index
    %c0_19 = arith.constant 0 : index
    %36 = vector.load %arg4[%c0_17, %c2, %c0_18, %c0_19] : memref<3x3x4x4xf32, #tpu.memory_space<vmem>>, vector<1x1x4x4xf32>
    %37 = vector.shape_cast %36 : vector<1x1x4x4xf32> to vector<4x4xf32>
    %cst_20 = arith.constant dense<0.000000e+00> : vector<256x4xf32>
    %38 = tpu.matmul %35, %37, %cst_20 {dimension_numbers = #tpu.dot_dimension_numbers<[1], [0], [0], [1], [0, 0, 1, 1], [], []>} : vector<256x4xf32>, vector<4x4xf32>, vector<256x4xf32> -> vector<256x4xf32>
    %39 = arith.addf %33, %38 : vector<256x4xf32>
    %40 = vector.extract_strided_slice %20 {offsets = [1, 0, 0], sizes = [16, 16, 4], strides = [1, 1, 1]} : vector<18x18x4xf32> to vector<16x16x4xf32>
    %41 = vector.shape_cast %40 : vector<16x16x4xf32> to vector<256x4xf32>
    %c1_21 = arith.constant 1 : index
    %c0_22 = arith.constant 0 : index
    %c0_23 = arith.constant 0 : index
    %c0_24 = arith.constant 0 : index
    %42 = vector.load %arg4[%c1_21, %c0_22, %c0_23, %c0_24] : memref<3x3x4x4xf32, #tpu.memory_space<vmem>>, vector<1x1x4x4xf32>
    %43 = vector.shape_cast %42 : vector<1x1x4x4xf32> to vector<4x4xf32>
    %cst_25 = arith.constant dense<0.000000e+00> : vector<256x4xf32>
    %44 = tpu.matmul %41, %43, %cst_25 {dimension_numbers = #tpu.dot_dimension_numbers<[1], [0], [0], [1], [0, 0, 1, 1], [], []>} : vector<256x4xf32>, vector<4x4xf32>, vector<256x4xf32> -> vector<256x4xf32>
    %45 = arith.addf %39, %44 : vector<256x4xf32>
    %46 = vector.extract_strided_slice %20 {offsets = [1, 1, 0], sizes = [16, 16, 4], strides = [1, 1, 1]} : vector<18x18x4xf32> to vector<16x16x4xf32>
    %47 = vector.shape_cast %46 : vector<16x16x4xf32> to vector<256x4xf32>
    %c1_26 = arith.constant 1 : index
    %c1_27 = arith.constant 1 : index
    %c0_28 = arith.constant 0 : index
    %c0_29 = arith.constant 0 : index
    %48 = vector.load %arg4[%c1_26, %c1_27, %c0_28, %c0_29] : memref<3x3x4x4xf32, #tpu.memory_space<vmem>>, vector<1x1x4x4xf32>
    %49 = vector.shape_cast %48 : vector<1x1x4x4xf32> to vector<4x4xf32>
    %cst_30 = arith.constant dense<0.000000e+00> : vector<256x4xf32>
    %50 = tpu.matmul %47, %49, %cst_30 {dimension_numbers = #tpu.dot_dimension_numbers<[1], [0], [0], [1], [0, 0, 1, 1], [], []>} : vector<256x4xf32>, vector<4x4xf32>, vector<256x4xf32> -> vector<256x4xf32>
    %51 = arith.addf %45, %50 : vector<256x4xf32>
    %52 = vector.extract_strided_slice %20 {offsets = [1, 2, 0], sizes = [16, 16, 4], strides = [1, 1, 1]} : vector<18x18x4xf32> to vector<16x16x4xf32>
    %53 = vector.shape_cast %52 : vector<16x16x4xf32> to vector<256x4xf32>
    %c1_31 = arith.constant 1 : index
    %c2_32 = arith.constant 2 : index
    %c0_33 = arith.constant 0 : index
    %c0_34 = arith.constant 0 : index
    %54 = vector.load %arg4[%c1_31, %c2_32, %c0_33, %c0_34] : memref<3x3x4x4xf32, #tpu.memory_space<vmem>>, vector<1x1x4x4xf32>
    %55 = vector.shape_cast %54 : vector<1x1x4x4xf32> to vector<4x4xf32>
    %cst_35 = arith.constant dense<0.000000e+00> : vector<256x4xf32>
    %56 = tpu.matmul %53, %55, %cst_35 {dimension_numbers = #tpu.dot_dimension_numbers<[1], [0], [0], [1], [0, 0, 1, 1], [], []>} : vector<256x4xf32>, vector<4x4xf32>, vector<256x4xf32> -> vector<256x4xf32>
    %57 = arith.addf %51, %56 : vector<256x4xf32>
    %58 = vector.extract_strided_slice %20 {offsets = [2, 0, 0], sizes = [16, 16, 4], strides = [1, 1, 1]} : vector<18x18x4xf32> to vector<16x16x4xf32>
    %59 = vector.shape_cast %58 : vector<16x16x4xf32> to vector<256x4xf32>
    %c2_36 = arith.constant 2 : index
    %c0_37 = arith.constant 0 : index
    %c0_38 = arith.constant 0 : index
    %c0_39 = arith.constant 0 : index
    %60 = vector.load %arg4[%c2_36, %c0_37, %c0_38, %c0_39] : memref<3x3x4x4xf32, #tpu.memory_space<vmem>>, vector<1x1x4x4xf32>
    %61 = vector.shape_cast %60 : vector<1x1x4x4xf32> to vector<4x4xf32>
    %cst_40 = arith.constant dense<0.000000e+00> : vector<256x4xf32>
    %62 = tpu.matmul %59, %61, %cst_40 {dimension_numbers = #tpu.dot_dimension_numbers<[1], [0], [0], [1], [0, 0, 1, 1], [], []>} : vector<256x4xf32>, vector<4x4xf32>, vector<256x4xf32> -> vector<256x4xf32>
    %63 = arith.addf %57, %62 : vector<256x4xf32>
    %64 = vector.extract_strided_slice %20 {offsets = [2, 1, 0], sizes = [16, 16, 4], strides = [1, 1, 1]} : vector<18x18x4xf32> to vector<16x16x4xf32>
    %65 = vector.shape_cast %64 : vector<16x16x4xf32> to vector<256x4xf32>
    %c2_41 = arith.constant 2 : index
    %c1_42 = arith.constant 1 : index
    %c0_43 = arith.constant 0 : index
    %c0_44 = arith.constant 0 : index
    %66 = vector.load %arg4[%c2_41, %c1_42, %c0_43, %c0_44] : memref<3x3x4x4xf32, #tpu.memory_space<vmem>>, vector<1x1x4x4xf32>
    %67 = vector.shape_cast %66 : vector<1x1x4x4xf32> to vector<4x4xf32>
    %cst_45 = arith.constant dense<0.000000e+00> : vector<256x4xf32>
    %68 = tpu.matmul %65, %67, %cst_45 {dimension_numbers = #tpu.dot_dimension_numbers<[1], [0], [0], [1], [0, 0, 1, 1], [], []>} : vector<256x4xf32>, vector<4x4xf32>, vector<256x4xf32> -> vector<256x4xf32>
    %69 = arith.addf %63, %68 : vector<256x4xf32>
    %70 = vector.extract_strided_slice %20 {offsets = [2, 2, 0], sizes = [16, 16, 4], strides = [1, 1, 1]} : vector<18x18x4xf32> to vector<16x16x4xf32>
    %71 = vector.shape_cast %70 : vector<16x16x4xf32> to vector<256x4xf32>
    %c2_46 = arith.constant 2 : index
    %c2_47 = arith.constant 2 : index
    %c0_48 = arith.constant 0 : index
    %c0_49 = arith.constant 0 : index
    %72 = vector.load %arg4[%c2_46, %c2_47, %c0_48, %c0_49] : memref<3x3x4x4xf32, #tpu.memory_space<vmem>>, vector<1x1x4x4xf32>
    %73 = vector.shape_cast %72 : vector<1x1x4x4xf32> to vector<4x4xf32>
    %cst_50 = arith.constant dense<0.000000e+00> : vector<256x4xf32>
    %74 = tpu.matmul %71, %73, %cst_50 {dimension_numbers = #tpu.dot_dimension_numbers<[1], [0], [0], [1], [0, 0, 1, 1], [], []>} : vector<256x4xf32>, vector<4x4xf32>, vector<256x4xf32> -> vector<256x4xf32>
    %75 = arith.addf %69, %74 : vector<256x4xf32>
    %cst_51 = arith.constant 0.000000e+00 : f32
    %76 = vector.broadcast %cst_51 : f32 to vector<256x4xf32>
    %77 = arith.maximumf %75, %76 : vector<256x4xf32>
    %c0_52 = arith.constant 0 : index
    %c0_53 = arith.constant 0 : index
    %78 = vector.load %arg5[%c0_52, %c0_53] : memref<4x16xf32, #tpu.memory_space<vmem>>, vector<4x16xf32>
    %cst_54 = arith.constant dense<0.000000e+00> : vector<256x16xf32>
    %79 = tpu.matmul %77, %78, %cst_54 {dimension_numbers = #tpu.dot_dimension_numbers<[1], [0], [0], [1], [0, 0, 1, 1], [], []>} : vector<256x4xf32>, vector<4x16xf32>, vector<256x16xf32> -> vector<256x16xf32>
    %c0_55 = arith.constant 0 : index
    %c0_56 = arith.constant 0 : index
    %c0_57 = arith.constant 0 : index
    %80 = vector.load %arg6[%c0_55, %c0_56, %c0_57] : memref<1x256x16xf32, #tpu.memory_space<vmem>>, vector<1x256x16xf32>
    %81 = vector.shape_cast %80 : vector<1x256x16xf32> to vector<256x16xf32>
    %82 = vector.shape_cast %79 : vector<256x16xf32> to vector<1x256x16xf32>
    tpu.vector_store %arg6[%c0_55, %c0_56, %c0_57], %82 {strides = array<i32>} : memref<1x256x16xf32, #tpu.memory_space<vmem>>, vector<1x256x16xf32>,
    %c0_i32_58 = arith.constant 0 : i32
    %83 = arith.cmpi eq, %arg0, %c0_i32_58 : i32
    %84 = arith.extui %83 : i1 to i32
    %c0_i32_59 = arith.constant 0 : i32
    %85 = arith.cmpi ne, %84, %c0_i32_59 : i32
    scf.if %85 {
      %cst_70 = arith.constant 0.000000e+00 : f32
      %97 = vector.broadcast %cst_70 : f32 to vector<1x16xf32>
      %c0_71 = arith.constant 0 : index
      %c0_72 = arith.constant 0 : index
      %98 = vector.load %arg7[%c0_71, %c0_72] : memref<1x16xf32, #tpu.memory_space<vmem>>, vector<1x16xf32>
      tpu.vector_store %arg7[%c0_71, %c0_72], %97 {strides = array<i32>} : memref<1x16xf32, #tpu.memory_space<vmem>>, vector<1x16xf32>,
      %cst_73 = arith.constant 0.000000e+00 : f32
      %99 = vector.broadcast %cst_73 : f32 to vector<1x16xf32>
      %c0_74 = arith.constant 0 : index
      %c0_75 = arith.constant 0 : index
      %100 = vector.load %arg8[%c0_74, %c0_75] : memref<1x16xf32, #tpu.memory_space<vmem>>, vector<1x16xf32>
      tpu.vector_store %arg8[%c0_74, %c0_75], %99 {strides = array<i32>} : memref<1x16xf32, #tpu.memory_space<vmem>>, vector<1x16xf32>,
    } else {
    }
    %c0_60 = arith.constant 0 : index
    %c0_61 = arith.constant 0 : index
    %86 = vector.load %arg7[%c0_60, %c0_61] : memref<1x16xf32, #tpu.memory_space<vmem>>, vector<1x16xf32>
    %cst_62 = arith.constant dense<0.000000e+00> : vector<16xf32>
    %87 = vector.multi_reduction <add>, %79, %cst_62 [0] : vector<256x16xf32> to vector<16xf32>
    %88 = vector.shape_cast %87 : vector<16xf32> to vector<1x16xf32>
    %89 = arith.addf %86, %88 : vector<1x16xf32>
    %c0_63 = arith.constant 0 : index
    %c0_64 = arith.constant 0 : index
    %90 = vector.load %arg7[%c0_63, %c0_64] : memref<1x16xf32, #tpu.memory_space<vmem>>, vector<1x16xf32>
    tpu.vector_store %arg7[%c0_63, %c0_64], %89 {strides = array<i32>} : memref<1x16xf32, #tpu.memory_space<vmem>>, vector<1x16xf32>,
    %c0_65 = arith.constant 0 : index
    %c0_66 = arith.constant 0 : index
    %91 = vector.load %arg8[%c0_65, %c0_66] : memref<1x16xf32, #tpu.memory_space<vmem>>, vector<1x16xf32>
    %92 = arith.mulf %79, %79 : vector<256x16xf32>
    %cst_67 = arith.constant dense<0.000000e+00> : vector<16xf32>
    %93 = vector.multi_reduction <add>, %92, %cst_67 [0] : vector<256x16xf32> to vector<16xf32>
    %94 = vector.shape_cast %93 : vector<16xf32> to vector<1x16xf32>
    %95 = arith.addf %91, %94 : vector<1x16xf32>
    %c0_68 = arith.constant 0 : index
    %c0_69 = arith.constant 0 : index
    %96 = vector.load %arg8[%c0_68, %c0_69] : memref<1x16xf32, #tpu.memory_space<vmem>>, vector<1x16xf32>
    tpu.vector_store %arg8[%c0_68, %c0_69], %95 {strides = array<i32>} : memref<1x16xf32, #tpu.memory_space<vmem>>, vector<1x16xf32>,
    return
  }
  func.func @transform_0(%arg0: i32) -> (i32, i32, i32, i32) {
    %c0_i32 = arith.constant 0 : i32
    %c0_i32_0 = arith.constant 0 : i32
    %c0_i32_1 = arith.constant 0 : i32
    %c0_i32_2 = arith.constant 0 : i32
    return %arg0, %c0_i32, %c0_i32_0, %c0_i32_1 : i32, i32, i32, i32
  }
  func.func @transform_1(%arg0: i32) -> (i32, i32) {
    %c0_i32 = arith.constant 0 : i32
    %c0_i32_0 = arith.constant 0 : i32
    %c0_i32_1 = arith.constant 0 : i32
    return %c0_i32, %c0_i32_0 : i32, i32
  }
  func.func @transform_2(%arg0: i32) -> (i32, i32) {
    %c0_i32 = arith.constant 0 : i32
    %c0_i32_0 = arith.constant 0 : i32
    %c0_i32_1 = arith.constant 0 : i32
    return %c0_i32, %c0_i32_0 : i32, i32
  }
  func.func @transform_3(%arg0: i32) -> (i32, i32, i32, i32) {
    %c0_i32 = arith.constant 0 : i32
    %c0_i32_0 = arith.constant 0 : i32
    %c0_i32_1 = arith.constant 0 : i32
    %c0_i32_2 = arith.constant 0 : i32
    %c0_i32_3 = arith.constant 0 : i32
    return %c0_i32, %c0_i32_0, %c0_i32_1, %c0_i32_2 : i32, i32, i32, i32
  }
  func.func @transform_4(%arg0: i32) -> (i32, i32) {
    %c0_i32 = arith.constant 0 : i32
    %c0_i32_0 = arith.constant 0 : i32
    %c0_i32_1 = arith.constant 0 : i32
    return %c0_i32, %c0_i32_0 : i32, i32
  }
  func.func @transform_5(%arg0: i32) -> (i32, i32, i32) {
    %c0_i32 = arith.constant 0 : i32
    %c0_i32_0 = arith.constant 0 : i32
    %c0_i32_1 = arith.constant 0 : i32
    return %arg0, %c0_i32, %c0_i32_0 : i32, i32, i32
  }
  func.func @transform_6(%arg0: i32) -> (i32, i32) {
    %c0_i32 = arith.constant 0 : i32
    %c0_i32_0 = arith.constant 0 : i32
    %c0_i32_1 = arith.constant 0 : i32
    return %c0_i32, %c0_i32_0 : i32, i32
  }
  func.func @transform_7(%arg0: i32) -> (i32, i32) {
    %c0_i32 = arith.constant 0 : i32
    %c0_i32_0 = arith.constant 0 : i32
    %c0_i32_1 = arith.constant 0 : i32
    return %c0_i32, %c0_i32_0 : i32, i32
  }
}

module attributes {stable_mosaic.version = 11 : i64} {
  func.func @_stage3_kernel(%arg0: i32, %arg1: memref<32x256xf32, #tpu.memory_space<vmem>>, %arg2: memref<32x256xf32, #tpu.memory_space<vmem>>, %arg3: memref<1x256xf32, #tpu.memory_space<vmem>>, %arg4: memref<1x256xf32, #tpu.memory_space<vmem>>, %arg5: memref<1x256xf32, #tpu.memory_space<vmem>>, %arg6: memref<32x256xf32, #tpu.memory_space<vmem>>) attributes {dimension_semantics = [#tpu.dimension_semantics<parallel>], iteration_bounds = array<i64: 1>, scalar_prefetch = 0 : i64, scratch_operands = 0 : i64, tpu.core_type = #tpu.core_type<tc>, window_params = [{transform_indices = @transform_0, window_bounds = array<i64: 32, 256>}, {transform_indices = @transform_1, window_bounds = array<i64: 32, 256>}, {pipeline_mode = #tpu.pipeline_mode<synchronous>, transform_indices = @transform_2, window_bounds = array<i64: 1, 256>}, {pipeline_mode = #tpu.pipeline_mode<synchronous>, transform_indices = @transform_3, window_bounds = array<i64: 1, 256>}, {pipeline_mode = #tpu.pipeline_mode<synchronous>, transform_indices = @transform_4, window_bounds = array<i64: 1, 256>}, {transform_indices = @transform_5, window_bounds = array<i64: 32, 256>}]} {
    %c0 = arith.constant 0 : index
    %c0_0 = arith.constant 0 : index
    %0 = vector.load %arg1[%c0, %c0_0] : memref<32x256xf32, #tpu.memory_space<vmem>>, vector<32x256xf32>
    %c0_1 = arith.constant 0 : index
    %c0_2 = arith.constant 0 : index
    %1 = vector.load %arg3[%c0_1, %c0_2] : memref<1x256xf32, #tpu.memory_space<vmem>>, vector<1x256xf32>
    %2 = vector.broadcast %1 : vector<1x256xf32> to vector<32x256xf32>
    %3 = arith.mulf %0, %2 : vector<32x256xf32>
    %c0_3 = arith.constant 0 : index
    %c0_4 = arith.constant 0 : index
    %4 = vector.load %arg2[%c0_3, %c0_4] : memref<32x256xf32, #tpu.memory_space<vmem>>, vector<32x256xf32>
    %c0_5 = arith.constant 0 : index
    %c0_6 = arith.constant 0 : index
    %5 = vector.load %arg4[%c0_5, %c0_6] : memref<1x256xf32, #tpu.memory_space<vmem>>, vector<1x256xf32>
    %6 = vector.broadcast %5 : vector<1x256xf32> to vector<32x256xf32>
    %7 = arith.mulf %4, %6 : vector<32x256xf32>
    %8 = arith.addf %3, %7 : vector<32x256xf32>
    %c0_7 = arith.constant 0 : index
    %c0_8 = arith.constant 0 : index
    %9 = vector.load %arg5[%c0_7, %c0_8] : memref<1x256xf32, #tpu.memory_space<vmem>>, vector<1x256xf32>
    %10 = vector.broadcast %9 : vector<1x256xf32> to vector<32x256xf32>
    %11 = arith.addf %8, %10 : vector<32x256xf32>
    %cst = arith.constant 0.000000e+00 : f32
    %12 = vector.broadcast %cst : f32 to vector<32x256xf32>
    %13 = arith.maximumf %11, %12 : vector<32x256xf32>
    %c0_9 = arith.constant 0 : index
    %c0_10 = arith.constant 0 : index
    %14 = vector.load %arg6[%c0_9, %c0_10] : memref<32x256xf32, #tpu.memory_space<vmem>>, vector<32x256xf32>
    tpu.vector_store %arg6[%c0_9, %c0_10], %13 {strides = array<i32>} : memref<32x256xf32, #tpu.memory_space<vmem>>, vector<32x256xf32>,
    return
  }
  func.func @transform_0(%arg0: i32) -> (i32, i32) {
    %c0_i32 = arith.constant 0 : i32
    %c0_i32_0 = arith.constant 0 : i32
    return %arg0, %c0_i32 : i32, i32
  }
  func.func @transform_1(%arg0: i32) -> (i32, i32) {
    %c0_i32 = arith.constant 0 : i32
    %c0_i32_0 = arith.constant 0 : i32
    return %arg0, %c0_i32 : i32, i32
  }
  func.func @transform_2(%arg0: i32) -> (i32, i32) {
    %c0_i32 = arith.constant 0 : i32
    %c0_i32_0 = arith.constant 0 : i32
    %c0_i32_1 = arith.constant 0 : i32
    return %c0_i32, %c0_i32_0 : i32, i32
  }
  func.func @transform_3(%arg0: i32) -> (i32, i32) {
    %c0_i32 = arith.constant 0 : i32
    %c0_i32_0 = arith.constant 0 : i32
    %c0_i32_1 = arith.constant 0 : i32
    return %c0_i32, %c0_i32_0 : i32, i32
  }
  func.func @transform_4(%arg0: i32) -> (i32, i32) {
    %c0_i32 = arith.constant 0 : i32
    %c0_i32_0 = arith.constant 0 : i32
    %c0_i32_1 = arith.constant 0 : i32
    return %c0_i32, %c0_i32_0 : i32, i32
  }
  func.func @transform_5(%arg0: i32) -> (i32, i32) {
    %c0_i32 = arith.constant 0 : i32
    %c0_i32_0 = arith.constant 0 : i32
    return %arg0, %c0_i32 : i32, i32
  }
}

</mosaic_0001>

<bundles_post_ra>
// kernel: bottleneck_forward.3
= control target key start
LH: loop header
LB: loop body
LE: loop exit
PB: predicated region body
PF: predicated region fallthrough
CT: control target
= control target key end

     0   :  { %s819_s15 = smov 0   ;;  %s1232_s0 = inlined_call_operand.vmem [shape: f32[512,4], index: 0, kind: input, shape index: {}]   ;;  %s1233_s1 = inlined_call_operand.vmem [shape: f32[4,20], index: 1, kind: input, shape index: {}]   ;;  %s1234_s2 = inlined_call_operand.vmem [shape: f32[512,20], index: 2, kind: output, shape index: {0}]   ;;  %s1235_s3 = inlined_call_operand.vmem [shape: f32[1,20], index: 3, kind: output, shape index: {1}]   ;;  %s1236_s4 = inlined_call_operand.vmem [shape: f32[1,20], index: 4, kind: output, shape index: {2}]  }
   0x1 LB: > { %s728_s16 = sadd.s32 4294967295, %s791_s15   ;;  %p732_p0 = scmp.ge.s32.totalorder %s791_s15, 1  ;;  %s791_s15 = sphi %s819_s15, %s15_s15  }
   0x2   : > { %p158_p1 = scmp.lt.s32.totalorder %s791_s15, 3 }
   0x4   : > { %p159_p2 = pnand %p732_p0, %p158_p1 }
   0x5   : > { %s733_s19 = sshll.u32 (!%p159_p2), %s728_s16, 5  ;;  %p770_p4 = scmp.ne.s32.totalorder (!%p159_p2), %s728_s16, 0 }
   0x6   : > { %162 = sbr.rel (%p159_p2) target bundleno = 290 (0x122), region = 28  ;;  %p185_p3 = scmp.lt.s32.totalorder (!%p159_p2), %s733_s19, 63 }
   0xb   : > { %v228_v0 = vld [vmem:[%s1233_s1] sm:$0xf]  ;;  %vm326_vm0 = vcmask 1043456   ;;  %s1238_s19 = smov (!%p185_p3, %s733_s19), 63  ;;  %vm229_vm1 = vcmask 31744   ;;  %vm443_vm2 = vcmask 162816  }
   0xc   : > { %774 = vmatpush.msk.msra.mxu2 %vm326_vm0, %v228_v0  ;;  %775 = vmatpush.msk.msra.mxu3 %vm326_vm0, %v228_v0  ;;  %s734_s20 = sshll.u32 %s1238_s19, 3 }
   0xd   : > { %737 = vmatpush.msk.msra.mxu0 %vm326_vm0, %v228_v0  ;;  %773 = vmatpush.msk.msra.mxu1 %vm326_vm0, %v228_v0  ;;  %s840_s23 = scalar_lea.vmem %s1232_s0, %s734_s20  ;;  %s911_s26 = scalar_lea.vmem %s1234_s2, %s734_s20 }
   0xe   : > { %v212_v1 = vld [vmem:[%s840_s23 + $0x80] sm:$0xff]  ;;  %v213_v5 = vld [vmem:[%s840_s23 + $0x88] sm:$0xff]  ;;  %v214_v9 = vld [vmem:[%s840_s23 + $0x90] sm:$0xff] }
   0xf   : > { %v220_v2 = vld [vmem:[%s840_s23 + $0xc0] sm:$0xff]  ;;  %754 = vmatmul.msk.f32.vlgmr.msra.gmra.mxu2 %vm229_vm1, %v212_v1  ;;  %v221_v6 = vld [vmem:[%s840_s23 + $0xc8] sm:$0xff]  ;;  %v222_v10 = vld [vmem:[%s840_s23 + $0xd0] sm:$0xff] }
  0x10   : > { %v196_v3 = vld [vmem:[%s840_s23] sm:$0xff]  ;;  %762 = vmatmul.msk.f32.vlgmr.msra.gmra.mxu3 %vm229_vm1, %v220_v2  ;;  %v197_v7 = vld [vmem:[%s840_s23 + $0x8] sm:$0xff]  ;;  %v198_v11 = vld [vmem:[%s840_s23 + $0x10] sm:$0xff] }
  0x11   : > { %v204_v4 = vld [vmem:[%s840_s23 + $0x40] sm:$0xff]  ;;  %738 = vmatmul.msk.f32.vlgmr.msra.gmra.mxu0 %vm229_vm1, %v196_v3  ;;  %v205_v8 = vld [vmem:[%s840_s23 + $0x48] sm:$0xff]  ;;  %v206_v12 = vld [vmem:[%s840_s23 + $0x50] sm:$0xff] }
  0x12   : > { %746 = vmatmul.msk.f32.vlgmr.msra.gmra.mxu1 %vm229_vm1, %v204_v4  ;;  %v215_v13 = vld [vmem:[%s840_s23 + $0x98] sm:$0xff]  ;;  %v216_v17 = vld [vmem:[%s840_s23 + $0xa0] sm:$0xff]  ;;  %v217_v21 = vld [vmem:[%s840_s23 + $0xa8] sm:$0xff] }
  0x13   : > { %v223_v14 = vld [vmem:[%s840_s23 + $0xd8] sm:$0xff]  ;;  %v224_v18 = vld [vmem:[%s840_s23 + $0xe0] sm:$0xff]  ;;  %v225_v22 = vld [vmem:[%s840_s23 + $0xe8] sm:$0xff] }
  0x14   : > { %v199_v15 = vld [vmem:[%s840_s23 + $0x18] sm:$0xff]  ;;  %v200_v19 = vld [vmem:[%s840_s23 + $0x20] sm:$0xff]  ;;  %v201_v23 = vld [vmem:[%s840_s23 + $0x28] sm:$0xff] }
  0x15   : > { %v207_v16 = vld [vmem:[%s840_s23 + $0x58] sm:$0xff]  ;;  %v208_v20 = vld [vmem:[%s840_s23 + $0x60] sm:$0xff]  ;;  %v209_v24 = vld [vmem:[%s840_s23 + $0x68] sm:$0xff] }
  0x16   : > { %v218_v25 = vld [vmem:[%s840_s23 + $0xb0] sm:$0xff]  ;;  %v219_v29 = vld [vmem:[%s840_s23 + $0xb8] sm:$0xff] }
  0x17   : > { %755 = vmatmul.msk.f32.gmra.mxu2 %vm229_vm1, %v213_v5  ;;  %v226_v26 = vld [vmem:[%s840_s23 + $0xf0] sm:$0xff]  ;;  %v227_v30 = vld [vmem:[%s840_s23 + $0xf8] sm:$0xff] }
  0x18   : > { %763 = vmatmul.msk.f32.gmra.mxu3 %vm229_vm1, %v221_v6  ;;  %v202_v27 = vld [vmem:[%s840_s23 + $0x30] sm:$0xff]  ;;  %v203_v31 = vld [vmem:[%s840_s23 + $0x38] sm:$0xff] }
  0x19   : > { %739 = vmatmul.msk.f32.gmra.mxu0 %vm229_vm1, %v197_v7  ;;  %v210_v28 = vld [vmem:[%s840_s23 + $0x70] sm:$0xff]  ;;  %v211_v32 = vld [vmem:[%s840_s23 + $0x78] sm:$0xff] }
  0x1a   : > { %747 = vmatmul.msk.f32.gmra.mxu1 %vm229_vm1, %v205_v8 }
  0x1f   : > { %756 = vmatmul.msk.f32.gmra.mxu2 %vm229_vm1, %v214_v9 }
  0x20   : > { %764 = vmatmul.msk.f32.gmra.mxu3 %vm229_vm1, %v222_v10 }
  0x21   : > { %740 = vmatmul.msk.f32.gmra.mxu0 %vm229_vm1, %v198_v11 }
  0x22   : > { %748 = vmatmul.msk.f32.gmra.mxu1 %vm229_vm1, %v206_v12 }
  0x27   : > { %757 = vmatmul.msk.f32.gmra.mxu2 %vm229_vm1, %v215_v13 }
  0x28   : > { %765 = vmatmul.msk.f32.gmra.mxu3 %vm229_vm1, %v223_v14 }
  0x29   : > { %741 = vmatmul.msk.f32.gmra.mxu0 %vm229_vm1, %v199_v15 }
  0x2a   : > { %749 = vmatmul.msk.f32.gmra.mxu1 %vm229_vm1, %v207_v16 }
  0x2f   : > { %758 = vmatmul.msk.f32.gmra.mxu2 %vm229_vm1, %v216_v17 }
  0x30   : > { %766 = vmatmul.msk.f32.gmra.mxu3 %vm229_vm1, %v224_v18 }
  0x31   : > { %742 = vmatmul.msk.f32.gmra.mxu0 %vm229_vm1, %v200_v19 }
  0x32   : > { %750 = vmatmul.msk.f32.gmra.mxu1 %vm229_vm1, %v208_v20 }
  0x37   : > { %759 = vmatmul.msk.f32.gmra.mxu2 %vm229_vm1, %v217_v21 }
  0x38   : > { %767 = vmatmul.msk.f32.gmra.mxu3 %vm229_vm1, %v225_v22 }
  0x39   : > { %743 = vmatmul.msk.f32.gmra.mxu0 %vm229_vm1, %v201_v23 }
  0x3a   : > { %751 = vmatmul.msk.f32.gmra.mxu1 %vm229_vm1, %v209_v24 }
  0x3f   : > { %760 = vmatmul.msk.f32.gmra.mxu2 %vm229_vm1, %v218_v25 }
  0x40   : > { %768 = vmatmul.msk.f32.gmra.mxu3 %vm229_vm1, %v226_v26 }
  0x41   : > { %744 = vmatmul.msk.f32.gmra.mxu0 %vm229_vm1, %v202_v27 }
  0x42   : > { %752 = vmatmul.msk.f32.gmra.mxu1 %vm229_vm1, %v210_v28 }
  0x47   : > { %761 = vmatmul.msk.f32.gmra.mxu2 %vm229_vm1, %v219_v29 }
  0x48   : > { %769 = vmatmul.msk.f32.gmra.mxu3 %vm229_vm1, %v227_v30 }
  0x49   : > { %745 = vmatmul.msk.f32.gmra.mxu0 %vm229_vm1, %v203_v31 }
  0x4a   : > { %753 = vmatmul.msk.f32.gmra.mxu1 %vm229_vm1, %v211_v32 }
  0x8e   : > { %v913_v33 = vpop.f32.mrf.mxu0 }
  0x8f   : > { %v915_v34 = vpop.f32.mrf.mxu1  ;;  %444 = vst.msk [vmem:[%s911_s26] sm:$0xff] %vm443_vm2, %v913_v33 }
  0x90   : > { %452 = vst.msk [vmem:[%s911_s26 + $0x40] sm:$0xff] %vm443_vm2, %v915_v34 }
  0x92   : > { %v923_v35 = vpop.f32.mrf.mxu2 }
  0x93   : > { %v925_v36 = vpop.f32.mrf.mxu3  ;;  %460 = vst.msk [vmem:[%s911_s26 + $0x80] sm:$0xff] %vm443_vm2, %v923_v35 }
  0x94   : > { %468 = vst.msk [vmem:[%s911_s26 + $0xc0] sm:$0xff] %vm443_vm2, %v925_v36 }
  0x96   : > { %v933_v37 = vpop.f32.mrf.mxu0 }
  0x97   : > { %v935_v38 = vpop.f32.mrf.mxu1  ;;  %445 = vst.msk [vmem:[%s911_s26 + $0x8] sm:$0xff] %vm443_vm2, %v933_v37 }
  0x98   : > { %453 = vst.msk [vmem:[%s911_s26 + $0x48] sm:$0xff] %vm443_vm2, %v935_v38 }
  0x9a   : > { %v943_v39 = vpop.f32.mrf.mxu2 }
  0x9b   : > { %v945_v40 = vpop.f32.mrf.mxu3  ;;  %461 = vst.msk [vmem:[%s911_s26 + $0x88] sm:$0xff] %vm443_vm2, %v943_v39 }
  0x9c   : > { %469 = vst.msk [vmem:[%s911_s26 + $0xc8] sm:$0xff] %vm443_vm2, %v945_v40 }
  0x9e   : > { %v953_v41 = vpop.f32.mrf.mxu0 }
  0x9f   : > { %v955_v42 = vpop.f32.mrf.mxu1  ;;  %446 = vst.msk [vmem:[%s911_s26 + $0x10] sm:$0xff] %vm443_vm2, %v953_v41 }
  0xa0   : > { %454 = vst.msk [vmem:[%s911_s26 + $0x50] sm:$0xff] %vm443_vm2, %v955_v42 }
  0xa2   : > { %v963_v43 = vpop.f32.mrf.mxu2 }
  0xa3   : > { %v965_v44 = vpop.f32.mrf.mxu3  ;;  %462 = vst.msk [vmem:[%s911_s26 + $0x90] sm:$0xff] %vm443_vm2, %v963_v43 }
  0xa4   : > { %470 = vst.msk [vmem:[%s911_s26 + $0xd0] sm:$0xff] %vm443_vm2, %v965_v44 }
  0xa6   : > { %v973_v45 = vpop.f32.mrf.mxu0 }
  0xa7   : > { %v975_v46 = vpop.f32.mrf.mxu1  ;;  %447 = vst.msk [vmem:[%s911_s26 + $0x18] sm:$0xff] %vm443_vm2, %v973_v45 }
  0xa8   : > { %455 = vst.msk [vmem:[%s911_s26 + $0x58] sm:$0xff] %vm443_vm2, %v975_v46 }
  0xaa   : > { %v983_v47 = vpop.f32.mrf.mxu2 }
  0xab   : > { %v985_v48 = vpop.f32.mrf.mxu3  ;;  %463 = vst.msk [vmem:[%s911_s26 + $0x98] sm:$0xff] %vm443_vm2, %v983_v47 }
  0xac   : > { %471 = vst.msk [vmem:[%s911_s26 + $0xd8] sm:$0xff] %vm443_vm2, %v985_v48 }
  0xae   : > { %v359_v49 = vpop.f32.mrf.mxu0 }
  0xaf   : > { %v993_v50 = vpop.f32.mrf.mxu1  ;;  %448 = vst.msk [vmem:[%s911_s26 + $0x20] sm:$0xff] %vm443_vm2, %v359_v49 }
  0xb0   : > { %456 = vst.msk [vmem:[%s911_s26 + $0x60] sm:$0xff] %vm443_vm2, %v993_v50 }
  0xb2   : > { %v1000_v51 = vpop.f32.mrf.mxu2 }
  0xb3   : > { %v1002_v52 = vpop.f32.mrf.mxu3  ;;  %464 = vst.msk [vmem:[%s911_s26 + $0xa0] sm:$0xff] %vm443_vm2, %v1000_v51 }
  0xb4   : > { %472 = vst.msk [vmem:[%s911_s26 + $0xe0] sm:$0xff] %vm443_vm2, %v1002_v52 }
  0xb6   : > { %v362_v53 = vpop.f32.mrf.mxu0 }
  0xb7   : > { %v1010_v54 = vpop.f32.mrf.mxu1  ;;  %449 = vst.msk [vmem:[%s911_s26 + $0x28] sm:$0xff] %vm443_vm2, %v362_v53 }
  0xb8   : > { %457 = vst.msk [vmem:[%s911_s26 + $0x68] sm:$0xff] %vm443_vm2, %v1010_v54 }
  0xba   : > { %v1017_v55 = vpop.f32.mrf.mxu2 }
  0xbb   : > { %v1019_v56 = vpop.f32.mrf.mxu3  ;;  %465 = vst.msk [vmem:[%s911_s26 + $0xa8] sm:$0xff] %vm443_vm2, %v1017_v55 }
  0xbc   : > { %473 = vst.msk [vmem:[%s911_s26 + $0xe8] sm:$0xff] %vm443_vm2, %v1019_v56 }
  0xbe   : > { %v365_v57 = vpop.f32.mrf.mxu0 }
  0xbf   : > { %v1027_v58 = vpop.f32.mrf.mxu1  ;;  %450 = vst.msk [vmem:[%s911_s26 + $0x30] sm:$0xff] %vm443_vm2, %v365_v57 }
  0xc0   : > { %458 = vst.msk [vmem:[%s911_s26 + $0x70] sm:$0xff] %vm443_vm2, %v1027_v58 }
  0xc2   : > { %v1034_v59 = vpop.f32.mrf.mxu2 }
  0xc3   : > { %v1036_v60 = vpop.f32.mrf.mxu3  ;;  %466 = vst.msk [vmem:[%s911_s26 + $0xb0] sm:$0xff] %vm443_vm2, %v1034_v59 }
  0xc4   : > { %474 = vst.msk [vmem:[%s911_s26 + $0xf0] sm:$0xff] %vm443_vm2, %v1036_v60 }
  0xc6   : > { %v368_v61 = vpop.f32.mrf.mxu0 }
  0xc7   : > { %v1044_v62 = vpop.f32.mrf.mxu1  ;;  %451 = vst.msk [vmem:[%s911_s26 + $0x38] sm:$0xff] %vm443_vm2, %v368_v61 }
  0xc8   : > { %459 = vst.msk [vmem:[%s911_s26 + $0x78] sm:$0xff] %vm443_vm2, %v1044_v62  ;;  %479 = sbr.rel (%p770_p4) target bundleno = 208 (0xd0), region = 32 }
  0xca   : > { %v1051_v63 = vpop.f32.mrf.mxu2 }
  0xcb   : > { %v1053_v0 = vpop.f32.mrf.mxu3  ;;  %467 = vst.msk [vmem:[%s911_s26 + $0xb8] sm:$0xff] %vm443_vm2, %v1051_v63 }
  0xcc   : > { %475 = vst.msk [vmem:[%s911_s26 + $0xf8] sm:$0xff] %vm443_vm2, %v1053_v0 }
  0xcd   : > { %vm480_vm3 = vcmask 155648   ;;  %v793_v1 = vmov 0.0  }
  0xce   : > { %481 = vst.msk [vmem:[%s1235_s3] sm:$0x1] %vm480_vm3, %v793_v1 }
  0xcf   : > { %482 = vst.msk [vmem:[%s1236_s4] sm:$0x1] %vm480_vm3, %v793_v1 }
  0xd0 PF: > { %v484_v2 = vsel %vm443_vm2, %v913_v33, 0.0  ;;  %v485_v3 = vsel %vm443_vm2, %v933_v37, 0.0  ;;  %v487_v4 = vsel %vm443_vm2, %v953_v41, 0.0  ;;  %v489_v6 = vsel %vm443_vm2, %v973_v45, 0.0 }
  0xd1   : > { %v486_v5 = vadd.f32 %v485_v3, %v484_v2  ;;  %v491_v8 = vsel %vm443_vm2, %v359_v49, 0.0  ;;  %v493_v10 = vsel %vm443_vm2, %v362_v53, 0.0  ;;  %v495_v12 = vsel %vm443_vm2, %v365_v57, 0.0 }
  0xd2   : > { %v557_v13 = vmul.f32 %v913_v33, %v913_v33  ;;  %v558_v15 = vmul.f32 %v933_v37, %v933_v37  ;;  %v559_v16 = vmul.f32 %v953_v41, %v953_v41  ;;  %v497_v17 = vsel %vm443_vm2, %v368_v61, 0.0 }
  0xd3   : > { %v488_v7 = vadd.f32 %v487_v4, %v486_v5  ;;  %v560_v19 = vmul.f32 %v973_v45, %v973_v45  ;;  %v499_v20 = vsel %vm443_vm2, %v915_v34, 0.0  ;;  %v561_v23 = vmul.f32 %v359_v49, %v359_v49 }
  0xd4   : > { %v589_v21 = vsel %vm443_vm2, %v557_v13, 0.0  ;;  %v590_v24 = vsel %vm443_vm2, %v558_v15, 0.0  ;;  %v592_v25 = vsel %vm443_vm2, %v559_v16, 0.0  ;;  %v501_v26 = vsel %vm443_vm2, %v935_v38, 0.0 }
  0xd5   : > { %v490_v9 = vadd.f32 %v489_v6, %v488_v7  ;;  %v591_v27 = vadd.f32 %v590_v24, %v589_v21  ;;  %v562_v29 = vmul.f32 %v362_v53, %v362_v53  ;;  %v594_v30 = vsel %vm443_vm2, %v560_v19, 0.0 }
  0xd6   : > { %v503_v31 = vsel %vm443_vm2, %v955_v42, 0.0  ;;  %v563_v37 = vmul.f32 %v365_v57, %v365_v57  ;;  %v596_v41 = vsel %vm443_vm2, %v561_v23, 0.0  ;;  %v505_v45 = vsel %vm443_vm2, %v975_v46, 0.0 }
  0xd7   : > { %v492_v11 = vadd.f32 %v491_v8, %v490_v9  ;;  %v593_v32 = vadd.f32 %v592_v25, %v591_v27  ;;  %v564_v2 = vmul.f32 %v368_v61, %v368_v61  ;;  %v598_v3 = vsel %vm443_vm2, %v562_v29, 0.0 }
  0xd8   : > { %v507_v53 = vsel %vm443_vm2, %v993_v50, 0.0  ;;  %v565_v6 = vmul.f32 %v915_v34, %v915_v34  ;;  %v600_v57 = vsel %vm443_vm2, %v563_v37, 0.0  ;;  %v509_v7 = vsel %vm443_vm2, %v1010_v54, 0.0 }
  0xd9   : > { %v494_v14 = vadd.f32 %v493_v10, %v492_v11  ;;  %v595_v49 = vadd.f32 %v594_v30, %v593_v32  ;;  %v566_v61 = vmul.f32 %v935_v38, %v935_v38  ;;  %v602_v10 = vsel %vm443_vm2, %v564_v2, 0.0 }
  0xda   : > { %v511_v11 = vsel %vm443_vm2, %v1027_v58, 0.0  ;;  %v567_v34 = vmul.f32 %v955_v42, %v955_v42  ;;  %v513_v15 = vsel %vm443_vm2, %v1044_v62, 0.0  ;;  %v568_v38 = vmul.f32 %v975_v46, %v975_v46 }
  0xdb   : > { %v496_v18 = vadd.f32 %v495_v12, %v494_v14  ;;  %v597_v4 = vadd.f32 %v596_v41, %v595_v49  ;;  %v604_v14 = vsel %vm443_vm2, %v565_v6, 0.0  ;;  %v515_v19 = vsel %vm443_vm2, %v923_v35, 0.0 }
  0xdc   : > { %v569_v42 = vmul.f32 %v993_v50, %v993_v50  ;;  %v517_v23 = vsel %vm443_vm2, %v943_v39, 0.0  ;;  %v570_v46 = vmul.f32 %v1010_v54, %v1010_v54  ;;  %v519_v27 = vsel %vm443_vm2, %v963_v43, 0.0 }
  0xdd   : > { %v498_v22 = vadd.f32 %v497_v17, %v496_v18  ;;  %v599_v8 = vadd.f32 %v598_v3, %v597_v4  ;;  %v606_v18 = vsel %vm443_vm2, %v566_v61, 0.0  ;;  %v571_v50 = vmul.f32 %v1027_v58, %v1027_v58 }
  0xde   : > { %v612_v30 = vsel %vm443_vm2, %v569_v42, 0.0  ;;  %v572_v54 = vmul.f32 %v1044_v62, %v1044_v62  ;;  %v614_v37 = vsel %vm443_vm2, %v570_v46, 0.0  ;;  %v523_v41 = vsel %vm443_vm2, %v1000_v51, 0.0 }
  0xdf   : > { %v500_v28 = vadd.f32 %v499_v20, %v498_v22  ;;  %v601_v12 = vadd.f32 %v600_v57, %v599_v8  ;;  %v608_v22 = vsel %vm443_vm2, %v567_v34, 0.0  ;;  %v573_v58 = vmul.f32 %v923_v35, %v923_v35 }
  0xe0   : > { %v525_v2 = vsel %vm443_vm2, %v1017_v55, 0.0  ;;  %v574_v62 = vmul.f32 %v943_v39, %v943_v39  ;;  %v618_v4 = vsel %vm443_vm2, %v572_v54, 0.0  ;;  %v575_v35 = vmul.f32 %v963_v43, %v963_v43 }
  0xe1   : > { %v502_v33 = vadd.f32 %v501_v26, %v500_v28  ;;  %v603_v16 = vadd.f32 %v602_v10, %v601_v12  ;;  %v610_v26 = vsel %vm443_vm2, %v568_v38, 0.0  ;;  %v529_v8 = vsel %vm443_vm2, %v1051_v63, 0.0 }
  0xe2   : > { %v576_v39 = vmul.f32 %v983_v47, %v983_v47  ;;  %v622_v10 = vsel %vm443_vm2, %v574_v62, 0.0  ;;  %v577_v43 = vmul.f32 %v1000_v51, %v1000_v51  ;;  %v624_v34 = vsel %vm443_vm2, %v575_v35, 0.0 }
  0xe3   : > { %v504_v1 = vadd.f32 %v503_v31, %v502_v33  ;;  %v605_v20 = vadd.f32 %v604_v14, %v603_v16  ;;  %v521_v31 = vsel %vm443_vm2, %v983_v47, 0.0  ;;  %v533_v14 = vsel %vm443_vm2, %v945_v40, 0.0 }
  0xe4   : > { %v578_v47 = vmul.f32 %v1017_v55, %v1017_v55  ;;  %v535_v38 = vsel %vm443_vm2, %v965_v44, 0.0  ;;  %v579_v51 = vmul.f32 %v1034_v59, %v1034_v59  ;;  %v580_v55 = vmul.f32 %v1051_v63, %v1051_v63 }
  0xe5   : > { %v506_v5 = vadd.f32 %v505_v45, %v504_v1  ;;  %v607_v24 = vadd.f32 %v606_v18, %v605_v20  ;;  %v616_v1 = vsel %vm443_vm2, %v571_v50, 0.0  ;;  %v628_v20 = vsel %vm443_vm2, %v577_v43, 0.0 }
  0xe6   : > { %v582_v63 = vmul.f32 %v945_v40, %v945_v40  ;;  %v634_v50 = vsel %vm443_vm2, %v580_v55, 0.0  ;;  %v545_v54 = vsel %vm443_vm2, %v1053_v0, 0.0  ;;  %v584_v40 = vmul.f32 %v985_v48, %v985_v48 }
  0xe7   : > { %v508_v9 = vadd.f32 %v507_v53, %v506_v5  ;;  %v609_v28 = vadd.f32 %v608_v22, %v607_v24  ;;  %v527_v5 = vsel %vm443_vm2, %v1034_v59, 0.0  ;;  %v539_v24 = vsel %vm443_vm2, %v1002_v52, 0.0 }
  0xe8   : > { %v581_v59 = vmul.f32 %v925_v36, %v925_v36  ;;  %v642_v62 = vsel %vm443_vm2, %v584_v40, 0.0  ;;  %vm554_vm4 = vcmask 155648  }
  0xe9   : > { %v510_v13 = vadd.f32 %v509_v7, %v508_v9  ;;  %v611_v32 = vadd.f32 %v610_v26, %v609_v28  ;;  %v620_v7 = vsel %vm443_vm2, %v573_v58, 0.0  ;;  %v632_v26 = vsel %vm443_vm2, %v579_v51, 0.0 }
  0xeb   : > { %v512_v17 = vadd.f32 %v511_v11, %v510_v13  ;;  %v613_v45 = vadd.f32 %v612_v30, %v611_v32  ;;  %v531_v11 = vsel %vm443_vm2, %v925_v36, 0.0  ;;  %v543_v30 = vsel %vm443_vm2, %v1036_v60, 0.0 }
  0xec   : > { %v583_v36 = vmul.f32 %v965_v44, %v965_v44 }
  0xed   : > { %v514_v21 = vadd.f32 %v513_v15, %v512_v17  ;;  %v615_v3 = vadd.f32 %v614_v37, %v613_v45  ;;  %v626_v17 = vsel %vm443_vm2, %v576_v39, 0.0  ;;  %v638_v45 = vsel %vm443_vm2, %v582_v63, 0.0 }
  0xef   : > { %v516_v25 = vadd.f32 %v515_v19, %v514_v21  ;;  %v617_v6 = vadd.f32 %v616_v1, %v615_v3  ;;  %v537_v21 = vsel %vm443_vm2, %v985_v48, 0.0  ;;  %v585_v1 = vmul.f32 %v1002_v52, %v1002_v52 }
  0xf0   : > { %v587_v48 = vmul.f32 %v1036_v60, %v1036_v60  ;;  %v588_v52 = vmul.f32 %v1053_v0, %v1053_v0  ;;  %v483_v60 = vld [vmem:[%s1235_s3] sm:$0x1] }
  0xf1   : > { %v518_v29 = vadd.f32 %v517_v23, %v516_v25  ;;  %v619_v9 = vadd.f32 %v618_v4, %v617_v6  ;;  %v630_v23 = vsel %vm443_vm2, %v578_v47, 0.0  ;;  %v644_v6 = vsel %vm443_vm2, %v585_v1, 0.0  ;;  %v556_v47 = vld [vmem:[%s1236_s4] sm:$0x1] }
  0xf3   : > { %v520_v33 = vadd.f32 %v519_v27, %v518_v29  ;;  %v621_v12 = vadd.f32 %v620_v7, %v619_v9  ;;  %v541_v27 = vsel %vm443_vm2, %v1019_v56, 0.0 }
  0xf5   : > { %v522_v49 = vadd.f32 %v521_v31, %v520_v33  ;;  %v623_v15 = vadd.f32 %v622_v10, %v621_v12  ;;  %v636_v33 = vsel %vm443_vm2, %v581_v59, 0.0  ;;  %v650_v10 = vsel %vm443_vm2, %v588_v52, 0.0 }
  0xf7   : > { %v524_v53 = vadd.f32 %v523_v41, %v522_v49  ;;  %v625_v18 = vadd.f32 %v624_v34, %v623_v15 }
  0xf9   : > { %v526_v57 = vadd.f32 %v525_v2, %v524_v53  ;;  %v627_v42 = vadd.f32 %v626_v17, %v625_v18  ;;  %v640_v2 = vsel %vm443_vm2, %v583_v36, 0.0  ;;  %v586_v53 = vmul.f32 %v1019_v56, %v1019_v56 }
  0xfa   : > { %v648_v56 = vsel %vm443_vm2, %v587_v48, 0.0 }
  0xfb   : > { %v528_v61 = vadd.f32 %v527_v5, %v526_v57  ;;  %v629_v25 = vadd.f32 %v628_v20, %v627_v42  ;;  %v646_v7 = vsel %vm443_vm2, %v586_v53, 0.0 }
  0xfd   : > { %v530_v13 = vadd.f32 %v529_v8, %v528_v61  ;;  %v631_v28 = vadd.f32 %v630_v23, %v629_v25 }
  0xff   : > { %v532_v16 = vadd.f32 %v531_v11, %v530_v13  ;;  %v633_v31 = vadd.f32 %v632_v26, %v631_v28 }
 0x101   : > { %v534_v19 = vadd.f32 %v533_v14, %v532_v16  ;;  %v635_v37 = vadd.f32 %v634_v50, %v633_v31 }
 0x103   : > { %v536_v22 = vadd.f32 %v535_v38, %v534_v19  ;;  %v637_v49 = vadd.f32 %v636_v33, %v635_v37 }
 0x105   : > { %v538_v46 = vadd.f32 %v537_v21, %v536_v22  ;;  %v639_v44 = vadd.f32 %v638_v45, %v637_v49 }
 0x107   : > { %v540_v29 = vadd.f32 %v539_v24, %v538_v46  ;;  %v641_v4 = vadd.f32 %v640_v2, %v639_v44 }
 0x109   : > { %v542_v32 = vadd.f32 %v541_v27, %v540_v29  ;;  %v643_v57 = vadd.f32 %v642_v62, %v641_v4 }
 0x10b   : > { %v544_v41 = vadd.f32 %v543_v30, %v542_v32  ;;  %v645_v8 = vadd.f32 %v644_v6, %v643_v57 }
 0x10d   : > { %v546_v58 = vadd.f32 %v545_v54, %v544_v41  ;;  %v647_v61 = vadd.f32 %v646_v7, %v645_v8 }
 0x10f   : > { %v547_v3 = vrot.slane %v546_v58, 4  ;;  %v649_v11 = vadd.f32 %v648_v56, %v647_v61 }
 0x111   : > { %v548_v5 = vadd.f32 %v547_v3, %v546_v58  ;;  %v651_v13 = vadd.f32 %v650_v10, %v649_v11 }
 0x113   : > { %v549_v35 = vrot.slane %v548_v5, 2  ;;  %v652_v0 = vrot.slane %v651_v13, 4 }
 0x115   : > { %v550_v9 = vadd.f32 %v549_v35, %v548_v5  ;;  %v653_v34 = vadd.f32 %v652_v0, %v651_v13 }
 0x117   : > { %v551_v39 = vrot.slane %v550_v9, 1  ;;  %v654_v14 = vrot.slane %v653_v34, 2 }
 0x119   : > { %v552_v12 = vadd.f32 %v551_v39, %v550_v9  ;;  %v655_v15 = vadd.f32 %v654_v14, %v653_v34 }
 0x11b   : > { %v553_v43 = vadd.f32 %v552_v12, %v483_v60  ;;  %v656_v16 = vrot.slane %v655_v15, 1 }
 0x11d   : > { %555 = vst.msk [vmem:[%s1235_s3] sm:$0x1] %vm554_vm4, %v553_v43  ;;  %v657_v17 = vadd.f32 %v656_v16, %v655_v15 }
 0x11f   : > { %v658_v38 = vadd.f32 %v657_v17, %v556_v47 }
 0x121   : > { %659 = vst.msk [vmem:[%s1236_s4] sm:$0x1] %vm554_vm4, %v658_v38 }
 0x122 PF: > { %s15_s15 = sadd.s32 1, %s791_s15  }
 0x123   : > { %p12_p5 = scmp.ge.s32.totalorder %s15_s15, 4  }
 0x125   :  { %14 = sbr.rel (!%p12_p5) target bundleno = 1 (0x1), region = 78 }

// kernel: bottleneck_forward.5
= control target key start
LH: loop header
LB: loop body
LE: loop exit
PB: predicated region body
PF: predicated region fallthrough
CT: control target
= control target key end

     0   :  { %s217_s0 = inlined_call_operand.vmem [shape: f32[32,256], index: 0, kind: input, shape index: {}]   ;;  %s218_s1 = inlined_call_operand.vmem [shape: f32[32,256], index: 1, kind: input, shape index: {}]   ;;  %s219_s2 = inlined_call_operand.vmem [shape: f32[1,256], index: 2, kind: input, shape index: {}]   ;;  %s220_s3 = inlined_call_operand.vmem [shape: f32[1,256], index: 3, kind: input, shape index: {}]   ;;  %s221_s4 = inlined_call_operand.vmem [shape: f32[1,256], index: 4, kind: input, shape index: {}]   ;;  %s222_s5 = inlined_call_operand.vmem [shape: f32[32,256], index: 5, kind: output, shape index: {}]  }
   0x1   :  { %v20_v0 = vld [vmem:[%s217_s0] sm:$0xff]  ;;  %v21_v6 = vld [vmem:[%s217_s0 + $0x8] sm:$0xff]  ;;  %v22_v11 = vld [vmem:[%s217_s0 + $0x10] sm:$0xff] }
   0x2   :  { %v28_v1 = vld [vmem:[%s219_s2] sm:$0x3]  ;;  %v43_v9 = vld [vmem:[%s218_s1 + $0x8] sm:$0xff]  ;;  %v44_v16 = vld [vmem:[%s218_s1 + $0x10] sm:$0xff] }
   0x3   :  { %v42_v2 = vld [vmem:[%s218_s1] sm:$0xff]  ;;  %v30_v3 = vperm.slane %v28_v1, 0  ;;  %v31_v8 = vperm.slane %v28_v1, 1  ;;  %v23_v17 = vld [vmem:[%s217_s0 + $0x18] sm:$0xff]  ;;  %v25_v25 = vld [vmem:[%s217_s0 + $0x28] sm:$0xff] }
   0x4   :  { %v50_v4 = vld [vmem:[%s220_s3] sm:$0x3]  ;;  %v45_v18 = vld [vmem:[%s218_s1 + $0x18] sm:$0xff]  ;;  %v47_v30 = vld [vmem:[%s218_s1 + $0x28] sm:$0xff] }
   0x5   :  { %v72_v5 = vld [vmem:[%s221_s4] sm:$0x3]  ;;  %v52_v7 = vperm.slane %v50_v4, 0  ;;  %v53_v10 = vperm.slane %v50_v4, 1  ;;  %v34_v12 = vmul.f32 %v30_v3, %v20_v0  ;;  %v36_v15 = vmul.f32 %v30_v3, %v22_v11  ;;  %v26_v31 = vld [vmem:[%s217_s0 + $0x30] sm:$0xff]  ;;  %v27_v37 = vld [vmem:[%s217_s0 + $0x38] sm:$0xff] }
   0x6   :  { %v74_v13 = vperm.slane %v72_v5, 0  ;;  %v75_v14 = vperm.slane %v72_v5, 1  ;;  %v35_v20 = vmul.f32 %v31_v8, %v21_v6  ;;  %v24_v23 = vld [vmem:[%s217_s0 + $0x20] sm:$0xff]  ;;  %v37_v26 = vmul.f32 %v31_v8, %v23_v17  ;;  %v48_v32 = vld [vmem:[%s218_s1 + $0x30] sm:$0xff]  ;;  %v49_v46 = vld [vmem:[%s218_s1 + $0x38] sm:$0xff] }
   0x7   :  { %v56_v19 = vmul.f32 %v52_v7, %v42_v2  ;;  %v57_v21 = vmul.f32 %v53_v10, %v43_v9  ;;  %v58_v22 = vmul.f32 %v52_v7, %v44_v16  ;;  %v46_v24 = vld [vmem:[%s218_s1 + $0x20] sm:$0xff]  ;;  %v59_v27 = vmul.f32 %v53_v10, %v45_v18 }
   0x8   :  { %v38_v28 = vmul.f32 %v30_v3, %v24_v23  ;;  %v60_v29 = vmul.f32 %v52_v7, %v46_v24  ;;  %v39_v36 = vmul.f32 %v31_v8, %v25_v25  ;;  %v61_v40 = vmul.f32 %v53_v10, %v47_v30 }
   0x9   :  { %v64_v33 = vadd.f32 %v56_v19, %v34_v12  ;;  %v65_v34 = vadd.f32 %v57_v21, %v35_v20  ;;  %v66_v35 = vadd.f32 %v58_v22, %v36_v15  ;;  %v67_v38 = vadd.f32 %v59_v27, %v37_v26 }
   0xa   :  { %v68_v39 = vadd.f32 %v60_v29, %v38_v28  ;;  %v40_v41 = vmul.f32 %v30_v3, %v26_v31  ;;  %v62_v45 = vmul.f32 %v52_v7, %v48_v32  ;;  %v69_v49 = vadd.f32 %v61_v40, %v39_v36 }
   0xb   :  { %v78_v42 = vadd.f32 %v74_v13, %v64_v33  ;;  %v79_v43 = vadd.f32 %v75_v14, %v65_v34  ;;  %v80_v44 = vadd.f32 %v74_v13, %v66_v35  ;;  %v81_v47 = vadd.f32 %v75_v14, %v67_v38 }
   0xc   :  { %v82_v48 = vadd.f32 %v74_v13, %v68_v39  ;;  %v41_v50 = vmul.f32 %v31_v8, %v27_v37  ;;  %v70_v54 = vadd.f32 %v62_v45, %v40_v41  ;;  %v83_v56 = vadd.f32 %v75_v14, %v69_v49 }
   0xd   :  { %v86_v51 = vmax.f32 %v78_v42, 0.0  ;;  %v87_v52 = vmax.f32 %v79_v43, 0.0  ;;  %v88_v53 = vmax.f32 %v80_v44, 0.0  ;;  %v89_v55 = vmax.f32 %v81_v47, 0.0 }
   0xe   :  { %v63_v57 = vmul.f32 %v53_v10, %v49_v46  ;;  %v90_v58 = vmax.f32 %v82_v48, 0.0  ;;  %v84_v59 = vadd.f32 %v74_v13, %v70_v54  ;;  %v91_v60 = vmax.f32 %v83_v56, 0.0 }
   0xf   :  { %94 = vst [vmem:[%s222_s5] sm:$0xff] %v86_v51 }
  0x10   :  { %95 = vst [vmem:[%s222_s5 + $0x8] sm:$0xff] %v87_v52  ;;  %v71_v61 = vadd.f32 %v63_v57, %v41_v50  ;;  %v92_v62 = vmax.f32 %v84_v59, 0.0 }
  0x11   :  { %96 = vst [vmem:[%s222_s5 + $0x10] sm:$0xff] %v88_v53 }
  0x12   :  { %97 = vst [vmem:[%s222_s5 + $0x18] sm:$0xff] %v89_v55  ;;  %v85_v63 = vadd.f32 %v75_v14, %v71_v61 }
  0x13   :  { %98 = vst [vmem:[%s222_s5 + $0x20] sm:$0xff] %v90_v58 }
  0x14   :  { %99 = vst [vmem:[%s222_s5 + $0x28] sm:$0xff] %v91_v60  ;;  %v93_v0 = vmax.f32 %v85_v63, 0.0 }
  0x15   :  { %100 = vst [vmem:[%s222_s5 + $0x30] sm:$0xff] %v92_v62 }
  0x16   :  { %101 = vst [vmem:[%s222_s5 + $0x38] sm:$0xff] %v93_v0 }

// kernel: bottleneck_forward.4
= control target key start
LH: loop header
LB: loop body
LE: loop exit
PB: predicated region body
PF: predicated region fallthrough
CT: control target
= control target key end

     0   :  { %s3205_s24 = smov 0   ;;  %s5094_s0 = inlined_call_operand.vmem [shape: f32[2,16,16,4], index: 0, kind: input, shape index: {}]   ;;  %s5095_s1 = inlined_call_operand.vmem [shape: f32[1,4], index: 1, kind: input, shape index: {}]   ;;  %s5096_s2 = inlined_call_operand.vmem [shape: f32[1,4], index: 2, kind: input, shape index: {}]   ;;  %s5097_s3 = inlined_call_operand.vmem [shape: f32[3,3,4,4], index: 3, kind: input, shape index: {}]   ;;  %s5098_s4 = inlined_call_operand.vmem [shape: f32[4,16], index: 4, kind: input, shape index: {}]   ;;  %s5099_s5 = inlined_call_operand.vmem [shape: f32[2,256,16], index: 5, kind: output, shape index: {0}]   ;;  %s5100_s6 = inlined_call_operand.vmem [shape: f32[1,16], index: 6, kind: output, shape index: {1}]   ;;  %s5101_s7 = inlined_call_operand.vmem [shape: f32[1,16], index: 7, kind: output, shape index: {2}]  }
   0x1 LB: > { %s3211_s25 = sadd.s32 4294967295, %s3161_s24   ;;  %p2791_p0 = scmp.ge.s32.totalorder %s3161_s24, 1  ;;  %s3161_s24 = sphi %s3205_s24, %s18_s24  }
   0x2   : > { %p232_p1 = scmp.lt.s32.totalorder %s3161_s24, 3 }
   0x4   : > { %p233_p2 = pnand %p2791_p0, %p232_p1 }
   0x6   : > { %236 = sbr.rel (%p233_p2) target bundleno = 1014 (0x3f6), region = 40 }
   0xb   : > { %v2796_v0 = vld [vmem:[%s5097_s3 + $0x4] sm:$0xf]  ;;  %vm742_vm0 = vcmask 1043456   ;;  %v561_v1 = vld [vmem:[%s5097_s3] sm:$0xf]  ;;  %p264_p3 = scmp.lt.s32.totalorder %s3211_s25, 1 }
   0xc   : > { %3139 = vmatpush.msk.msra.mxu2 %vm742_vm0, %v2796_v0  ;;  %3140 = vmatpush.msk.msra.mxu3 %vm742_vm0, %v561_v1  ;;  %v3230_v2 = vld [vmem:[%s5095_s1] ss:$0 sm:$0xff]  ;;  %v2863_v3 = vld [vmem:[%s5097_s3 + $0x8] sm:$0xf]  ;;  %v2897_v4 = vld [vmem:[%s5097_s3 + $0xc] sm:$0xf] }
   0xd   : > { %s3225_s30 = scalar_select %p264_p3, %s3211_s25, 1  ;;  %2797 = vmatpush.msk.msra.mxu0 %vm742_vm0, %v2796_v0  ;;  %2830 = vmatpush.msk.msra.mxu1 %vm742_vm0, %v561_v1  ;;  %v3163_v5 = vmov 0.0   ;;  %v2931_v7 = vld [vmem:[%s5097_s3 + $0x10] sm:$0xf]  ;;  %v3258_v8 = vld [vmem:[%s5096_s2] ss:$0 sm:$0xff] }
   0xe   : > { %2864 = vmatpush.msk.msrb.mxu2 %vm742_vm0, %v2863_v3  ;;  %2898 = vmatpush.msk.msrb.mxu3 %vm742_vm0, %v2897_v4  ;;  %v3243_v6 = vrot.slane %v3163_v5, 7  ;;  %vm443_vm1 = vcmask 1040384   ;;  %vm677_vm2 = vcmask 31744   ;;  %vm594_vm3 = vcmask 1046528   ;;  %p3134_p4 = scmp.ne.s32.totalorder %s3211_s25, 0 }
   0xf   : > { %s3137_s14 = sshll.u32 %s3225_s30, 8  ;;  %2932 = vmatpush.msk.msrb.mxu0 %vm742_vm0, %v2931_v7  ;;  %vm1039_vm4 = vcmask 1045504   ;;  %vm2503_vm5 = vcmask 130048  }
  0x10   : > { %5199 = vst [vmem:[#allocation2_spill] sm:$0xff] %v3243_v6  ;;  %s3253_s19 = scalar_lea.vmem %s5094_s0, %s3137_s14  ;;  %v3265_v11 = vsel %vm443_vm1, 0.0, %v3243_v6  ;;  %v596_v12 = vrot.slane %v3243_v6, 1  ;;  %v3280_v21 = vsel %vm443_vm1, %v3243_v6, 0.0 }
  0x11   : > { %v288_v9 = vld [vmem:[%s3253_s19 + $0x70] sm:$0xff]  ;;  %v289_v10 = vld [vmem:[%s3253_s19 + $0x78] sm:$0xff]  ;;  %5200 = vst [vmem:[#allocation3_spill] sm:$0xff] %v3265_v11  ;;  %v290_v13 = vld [vmem:[%s3253_s19 + $0x80] sm:$0xff]  ;;  %v595_v16 = vrot.slane %v3265_v11, 1  ;;  %2831 = vmatmul.msk.f32.vlgmr.msra.gmra.mxu1 %vm677_vm2, %v3265_v11  ;;  %v598_v32 = vrot.slane %v3280_v21, 1 }
  0x12   : > { %v324_v14 = vmul.f32 %v3230_v2, %v288_v9  ;;  %v325_v15 = vmul.f32 %v3230_v2, %v289_v10  ;;  %v291_v17 = vld [vmem:[%s3253_s19 + $0x88] sm:$0xff]  ;;  %v274_v18 = vld [vmem:[%s3253_s19] sm:$0xff]  ;;  %v326_v20 = vmul.f32 %v3230_v2, %v290_v13  ;;  %v276_v50 = vld [vmem:[%s3253_s19 + $0x10] sm:$0xff] }
  0x13   : > { %v275_v19 = vld [vmem:[%s3253_s19 + $0x8] sm:$0xff]  ;;  %v310_v22 = vmul.f32 %v3230_v2, %v274_v18  ;;  %v3287_v26 = vsel %vm594_vm3, %v595_v16, %v596_v12  ;;  %v327_v27 = vmul.f32 %v3230_v2, %v291_v17  ;;  %v3304_v43 = vsel %vm594_vm3, %v596_v12, %v598_v32  ;;  %v277_v53 = vld [vmem:[%s3253_s19 + $0x18] sm:$0xff]  ;;  %v292_v60 = vld [vmem:[%s3253_s19 + $0x90] sm:$0xff] }
  0x14   : > { %v311_v23 = vmul.f32 %v3230_v2, %v275_v19  ;;  %v360_v24 = vadd.f32 %v3258_v8, %v324_v14  ;;  %v361_v25 = vadd.f32 %v3258_v8, %v325_v15  ;;  %5201 = vst [vmem:[#allocation4_spill] sm:$0xff] %v3287_v26  ;;  %2798 = vmatmul.msk.f32.vlgmr.msra.gmra.mxu0 %vm677_vm2, %v3287_v26  ;;  %v293_v62 = vld [vmem:[%s3253_s19 + $0x98] sm:$0xff] }
  0x15   : > { %v346_v28 = vadd.f32 %v3258_v8, %v310_v22  ;;  %v362_v37 = vadd.f32 %v3258_v8, %v326_v20  ;;  %v363_v38 = vadd.f32 %v3258_v8, %v327_v27  ;;  %5204 = vst [vmem:[#allocation7_spill] sm:$0xff] %v3304_v43  ;;  %v312_v57 = vmul.f32 %v3230_v2, %v276_v50  ;;  %v278_v27 = vld [vmem:[%s3253_s19 + $0x20] sm:$0xff] }
  0x16   : > { %v347_v29 = vadd.f32 %v3258_v8, %v311_v23  ;;  %v392_v30 = vmax.f32 %v360_v24, 0.0  ;;  %v393_v31 = vmax.f32 %v361_v25, 0.0  ;;  %v313_v61 = vmul.f32 %v3230_v2, %v277_v53 }
  0x17   : > { %v378_v33 = vmax.f32 %v346_v28, 0.0  ;;  %v394_v47 = vmax.f32 %v362_v37, 0.0  ;;  %v395_v48 = vmax.f32 %v363_v38, 0.0  ;;  %v348_v63 = vadd.f32 %v3258_v8, %v312_v57  ;;  %v279_v28 = vld [vmem:[%s3253_s19 + $0x28] sm:$0xff] }
  0x18   : > { %v379_v34 = vmax.f32 %v347_v29, 0.0  ;;  %v467_v35 = vrot.slane %v392_v30, 7  ;;  %v468_v36 = vrot.slane %v393_v31, 7  ;;  %v349_v1 = vadd.f32 %v3258_v8, %v313_v61 }
  0x19   : > { %v446_v39 = vrot.slane %v378_v33, 7  ;;  %2832 = vmatmul.msk.f32.gmra.mxu1 %vm677_vm2, %v3243_v6  ;;  %v470_v58 = vrot.slane %v394_v47, 7  ;;  %v471_v59 = vrot.slane %v395_v48, 7  ;;  %v328_v4 = vmul.f32 %v3230_v2, %v292_v60 }
  0x1a   : > { %v447_v40 = vrot.slane %v379_v34, 7  ;;  %v3298_v41 = vsel %vm443_vm1, %v467_v35, %v468_v36  ;;  %v3301_v42 = vsel %vm443_vm1, 0.0, %v467_v35  ;;  %v3313_v46 = vsel %vm443_vm1, %v468_v36, 0.0 }
  0x1b   : > { %5202 = vst [vmem:[#allocation5_spill] sm:$0xff] %v3298_v41  ;;  %v635_v44 = vrot.slane %v3301_v42, 1  ;;  %v636_v45 = vrot.slane %v3298_v41, 1  ;;  %2847 = vmatmul.msk.f32.vlgmr.msra.gmra.mxu3 %vm677_vm2, %v3301_v42  ;;  %v3325_v52 = vsel %vm443_vm1, 0.0, %v446_v39  ;;  %v638_v56 = vrot.slane %v3313_v46, 1 }
  0x1c   : > { %5203 = vst [vmem:[#allocation6_spill] sm:$0xff] %v3301_v42  ;;  %v3316_v49 = vsel %vm443_vm1, %v446_v39, %v447_v40  ;;  %2799 = vmatmul.msk.f32.gmra.mxu0 %vm677_vm2, %v3304_v43  ;;  %v600_v54 = vrot.slane %v3325_v52, 1  ;;  %v3351_v5 = vsel %vm443_vm1, %v447_v40, 0.0  ;;  %v380_v7 = vmax.f32 %v348_v63, 0.0 }
  0x1d   : > { %v3320_v51 = vsel %vm594_vm3, %v635_v44, %v636_v45  ;;  %v601_v55 = vrot.slane %v3316_v49, 1  ;;  %v3345_v3 = vsel %vm594_vm3, %v636_v45, %v638_v56  ;;  %v3354_v9 = vsel %vm443_vm1, %v470_v58, %v471_v59  ;;  %v294_v44 = vld [vmem:[%s3253_s19 + $0xa0] sm:$0xff]  ;;  %v295_v45 = vld [vmem:[%s3253_s19 + $0xa8] sm:$0xff] }
  0x1e   : > { %5205 = vst [vmem:[#allocation8_spill] sm:$0xff] %v3320_v51  ;;  %2814 = vmatmul.msk.f32.vlgmr.msra.gmra.mxu2 %vm677_vm2, %v3320_v51  ;;  %v3357_v10 = vsel %vm443_vm1, 0.0, %v470_v58  ;;  %v329_v12 = vmul.f32 %v3230_v2, %v293_v62  ;;  %v381_v13 = vmax.f32 %v349_v1, 0.0  ;;  %v603_v14 = vrot.slane %v3351_v5, 1 }
  0x1f   : > { %v3339_v0 = vsel %vm594_vm3, %v600_v54, %v601_v55  ;;  %5206 = vst [vmem:[#allocation9_spill] sm:$0xff] %v3345_v3  ;;  %v640_v15 = vrot.slane %v3357_v10, 1  ;;  %v641_v16 = vrot.slane %v3354_v9, 1  ;;  %v449_v17 = vrot.slane %v380_v7, 7 }
  0x20   : > { %5207 = vst [vmem:[#allocation10_spill] sm:$0xff] %v3354_v9  ;;  %v450_v18 = vrot.slane %v381_v13, 7  ;;  %v364_v19 = vadd.f32 %v3258_v8, %v328_v4  ;;  %v365_v20 = vadd.f32 %v3258_v8, %v329_v12  ;;  %v3370_v22 = vsel %vm594_vm3, %v601_v55, %v603_v14 }
  0x21   : > { %2833 = vmatmul.msk.f32.gmra.mxu1 %vm677_vm2, %v3325_v52  ;;  %5208 = vst [vmem:[#allocation11_spill] sm:$0xff] %v3357_v10  ;;  %v3375_v23 = vsel %vm594_vm3, %v640_v15, %v641_v16  ;;  %v3383_v25 = vsel %vm443_vm1, 0.0, %v449_v17  ;;  %v3388_v29 = vsel %vm443_vm1, %v471_v59, 0.0  ;;  %v314_v32 = vmul.f32 %v3230_v2, %v278_v27 }
  0x22   : > { %5209 = vst [vmem:[#allocation12_spill] sm:$0xff] %v3375_v23  ;;  %v3380_v24 = vsel %vm443_vm1, %v449_v17, %v450_v18  ;;  %v396_v30 = vmax.f32 %v364_v19, 0.0  ;;  %v397_v31 = vmax.f32 %v365_v20, 0.0  ;;  %v315_v33 = vmul.f32 %v3230_v2, %v279_v28  ;;  %v281_v17 = vld [vmem:[%s3253_s19 + $0x38] sm:$0xff] }
  0x23   : > { %2848 = vmatmul.msk.f32.gmra.mxu3 %vm677_vm2, %v3298_v41  ;;  %5210 = vst [vmem:[#allocation13_spill] sm:$0xff] %v3380_v24  ;;  %v605_v34 = vrot.slane %v3383_v25, 1  ;;  %v606_v35 = vrot.slane %v3380_v24, 1  ;;  %v643_v36 = vrot.slane %v3388_v29, 1  ;;  %v350_v37 = vadd.f32 %v3258_v8, %v314_v32 }
  0x24   : > { %2800 = vmatmul.msk.f32.gmra.mxu0 %vm677_vm2, %v3339_v0  ;;  %v351_v38 = vadd.f32 %v3258_v8, %v315_v33  ;;  %v473_v39 = vrot.slane %v396_v30, 7  ;;  %v474_v40 = vrot.slane %v397_v31, 7  ;;  %v3414_v50 = vsel %vm443_vm1, %v450_v18, 0.0 }
  0x25   : > { %v3404_v47 = vsel %vm594_vm3, %v605_v34, %v606_v35  ;;  %v3409_v48 = vsel %vm594_vm3, %v641_v16, %v643_v36  ;;  %v382_v53 = vmax.f32 %v350_v37, 0.0  ;;  %v330_v57 = vmul.f32 %v3230_v2, %v294_v44  ;;  %v280_v16 = vld [vmem:[%s3253_s19 + $0x30] sm:$0xff]  ;;  %v297_v37 = vld [vmem:[%s3253_s19 + $0xb8] sm:$0xff] }
  0x26   : > { %2815 = vmatmul.msk.f32.gmra.mxu2 %vm677_vm2, %v3345_v3  ;;  %5211 = vst [vmem:[#allocation14_spill] sm:$0xff] %v3409_v48  ;;  %v383_v54 = vmax.f32 %v351_v38, 0.0  ;;  %v3417_v55 = vsel %vm443_vm1, %v473_v39, %v474_v40  ;;  %v3420_v56 = vsel %vm443_vm1, 0.0, %v473_v39  ;;  %v331_v58 = vmul.f32 %v3230_v2, %v295_v45  ;;  %v296_v36 = vld [vmem:[%s3253_s19 + $0xb0] sm:$0xff] }
  0x27   : > { %5212 = vst [vmem:[#allocation15_spill] sm:$0xff] %v3420_v56  ;;  %v608_v59 = vrot.slane %v3414_v50, 1  ;;  %v645_v60 = vrot.slane %v3420_v56, 1  ;;  %v646_v61 = vrot.slane %v3417_v55, 1  ;;  %v452_v62 = vrot.slane %v382_v53, 7 }
  0x28   : > { %v453_v63 = vrot.slane %v383_v54, 7  ;;  %v366_v1 = vadd.f32 %v3258_v8, %v330_v57  ;;  %v367_v4 = vadd.f32 %v3258_v8, %v331_v58  ;;  %v3444_v13 = vsel %vm443_vm1, %v474_v40, 0.0 }
  0x29   : > { %2834 = vmatmul.msk.f32.gmra.mxu1 %vm677_vm2, %v3316_v49  ;;  %v3434_v7 = vsel %vm594_vm3, %v606_v35, %v608_v59  ;;  %v3439_v12 = vsel %vm594_vm3, %v645_v60, %v646_v61  ;;  %5215 = vst [vmem:[#allocation18_spill] sm:$0xff] %v3444_v13  ;;  %v3450_v15 = vsel %vm443_vm1, 0.0, %v452_v62  ;;  %v316_v20 = vmul.f32 %v3230_v2, %v280_v16 }
  0x2a   : > { %5213 = vst [vmem:[#allocation16_spill] sm:$0xff] %v3434_v7  ;;  %v3447_v14 = vsel %vm443_vm1, %v452_v62, %v453_v63  ;;  %v398_v18 = vmax.f32 %v366_v1, 0.0  ;;  %v399_v19 = vmax.f32 %v367_v4, 0.0  ;;  %v317_v27 = vmul.f32 %v3230_v2, %v281_v17 }
  0x2b   : > { %2849 = vmatmul.msk.f32.gmra.mxu3 %vm677_vm2, %v3357_v10  ;;  %5214 = vst [vmem:[#allocation17_spill] sm:$0xff] %v3439_v12  ;;  %v610_v28 = vrot.slane %v3450_v15, 1  ;;  %v611_v30 = vrot.slane %v3447_v14, 1  ;;  %v648_v31 = vrot.slane %v3444_v13, 1  ;;  %v352_v32 = vadd.f32 %v3258_v8, %v316_v20 }
  0x2c   : > { %2801 = vmatmul.msk.f32.gmra.mxu0 %vm677_vm2, %v3370_v22  ;;  %5216 = vst [vmem:[#allocation19_spill] sm:$0xff] %v3447_v14  ;;  %v353_v33 = vadd.f32 %v3258_v8, %v317_v27  ;;  %v476_v34 = vrot.slane %v398_v18, 7  ;;  %v477_v35 = vrot.slane %v399_v19, 7  ;;  %v3478_v40 = vsel %vm443_vm1, %v453_v63, 0.0  ;;  %v282_v27 = vld [vmem:[%s3253_s19 + $0x40] sm:$0xff] }
  0x2d   : > { %5217 = vst [vmem:[#allocation20_spill] sm:$0xff] %v3450_v15  ;;  %v3468_v38 = vsel %vm594_vm3, %v610_v28, %v611_v30  ;;  %v3473_v39 = vsel %vm594_vm3, %v646_v61, %v648_v31  ;;  %v384_v44 = vmax.f32 %v352_v32, 0.0  ;;  %v332_v57 = vmul.f32 %v3230_v2, %v296_v36  ;;  %v283_v28 = vld [vmem:[%s3253_s19 + $0x48] sm:$0xff] }
  0x2e   : > { %2816 = vmatmul.msk.f32.gmra.mxu2 %vm677_vm2, %v3375_v23  ;;  %5218 = vst [vmem:[#allocation21_spill] sm:$0xff] %v3468_v38  ;;  %v385_v45 = vmax.f32 %v353_v33, 0.0  ;;  %v3481_v53 = vsel %vm443_vm1, %v476_v34, %v477_v35  ;;  %v3484_v54 = vsel %vm443_vm1, 0.0, %v476_v34  ;;  %v333_v58 = vmul.f32 %v3230_v2, %v297_v37 }
  0x2f   : > { %5219 = vst [vmem:[#allocation22_spill] sm:$0xff] %v3473_v39  ;;  %v613_v59 = vrot.slane %v3478_v40, 1  ;;  %v650_v60 = vrot.slane %v3484_v54, 1  ;;  %v651_v61 = vrot.slane %v3481_v53, 1  ;;  %v455_v62 = vrot.slane %v384_v44, 7 }
  0x30   : > { %5220 = vst [vmem:[#allocation23_spill] sm:$0xff] %v3481_v53  ;;  %v456_v63 = vrot.slane %v385_v45, 7  ;;  %v368_v1 = vadd.f32 %v3258_v8, %v332_v57  ;;  %v369_v4 = vadd.f32 %v3258_v8, %v333_v58  ;;  %v3508_v18 = vsel %vm443_vm1, %v477_v35, 0.0  ;;  %v298_v58 = vld [vmem:[%s3253_s19 + $0xc0] sm:$0xff] }
  0x31   : > { %2835 = vmatmul.msk.f32.gmra.mxu1 %vm677_vm2, %v3383_v25  ;;  %5221 = vst [vmem:[#allocation24_spill] sm:$0xff] %v3484_v54  ;;  %v3498_v16 = vsel %vm594_vm3, %v611_v30, %v613_v59  ;;  %v3503_v17 = vsel %vm594_vm3, %v650_v60, %v651_v61  ;;  %v3514_v20 = vsel %vm443_vm1, 0.0, %v455_v62  ;;  %v318_v32 = vmul.f32 %v3230_v2, %v282_v27  ;;  %v299_v59 = vld [vmem:[%s3253_s19 + $0xc8] sm:$0xff] }
  0x32   : > { %5222 = vst [vmem:[#allocation25_spill] sm:$0xff] %v3498_v16  ;;  %v3511_v19 = vsel %vm443_vm1, %v455_v62, %v456_v63  ;;  %v400_v30 = vmax.f32 %v368_v1, 0.0  ;;  %v401_v31 = vmax.f32 %v369_v4, 0.0  ;;  %v319_v33 = vmul.f32 %v3230_v2, %v283_v28 }
  0x33   : > { %2850 = vmatmul.msk.f32.gmra.mxu3 %vm677_vm2, %v3354_v9  ;;  %5223 = vst [vmem:[#allocation26_spill] sm:$0xff] %v3503_v17  ;;  %v615_v34 = vrot.slane %v3514_v20, 1  ;;  %v616_v35 = vrot.slane %v3511_v19, 1  ;;  %v653_v36 = vrot.slane %v3508_v18, 1  ;;  %v354_v37 = vadd.f32 %v3258_v8, %v318_v32 }
  0x34   : > { %2802 = vmatmul.msk.f32.gmra.mxu0 %vm677_vm2, %v3404_v47  ;;  %5224 = vst [vmem:[#allocation27_spill] sm:$0xff] %v3508_v18  ;;  %v355_v44 = vadd.f32 %v3258_v8, %v319_v33  ;;  %v479_v45 = vrot.slane %v400_v30, 7  ;;  %v480_v57 = vrot.slane %v401_v31, 7  ;;  %v3542_v1 = vsel %vm443_vm1, %v456_v63, 0.0 }
  0x35   : > { %5225 = vst [vmem:[#allocation28_spill] sm:$0xff] %v3511_v19  ;;  %v3532_v60 = vsel %vm594_vm3, %v615_v34, %v616_v35  ;;  %v3537_v62 = vsel %vm594_vm3, %v651_v61, %v653_v36  ;;  %v386_v4 = vmax.f32 %v354_v37, 0.0  ;;  %v334_v31 = vmul.f32 %v3230_v2, %v298_v58 }
  0x36   : > { %2817 = vmatmul.msk.f32.gmra.mxu2 %vm677_vm2, %v3409_v48  ;;  %5226 = vst [vmem:[#allocation29_spill] sm:$0xff] %v3514_v20  ;;  %v387_v27 = vmax.f32 %v355_v44, 0.0  ;;  %v3545_v28 = vsel %vm443_vm1, %v479_v45, %v480_v57  ;;  %v3548_v30 = vsel %vm443_vm1, 0.0, %v479_v45  ;;  %v335_v32 = vmul.f32 %v3230_v2, %v299_v59 }
  0x37   : > { %5227 = vst [vmem:[#allocation30_spill] sm:$0xff] %v3532_v60  ;;  %v618_v61 = vrot.slane %v3542_v1, 1  ;;  %v655_v63 = vrot.slane %v3548_v30, 1  ;;  %v656_v33 = vrot.slane %v3545_v28, 1  ;;  %v458_v34 = vrot.slane %v386_v4, 7 }
  0x38   : > { %5228 = vst [vmem:[#allocation31_spill] sm:$0xff] %v3537_v62  ;;  %v459_v36 = vrot.slane %v387_v27, 7  ;;  %v370_v37 = vadd.f32 %v3258_v8, %v334_v31  ;;  %v371_v44 = vadd.f32 %v3258_v8, %v335_v32  ;;  %v3572_v59 = vsel %vm443_vm1, %v480_v57, 0.0  ;;  %v285_v31 = vld [vmem:[%s3253_s19 + $0x58] sm:$0xff] }
  0x39   : > { %2836 = vmatmul.msk.f32.gmra.mxu1 %vm677_vm2, %v3380_v24  ;;  %5229 = vst [vmem:[#allocation32_spill] sm:$0xff] %v3545_v28  ;;  %v3562_v45 = vsel %vm594_vm3, %v616_v35, %v618_v61  ;;  %v3567_v58 = vsel %vm594_vm3, %v655_v63, %v656_v33  ;;  %v3578_v27 = vsel %vm443_vm1, 0.0, %v458_v34  ;;  %v284_v35 = vld [vmem:[%s3253_s19 + $0x50] sm:$0xff]  ;;  %v321_v43 = vmul.f32 %v3230_v2, %v285_v31  ;;  %v301_v31 = vld [vmem:[%s3253_s19 + $0xd8] sm:$0xff] }
  0x3a   : > { %5230 = vst [vmem:[#allocation33_spill] sm:$0xff] %v3548_v30  ;;  %v3575_v4 = vsel %vm443_vm1, %v458_v34, %v459_v36  ;;  %v402_v32 = vmax.f32 %v370_v37, 0.0  ;;  %v403_v61 = vmax.f32 %v371_v44, 0.0  ;;  %v320_v63 = vmul.f32 %v3230_v2, %v284_v35 }
  0x3b   : > { %2851 = vmatmul.msk.f32.gmra.mxu3 %vm677_vm2, %v3420_v56  ;;  %5231 = vst [vmem:[#allocation34_spill] sm:$0xff] %v3562_v45  ;;  %v620_v57 = vrot.slane %v3578_v27, 1  ;;  %v621_v34 = vrot.slane %v3575_v4, 1  ;;  %v658_v26 = vrot.slane %v3572_v59, 1  ;;  %v357_v37 = vadd.f32 %v3258_v8, %v321_v43 }
  0x3c   : > { %2803 = vmatmul.msk.f32.gmra.mxu0 %vm677_vm2, %v3434_v7  ;;  %5232 = vst [vmem:[#allocation35_spill] sm:$0xff] %v3567_v58  ;;  %v482_v44 = vrot.slane %v402_v32, 7  ;;  %v483_v35 = vrot.slane %v403_v61, 7  ;;  %v337_v18 = vmul.f32 %v3230_v2, %v301_v31 }
  0x3d   : > { %5233 = vst [vmem:[#allocation36_spill] sm:$0xff] %v3572_v59  ;;  %v389_v32 = vmax.f32 %v357_v37, 0.0 }
  0x3e   : > { %2818 = vmatmul.msk.f32.gmra.mxu2 %vm677_vm2, %v3439_v12  ;;  %5234 = vst [vmem:[#allocation37_spill] sm:$0xff] %v3575_v4  ;;  %v3609_v61 = vsel %vm443_vm1, %v482_v44, %v483_v35 }
  0x3f   : > { %5235 = vst [vmem:[#allocation38_spill] sm:$0xff] %v3578_v27  ;;  %v462_v37 = vrot.slane %v389_v32, 7 }
  0x40   : > { %5238 = vst [vmem:[#allocation41_spill] sm:$0xff] %v3609_v61 }
  0x41   : > { %2837 = vmatmul.msk.f32.gmra.mxu1 %vm677_vm2, %v3450_v15 }
  0x43   : > { %2852 = vmatmul.msk.f32.gmra.mxu3 %vm677_vm2, %v3417_v55 }
  0x44   : > { %2804 = vmatmul.msk.f32.gmra.mxu0 %vm677_vm2, %v3468_v38 }
  0x46   : > { %2819 = vmatmul.msk.f32.gmra.mxu2 %vm677_vm2, %v3473_v39 }
  0x49   : > { %2838 = vmatmul.msk.f32.gmra.mxu1 %vm677_vm2, %v3447_v14 }
  0x4b   : > { %2853 = vmatmul.msk.f32.gmra.mxu3 %vm677_vm2, %v3484_v54  ;;  %v302_v54 = vld [vmem:[%s3253_s19 + $0xe0] sm:$0xff] }
  0x4c   : > { %2805 = vmatmul.msk.f32.gmra.mxu0 %vm677_vm2, %v3498_v16 }
  0x4e   : > { %2820 = vmatmul.msk.f32.gmra.mxu2 %vm677_vm2, %v3503_v17  ;;  %v3596_v17 = vsel %vm594_vm3, %v620_v57, %v621_v34  ;;  %v3612_v57 = vsel %vm443_vm1, 0.0, %v482_v44  ;;  %v373_v44 = vadd.f32 %v3258_v8, %v337_v18 }
  0x4f   : > { %5236 = vst [vmem:[#allocation39_spill] sm:$0xff] %v3596_v17 }
  0x50   : > { %5239 = vst [vmem:[#allocation42_spill] sm:$0xff] %v3612_v57 }
  0x51   : > { %2839 = vmatmul.msk.f32.gmra.mxu1 %vm677_vm2, %v3514_v20 }
  0x53   : > { %2854 = vmatmul.msk.f32.gmra.mxu3 %vm677_vm2, %v3481_v53 }
  0x54   : > { %2806 = vmatmul.msk.f32.gmra.mxu0 %vm677_vm2, %v3532_v60 }
  0x56   : > { %2821 = vmatmul.msk.f32.gmra.mxu2 %vm677_vm2, %v3537_v62  ;;  %v356_v62 = vadd.f32 %v3258_v8, %v320_v63  ;;  %v3606_v63 = vsel %vm443_vm1, %v459_v36, 0.0 }
  0x58   : > { %v388_v43 = vmax.f32 %v356_v62, 0.0  ;;  %v660_v62 = vrot.slane %v3612_v57, 1 }
  0x59   : > { %2840 = vmatmul.msk.f32.gmra.mxu1 %vm677_vm2, %v3511_v19 }
  0x5a   : > { %v461_v36 = vrot.slane %v388_v43, 7 }
  0x5b   : > { %2855 = vmatmul.msk.f32.gmra.mxu3 %vm677_vm2, %v3548_v30  ;;  %v300_v30 = vld [vmem:[%s3253_s19 + $0xd0] sm:$0xff] }
  0x5c   : > { %2807 = vmatmul.msk.f32.gmra.mxu0 %vm677_vm2, %v3562_v45  ;;  %v336_v59 = vmul.f32 %v3230_v2, %v300_v30  ;;  %v3639_v43 = vsel %vm443_vm1, %v461_v36, %v462_v37  ;;  %v3642_v18 = vsel %vm443_vm1, 0.0, %v461_v36 }
  0x5d   : > { %5243 = vst [vmem:[#allocation46_spill] sm:$0xff] %v3639_v43  ;;  %v626_v36 = vrot.slane %v3639_v43, 1 }
  0x5e   : > { %2822 = vmatmul.msk.f32.gmra.mxu2 %vm677_vm2, %v3567_v58  ;;  %v3601_v58 = vsel %vm594_vm3, %v656_v33, %v658_v26  ;;  %v623_v26 = vrot.slane %v3606_v63, 1  ;;  %v661_v33 = vrot.slane %v3609_v61, 1  ;;  %v372_v30 = vadd.f32 %v3258_v8, %v336_v59  ;;  %5244 = vst [vmem:[#allocation47_spill] sm:$0xff] %v3642_v18  ;;  %v286_v59 = vld [vmem:[%s3253_s19 + $0x60] sm:$0xff] }
  0x5f   : > { %5237 = vst [vmem:[#allocation40_spill] sm:$0xff] %v3601_v58 }
  0x60   : > { %v3626_v31 = vsel %vm594_vm3, %v621_v34, %v623_v26  ;;  %v287_v34 = vld [vmem:[%s3253_s19 + $0x68] sm:$0xff]  ;;  %v404_v32 = vmax.f32 %v372_v30, 0.0  ;;  %v405_v26 = vmax.f32 %v373_v44, 0.0 }
  0x61   : > { %2841 = vmatmul.msk.f32.gmra.mxu1 %vm677_vm2, %v3578_v27  ;;  %5240 = vst [vmem:[#allocation43_spill] sm:$0xff] %v3626_v31  ;;  %v323_v39 = vmul.f32 %v3230_v2, %v287_v34  ;;  %v303_v34 = vld [vmem:[%s3253_s19 + $0xe8] sm:$0xff] }
  0x62   : > { %v485_v44 = vrot.slane %v404_v32, 7  ;;  %v339_v13 = vmul.f32 %v3230_v2, %v303_v34 }
  0x63   : > { %2856 = vmatmul.msk.f32.gmra.mxu3 %vm677_vm2, %v3545_v28  ;;  %v3636_v28 = vsel %vm443_vm1, %v483_v35, 0.0  ;;  %v625_v35 = vrot.slane %v3642_v18, 1  ;;  %v359_v30 = vadd.f32 %v3258_v8, %v323_v39 }
  0x64   : > { %2808 = vmatmul.msk.f32.gmra.mxu0 %vm677_vm2, %v3596_v17  ;;  %5242 = vst [vmem:[#allocation45_spill] sm:$0xff] %v3636_v28 }
  0x65   : > { %v3660_v12 = vsel %vm594_vm3, %v625_v35, %v626_v36  ;;  %v391_v32 = vmax.f32 %v359_v30, 0.0  ;;  %v3676_v35 = vsel %vm443_vm1, 0.0, %v485_v44 }
  0x66   : > { %2823 = vmatmul.msk.f32.gmra.mxu2 %vm677_vm2, %v3601_v58  ;;  %v3631_v58 = vsel %vm594_vm3, %v660_v62, %v661_v33  ;;  %v322_v62 = vmul.f32 %v3230_v2, %v286_v59  ;;  %v486_v59 = vrot.slane %v405_v26, 7  ;;  %5245 = vst [vmem:[#allocation48_spill] sm:$0xff] %v3660_v12 }
  0x67   : > { %5241 = vst [vmem:[#allocation44_spill] sm:$0xff] %v3631_v58  ;;  %v465_v30 = vrot.slane %v391_v32, 7 }
  0x68   : > { %v358_v53 = vadd.f32 %v3258_v8, %v322_v62  ;;  %v3670_v62 = vsel %vm443_vm1, %v462_v37, 0.0  ;;  %v3673_v26 = vsel %vm443_vm1, %v485_v44, %v486_v59  ;;  %5248 = vst [vmem:[#allocation51_spill] sm:$0xff] %v3676_v35 }
  0x69   : > { %2842 = vmatmul.msk.f32.gmra.mxu1 %vm677_vm2, %v3575_v4  ;;  %5247 = vst [vmem:[#allocation50_spill] sm:$0xff] %v3673_v26 }
  0x6a   : > { %v390_v39 = vmax.f32 %v358_v53, 0.0  ;;  %v665_v53 = vrot.slane %v3676_v35, 1 }
  0x6b   : > { %2857 = vmatmul.msk.f32.gmra.mxu3 %vm677_vm2, %v3612_v57  ;;  %v663_v57 = vrot.slane %v3636_v28, 1  ;;  %v338_v28 = vmul.f32 %v3230_v2, %v302_v54  ;;  %v375_v54 = vadd.f32 %v3258_v8, %v339_v13 }
  0x6c   : > { %2809 = vmatmul.msk.f32.gmra.mxu0 %vm677_vm2, %v3626_v31  ;;  %v464_v37 = vrot.slane %v390_v39, 7 }
  0x6d   : > { %v374_v44 = vadd.f32 %v3258_v8, %v338_v28  ;;  %v3706_v8 = vsel %vm443_vm1, %v486_v59, 0.0  ;;  %v407_v28 = vmax.f32 %v375_v54, 0.0  ;;  %v3033_v59 = vld [vmem:[%s5097_s3 + $0x1c] sm:$0xf] }
  0x6e   : > { %2824 = vmatmul.msk.f32.gmra.mxu2 %vm677_vm2, %v3631_v58  ;;  %v3665_v58 = vsel %vm594_vm3, %v661_v33, %v663_v57  ;;  %v628_v57 = vrot.slane %v3670_v62, 1  ;;  %v666_v33 = vrot.slane %v3673_v26, 1  ;;  %v3703_v39 = vsel %vm443_vm1, 0.0, %v464_v37  ;;  %5253 = vst [vmem:[#allocation56_spill] sm:$0xff] %v3706_v8  ;;  %3034 = vmatpush.msk.msra.mxu3 %vm742_vm0, %v3033_v59  ;;  %v2965_v59 = vld [vmem:[%s5097_s3 + $0x14] sm:$0xf] }
  0x6f   : > { %5246 = vst [vmem:[#allocation49_spill] sm:$0xff] %v3665_v58  ;;  %v406_v13 = vmax.f32 %v374_v44, 0.0  ;;  %v489_v44 = vrot.slane %v407_v28, 7  ;;  %v3067_v28 = vld [vmem:[%s5097_s3 + $0x20] sm:$0xf]  ;;  %2966 = vmatpush.msk.msrb.mxu1 %vm742_vm0, %v2965_v59 }
  0x70   : > { %v3690_v2 = vsel %vm594_vm3, %v626_v36, %v628_v57  ;;  %v3695_v34 = vsel %vm594_vm3, %v665_v53, %v666_v33  ;;  %5252 = vst [vmem:[#allocation55_spill] sm:$0xff] %v3703_v39  ;;  %v630_v36 = vrot.slane %v3703_v39, 1  ;;  %v2999_v57 = vld [vmem:[%s5097_s3 + $0x18] sm:$0xf]  ;;  %v668_v53 = vrot.slane %v3706_v8, 1  ;;  %3068 = vmatpush.msk.msra.mxu0 %vm742_vm0, %v3067_v28 }
  0x71   : > { %2843 = vmatmul.msk.f32.gmra.mxu1 %vm677_vm2, %v3642_v18  ;;  %5249 = vst [vmem:[#allocation52_spill] sm:$0xff] %v3690_v2  ;;  %3000 = vmatpush.msk.msra.mxu2 %vm742_vm0, %v2999_v57  ;;  %v3734_v8 = vsel %vm443_vm1, %v465_v30, 0.0  ;;  %v1045_v28 = vrot.slane %v3325_v52, 2 }
  0x72   : > { %5250 = vst [vmem:[#allocation53_spill] sm:$0xff] %v3695_v34 }
  0x73   : > { %2858 = vmatmul.msk.f32.gmra.mxu3 %vm677_vm2, %v3609_v61 }
  0x74   : > { %2810 = vmatmul.msk.f32.gmra.mxu0 %vm677_vm2, %v3660_v12 }
  0x76   : > { %2825 = vmatmul.msk.f32.gmra.mxu2 %vm677_vm2, %v3665_v58  ;;  %v3700_v58 = vsel %vm443_vm1, %v464_v37, %v465_v30  ;;  %v488_v37 = vrot.slane %v406_v13, 7 }
  0x77   : > { %5251 = vst [vmem:[#allocation54_spill] sm:$0xff] %v3700_v58  ;;  %v631_v32 = vrot.slane %v3700_v58, 1 }
  0x78   : > { %v3737_v57 = vsel %vm443_vm1, %v488_v37, %v489_v44  ;;  %v3740_v13 = vsel %vm443_vm1, 0.0, %v488_v37 }
  0x79   : > { %2844 = vmatmul.msk.f32.gmra.mxu1 %vm677_vm2, %v3639_v43  ;;  %v3724_v54 = vsel %vm594_vm3, %v630_v36, %v631_v32  ;;  %5256 = vst [vmem:[#allocation59_spill] sm:$0xff] %v3737_v57  ;;  %v670_v30 = vrot.slane %v3740_v13, 1  ;;  %v671_v36 = vrot.slane %v3737_v57, 1 }
  0x7a   : > { %5254 = vst [vmem:[#allocation57_spill] sm:$0xff] %v3724_v54 }
  0x7b   : > { %2859 = vmatmul.msk.f32.gmra.mxu3 %vm677_vm2, %v3676_v35  ;;  %5257 = vst [vmem:[#allocation60_spill] sm:$0xff] %v3740_v13  ;;  %v3763_v37 = vsel %vm594_vm3, %v670_v30, %v671_v36 }
  0x7c   : > { %2811 = vmatmul.msk.f32.gmra.mxu0 %vm677_vm2, %v3690_v2  ;;  %5259 = vst [vmem:[#allocation62_spill] sm:$0xff] %v3763_v37 }
  0x7e   : > { %2826 = vmatmul.msk.f32.gmra.mxu2 %vm677_vm2, %v3695_v34  ;;  %v3729_v34 = vsel %vm594_vm3, %v666_v33, %v668_v53  ;;  %v633_v33 = vrot.slane %v3734_v8, 1 }
  0x7f   : > { %5255 = vst [vmem:[#allocation58_spill] sm:$0xff] %v3729_v34 }
  0x80   : > { %v3758_v53 = vsel %vm594_vm3, %v631_v32, %v633_v33 }
  0x81   : > { %2845 = vmatmul.msk.f32.gmra.mxu1 %vm677_vm2, %v3703_v39  ;;  %5258 = vst [vmem:[#allocation61_spill] sm:$0xff] %v3758_v53 }
  0x83   : > { %2860 = vmatmul.msk.f32.gmra.mxu3 %vm677_vm2, %v3673_v26  ;;  %v3770_v26 = vsel %vm443_vm1, %v489_v44, 0.0 }
  0x84   : > { %2812 = vmatmul.msk.f32.gmra.mxu0 %vm677_vm2, %v3724_v54  ;;  %5260 = vst [vmem:[#allocation63_spill] sm:$0xff] %v3770_v26  ;;  %v673_v32 = vrot.slane %v3770_v26, 1 }
  0x86   : > { %2827 = vmatmul.msk.f32.gmra.mxu2 %vm677_vm2, %v3729_v34  ;;  %v1046_v34 = vrot.slane %v3316_v49, 2  ;;  %v3784_v44 = vsel %vm594_vm3, %v671_v36, %v673_v32 }
  0x87   : > { %5261 = vst [vmem:[#allocation64_spill] sm:$0xff] %v3784_v44 }
  0x88   : > { %v1047_v30 = vsel %vm1039_vm4, %v1045_v28, %v1046_v34  ;;  %v1040_v28 = vrot.slane %v3265_v11, 2  ;;  %v1051_v11 = vrot.slane %v3380_v24, 2 }
  0x89   : > { %2846 = vmatmul.msk.f32.gmra.mxu1 %vm677_vm2, %v3700_v58 }
  0x8b   : > { %2861 = vmatmul.msk.f32.gmra.mxu3 %vm677_vm2, %v3740_v13  ;;  %v1048_v13 = vrot.slane %v3351_v5, 2 }
  0x8c   : > { %2813 = vmatmul.msk.f32.gmra.mxu0 %vm677_vm2, %v3758_v53 }
  0x8d   : > { %v1049_v36 = vsel %vm1039_vm4, %v1046_v34, %v1048_v13  ;;  %v1043_v13 = vrot.slane %v3280_v21, 2  ;;  %v1053_v21 = vrot.slane %v3414_v50, 2  ;;  %v1056_v50 = vrot.slane %v3447_v14, 2 }
  0x8e   : > { %2828 = vmatmul.msk.f32.gmra.mxu2 %vm677_vm2, %v3763_v37  ;;  %v3777_v33 = vpop.f32.mrf.mxu1  ;;  %v1041_v37 = vrot.slane %v3243_v6, 2 }
  0x90   : > { %v3802_v5 = vsel %vm1039_vm4, %v1040_v28, %v1041_v37 }
  0x91   : > { %v3780_v59 = vpop.f32.mrf.mxu0  ;;  %2967 = vmatmul.msk.f32.vlgmr.msrb.gmra.mxu1 %vm677_vm2, %v1047_v30  ;;  %5262 = vst [vmem:[#allocation65_spill] sm:$0xff] %v3802_v5 }
  0x93   : > { %2862 = vmatmul.msk.f32.gmra.mxu3 %vm677_vm2, %v3737_v57 }
  0x94   : > { %2933 = vmatmul.msk.f32.vlgmr.msrb.gmra.mxu0 %vm677_vm2, %v3339_v0  ;;  %v1050_v0 = vrot.slane %v3383_v25, 2 }
  0x96   : > { %2829 = vmatmul.msk.f32.gmra.mxu2 %vm677_vm2, %v3784_v44  ;;  %v3795_v26 = vpop.f32.mrf.mxu1  ;;  %v3816_v28 = vsel %vm1039_vm4, %v1050_v0, %v1051_v11 }
  0x99   : > { %v3798_v32 = vpop.f32.mrf.mxu0  ;;  %2968 = vmatmul.msk.f32.gmra.mxu1 %vm677_vm2, %v1049_v36 }
  0x9b   : > { %2899 = vmatmul.msk.f32.vlgmr.msrb.gmra.mxu3 %vm677_vm2, %v3325_v52 }
  0x9c   : > { %2934 = vmatmul.msk.f32.gmra.mxu0 %vm677_vm2, %v3370_v22  ;;  %v3825_v22 = vsel %vm1039_vm4, %v1041_v37, %v1043_v13 }
  0x9d   : > { %5264 = vst [vmem:[#allocation67_spill] sm:$0xff] %v3825_v22 }
  0x9e   : > { %2865 = vmatmul.msk.f32.vlgmr.msrb.gmra.mxu2 %vm677_vm2, %v3802_v5  ;;  %v991_v34 = vpop.f32.mrf.mxu3  ;;  %v3813_v6 = vpop.f32.mrf.mxu1 }
  0xa1   : > { %v811_v44 = vpop.f32.mrf.mxu2  ;;  %v3820_v57 = vpop.f32.mrf.mxu0  ;;  %2969 = vmatmul.msk.f32.gmra.mxu1 %vm677_vm2, %v3816_v28 }
  0xa2   : > { %v3818_v52 = vadd.f32 %v991_v34, %v811_v44  ;;  %v3837_v34 = vsel %vm1039_vm4, %v1051_v11, %v1053_v21 }
  0xa3   : > { %2900 = vmatmul.msk.f32.gmra.mxu3 %vm677_vm2, %v3316_v49  ;;  %v1055_v49 = vrot.slane %v3450_v15, 2 }
  0xa4   : > { %5263 = vst [vmem:[#allocation66_spill] sm:$0xff] %v3818_v52  ;;  %2935 = vmatmul.msk.f32.gmra.mxu0 %vm677_vm2, %v3404_v47 }
  0xa5   : > { %v3855_v21 = vsel %vm1039_vm4, %v1055_v49, %v1056_v50 }
  0xa6   : > { %2866 = vmatmul.msk.f32.gmra.mxu2 %vm677_vm2, %v3825_v22  ;;  %v994_v44 = vpop.f32.mrf.mxu3  ;;  %v3834_v0 = vpop.f32.mrf.mxu1  ;;  %5266 = vst [vmem:[#allocation69_spill] sm:$0xff] %v3855_v21 }
  0xa9   : > { %v814_v5 = vpop.f32.mrf.mxu2  ;;  %v3841_v13 = vpop.f32.mrf.mxu0  ;;  %2970 = vmatmul.msk.f32.gmra.mxu1 %vm677_vm2, %v3837_v34 }
  0xaa   : > { %v3839_v37 = vadd.f32 %v994_v44, %v814_v5 }
  0xab   : > { %2901 = vmatmul.msk.f32.gmra.mxu3 %vm677_vm2, %v3383_v25 }
  0xac   : > { %5265 = vst [vmem:[#allocation68_spill] sm:$0xff] %v3839_v37  ;;  %2936 = vmatmul.msk.f32.gmra.mxu0 %vm677_vm2, %v3434_v7  ;;  %v1058_v7 = vrot.slane %v3478_v40, 2  ;;  %v1060_v40 = vrot.slane %v3514_v20, 2 }
  0xae   : > { %2867 = vmatmul.msk.f32.gmra.mxu2 %vm677_vm2, %v1047_v30  ;;  %v997_v11 = vpop.f32.mrf.mxu3  ;;  %v3852_v5 = vpop.f32.mrf.mxu1 }
  0xb1   : > { %v817_v44 = vpop.f32.mrf.mxu2  ;;  %v3859_v37 = vpop.f32.mrf.mxu0  ;;  %2971 = vmatmul.msk.f32.gmra.mxu1 %vm677_vm2, %v3855_v21 }
  0xb2   : > { %v3857_v22 = vadd.f32 %v997_v11, %v817_v44  ;;  %v3872_v11 = vsel %vm1039_vm4, %v1056_v50, %v1058_v7 }
  0xb3   : > { %2902 = vmatmul.msk.f32.gmra.mxu3 %vm677_vm2, %v3380_v24 }
  0xb4   : > { %5267 = vst [vmem:[#allocation70_spill] sm:$0xff] %v3857_v22  ;;  %2937 = vmatmul.msk.f32.gmra.mxu0 %vm677_vm2, %v3468_v38 }
  0xb6   : > { %2868 = vmatmul.msk.f32.gmra.mxu2 %vm677_vm2, %v1049_v36  ;;  %v1000_v30 = vpop.f32.mrf.mxu3  ;;  %v3869_v49 = vpop.f32.mrf.mxu1  ;;  %v1061_v36 = vrot.slane %v3511_v19, 2 }
  0xb9   : > { %v820_v44 = vpop.f32.mrf.mxu2  ;;  %v3876_v52 = vpop.f32.mrf.mxu0  ;;  %2972 = vmatmul.msk.f32.gmra.mxu1 %vm677_vm2, %v3872_v11 }
  0xba   : > { %v3874_v22 = vadd.f32 %v1000_v30, %v820_v44  ;;  %v3891_v30 = vsel %vm1039_vm4, %v1060_v40, %v1061_v36 }
  0xbb   : > { %2903 = vmatmul.msk.f32.gmra.mxu3 %vm677_vm2, %v3450_v15  ;;  %5269 = vst [vmem:[#allocation72_spill] sm:$0xff] %v3891_v30 }
  0xbc   : > { %5268 = vst [vmem:[#allocation71_spill] sm:$0xff] %v3874_v22  ;;  %2938 = vmatmul.msk.f32.gmra.mxu0 %vm677_vm2, %v3498_v16  ;;  %v1063_v16 = vrot.slane %v3542_v1, 2  ;;  %v1065_v1 = vrot.slane %v3578_v27, 2 }
  0xbe   : > { %2869 = vmatmul.msk.f32.gmra.mxu2 %vm677_vm2, %v3816_v28  ;;  %v1003_v7 = vpop.f32.mrf.mxu3  ;;  %v3888_v50 = vpop.f32.mrf.mxu1 }
  0xc1   : > { %v823_v44 = vpop.f32.mrf.mxu2  ;;  %v3895_v15 = vpop.f32.mrf.mxu0  ;;  %2973 = vmatmul.msk.f32.gmra.mxu1 %vm677_vm2, %v3891_v30 }
  0xc2   : > { %v3893_v22 = vadd.f32 %v1003_v7, %v823_v44  ;;  %v3909_v7 = vsel %vm1039_vm4, %v1061_v36, %v1063_v16 }
  0xc3   : > { %2904 = vmatmul.msk.f32.gmra.mxu3 %vm677_vm2, %v3447_v14 }
  0xc4   : > { %5270 = vst [vmem:[#allocation73_spill] sm:$0xff] %v3893_v22  ;;  %2939 = vmatmul.msk.f32.gmra.mxu0 %vm677_vm2, %v3532_v60  ;;  %v1066_v60 = vrot.slane %v3575_v4, 2 }
  0xc6   : > { %2870 = vmatmul.msk.f32.gmra.mxu2 %vm677_vm2, %v3837_v34  ;;  %v1006_v40 = vpop.f32.mrf.mxu3  ;;  %v3906_v38 = vpop.f32.mrf.mxu1 }
  0xc9   : > { %v826_v44 = vpop.f32.mrf.mxu2  ;;  %v3913_v24 = vpop.f32.mrf.mxu0  ;;  %2974 = vmatmul.msk.f32.gmra.mxu1 %vm677_vm2, %v3909_v7 }
  0xca   : > { %v3911_v22 = vadd.f32 %v1006_v40, %v826_v44  ;;  %v3928_v40 = vsel %vm1039_vm4, %v1065_v1, %v1066_v60 }
  0xcb   : > { %2905 = vmatmul.msk.f32.gmra.mxu3 %vm677_vm2, %v3514_v20 }
  0xcc   : > { %5271 = vst [vmem:[#allocation74_spill] sm:$0xff] %v3911_v22  ;;  %2940 = vmatmul.msk.f32.gmra.mxu0 %vm677_vm2, %v3562_v45  ;;  %v1068_v45 = vrot.slane %v3606_v63, 2  ;;  %v1070_v63 = vrot.slane %v3642_v18, 2 }
  0xce   : > { %2871 = vmatmul.msk.f32.gmra.mxu2 %vm677_vm2, %v3855_v21  ;;  %v1009_v16 = vpop.f32.mrf.mxu3  ;;  %v3925_v36 = vpop.f32.mrf.mxu1 }
  0xd1   : > { %v829_v44 = vpop.f32.mrf.mxu2  ;;  %v3932_v20 = vpop.f32.mrf.mxu0  ;;  %2975 = vmatmul.msk.f32.gmra.mxu1 %vm677_vm2, %v3928_v40 }
  0xd2   : > { %v3930_v22 = vadd.f32 %v1009_v16, %v829_v44  ;;  %v3946_v16 = vsel %vm1039_vm4, %v1066_v60, %v1068_v45 }
  0xd3   : > { %2906 = vmatmul.msk.f32.gmra.mxu3 %vm677_vm2, %v3511_v19  ;;  %5273 = vst [vmem:[#allocation76_spill] sm:$0xff] %v3946_v16 }
  0xd4   : > { %5272 = vst [vmem:[#allocation75_spill] sm:$0xff] %v3930_v22  ;;  %2941 = vmatmul.msk.f32.gmra.mxu0 %vm677_vm2, %v3596_v17  ;;  %v1071_v17 = vrot.slane %v3639_v43, 2 }
  0xd6   : > { %2872 = vmatmul.msk.f32.gmra.mxu2 %vm677_vm2, %v3872_v11  ;;  %v1012_v1 = vpop.f32.mrf.mxu3  ;;  %v3943_v14 = vpop.f32.mrf.mxu1 }
  0xd9   : > { %v832_v44 = vpop.f32.mrf.mxu2  ;;  %v3950_v21 = vpop.f32.mrf.mxu0  ;;  %2976 = vmatmul.msk.f32.gmra.mxu1 %vm677_vm2, %v3946_v16 }
  0xda   : > { %v3948_v22 = vadd.f32 %v1012_v1, %v832_v44  ;;  %v3965_v1 = vsel %vm1039_vm4, %v1070_v63, %v1071_v17 }
  0xdb   : > { %2907 = vmatmul.msk.f32.gmra.mxu3 %vm677_vm2, %v3578_v27  ;;  %5275 = vst [vmem:[#allocation78_spill] sm:$0xff] %v3965_v1 }
  0xdc   : > { %5274 = vst [vmem:[#allocation77_spill] sm:$0xff] %v3948_v22  ;;  %2942 = vmatmul.msk.f32.gmra.mxu0 %vm677_vm2, %v3626_v31  ;;  %v1073_v31 = vrot.slane %v3670_v62, 2  ;;  %v1075_v62 = vrot.slane %v3703_v39, 2 }
  0xde   : > { %2873 = vmatmul.msk.f32.gmra.mxu2 %vm677_vm2, %v3891_v30  ;;  %v1015_v60 = vpop.f32.mrf.mxu3  ;;  %v3962_v45 = vpop.f32.mrf.mxu1 }
  0xe1   : > { %v835_v44 = vpop.f32.mrf.mxu2  ;;  %v3969_v27 = vpop.f32.mrf.mxu0  ;;  %2977 = vmatmul.msk.f32.gmra.mxu1 %vm677_vm2, %v3965_v1 }
  0xe2   : > { %v3967_v22 = vadd.f32 %v1015_v60, %v835_v44  ;;  %v3983_v60 = vsel %vm1039_vm4, %v1071_v17, %v1073_v31 }
  0xe3   : > { %2908 = vmatmul.msk.f32.gmra.mxu3 %vm677_vm2, %v3575_v4  ;;  %5277 = vst [vmem:[#allocation80_spill] sm:$0xff] %v3983_v60 }
  0xe4   : > { %5276 = vst [vmem:[#allocation79_spill] sm:$0xff] %v3967_v22  ;;  %2943 = vmatmul.msk.f32.gmra.mxu0 %vm677_vm2, %v3660_v12  ;;  %v1076_v12 = vrot.slane %v3700_v58, 2 }
  0xe6   : > { %2874 = vmatmul.msk.f32.gmra.mxu2 %vm677_vm2, %v3909_v7  ;;  %v1018_v63 = vpop.f32.mrf.mxu3  ;;  %v3980_v19 = vpop.f32.mrf.mxu1  ;;  %v4000_v31 = vsel %vm1039_vm4, %v1075_v62, %v1076_v12 }
  0xe7   : > { %5279 = vst [vmem:[#allocation82_spill] sm:$0xff] %v4000_v31 }
  0xe9   : > { %v838_v44 = vpop.f32.mrf.mxu2  ;;  %v3987_v30 = vpop.f32.mrf.mxu0  ;;  %2978 = vmatmul.msk.f32.gmra.mxu1 %vm677_vm2, %v3983_v60 }
  0xea   : > { %v3985_v22 = vadd.f32 %v1018_v63, %v838_v44 }
  0xeb   : > { %2909 = vmatmul.msk.f32.gmra.mxu3 %vm677_vm2, %v3642_v18 }
  0xec   : > { %5278 = vst [vmem:[#allocation81_spill] sm:$0xff] %v3985_v22  ;;  %2944 = vmatmul.msk.f32.gmra.mxu0 %vm677_vm2, %v3690_v2  ;;  %v1078_v2 = vrot.slane %v3734_v8, 2 }
  0xee   : > { %2875 = vmatmul.msk.f32.gmra.mxu2 %vm677_vm2, %v3928_v40  ;;  %v1021_v17 = vpop.f32.mrf.mxu3  ;;  %v4002_v44 = vpop.f32.mrf.mxu1 }
  0xf1   : > { %v841_v63 = vpop.f32.mrf.mxu2  ;;  %v4006_v18 = vpop.f32.mrf.mxu0  ;;  %2979 = vmatmul.msk.f32.gmra.mxu1 %vm677_vm2, %v4000_v31 }
  0xf2   : > { %v4004_v22 = vadd.f32 %v1021_v17, %v841_v63  ;;  %v4018_v17 = vsel %vm1039_vm4, %v1076_v12, %v1078_v2 }
  0xf3   : > { %2910 = vmatmul.msk.f32.gmra.mxu3 %vm677_vm2, %v3639_v43  ;;  %5281 = vst [vmem:[#allocation84_spill] sm:$0xff] %v4018_v17  ;;  %v1081_v43 = vrot.slane %v3298_v41, 2 }
  0xf4   : > { %5280 = vst [vmem:[#allocation83_spill] sm:$0xff] %v4004_v22  ;;  %2945 = vmatmul.msk.f32.gmra.mxu0 %vm677_vm2, %v3724_v54  ;;  %v1080_v54 = vrot.slane %v3301_v42, 2 }
  0xf6   : > { %2876 = vmatmul.msk.f32.gmra.mxu2 %vm677_vm2, %v3946_v16  ;;  %v1024_v62 = vpop.f32.mrf.mxu3  ;;  %v4028_v8 = vpop.f32.mrf.mxu1  ;;  %v4037_v2 = vsel %vm1039_vm4, %v1080_v54, %v1081_v43 }
  0xf7   : > { %5283 = vst [vmem:[#allocation86_spill] sm:$0xff] %v4037_v2 }
  0xf9   : > { %v844_v63 = vpop.f32.mrf.mxu2  ;;  %v4022_v4 = vpop.f32.mrf.mxu0  ;;  %2980 = vmatmul.msk.f32.gmra.mxu1 %vm677_vm2, %v4018_v17 }
  0xfa   : > { %v4020_v22 = vadd.f32 %v1024_v62, %v844_v63 }
  0xfb   : > { %2911 = vmatmul.msk.f32.gmra.mxu3 %vm677_vm2, %v3703_v39 }
  0xfc   : > { %5282 = vst [vmem:[#allocation85_spill] sm:$0xff] %v4020_v22  ;;  %2946 = vmatmul.msk.f32.gmra.mxu0 %vm677_vm2, %v3758_v53  ;;  %v1083_v53 = vrot.slane %v3313_v46, 2  ;;  %v2290_v46 = vld [vmem:[%s5098_s4] sm:$0xf] }
  0xfd   : > { %3101 = vmatpush.msk.msra.mxu1 %vm742_vm0, %v2290_v46  ;;  %v1088_v46 = vrot.slane %v3388_v29, 2  ;;  %v1090_v29 = vrot.slane %v3420_v56, 2 }
  0xfe   : > { %2877 = vmatmul.msk.f32.gmra.mxu2 %vm677_vm2, %v3965_v1  ;;  %v1027_v12 = vpop.f32.mrf.mxu3  ;;  %v4048_v39 = vpop.f32.mrf.mxu1 }
 0x101   : > { %v847_v62 = vpop.f32.mrf.mxu2  ;;  %v4041_v22 = vpop.f32.mrf.mxu0  ;;  %2981 = vmatmul.msk.f32.gmra.mxu1 %vm677_vm2, %v4037_v2 }
 0x102   : > { %v4039_v63 = vadd.f32 %v1027_v12, %v847_v62  ;;  %v4055_v12 = vsel %vm1039_vm4, %v1081_v43, %v1083_v53  ;;  %v1086_v43 = vrot.slane %v3354_v9, 2 }
 0x103   : > { %2912 = vmatmul.msk.f32.gmra.mxu3 %vm677_vm2, %v3700_v58 }
 0x104   : > { %5284 = vst [vmem:[#allocation87_spill] sm:$0xff] %v4039_v63  ;;  %2947 = vmatmul.msk.f32.gmra.mxu0 %vm677_vm2, %v3320_v51  ;;  %v1085_v51 = vrot.slane %v3357_v10, 2 }
 0x106   : > { %2878 = vmatmul.msk.f32.gmra.mxu2 %vm677_vm2, %v3983_v60  ;;  %v1030_v54 = vpop.f32.mrf.mxu3  ;;  %v5289_v60 = vld [vmem:[#allocation17_spill] sm:$0xff] }
 0x109   : > { %v850_v62 = vpop.f32.mrf.mxu2  ;;  %v4059_v1 = vpop.f32.mrf.mxu0  ;;  %2982 = vmatmul.msk.f32.gmra.mxu1 %vm677_vm2, %v4055_v12 }
 0x10a   : > { %v4057_v63 = vadd.f32 %v1030_v54, %v850_v62  ;;  %v4075_v54 = vpop.f32.mrf.mxu1  ;;  %v4078_v62 = vsel %vm1039_vm4, %v1085_v51, %v1086_v43 }
 0x10b   : > { %2913 = vmatmul.msk.f32.gmra.mxu3 %vm677_vm2, %v3301_v42 }
 0x10c   : > { %5285 = vst [vmem:[#allocation88_spill] sm:$0xff] %v4057_v63  ;;  %2948 = vmatmul.msk.f32.gmra.mxu0 %vm677_vm2, %v3345_v3 }
 0x10e   : > { %2879 = vmatmul.msk.f32.gmra.mxu2 %vm677_vm2, %v4000_v31  ;;  %v1033_v53 = vpop.f32.mrf.mxu3 }
 0x111   : > { %v853_v63 = vpop.f32.mrf.mxu2  ;;  %v1521_v58 = vpop.f32.mrf.mxu0  ;;  %2983 = vmatmul.msk.f32.gmra.mxu1 %vm677_vm2, %v4078_v62 }
 0x112   : > { %v4080_v42 = vadd.f32 %v1033_v53, %v853_v63  ;;  %v1680_v3 = vpop.f32.mrf.mxu1  ;;  %v4092_v63 = vsel %vm1039_vm4, %v1086_v43, %v1088_v46 }
 0x113   : > { %2914 = vmatmul.msk.f32.gmra.mxu3 %vm677_vm2, %v3298_v41 }
 0x114   : > { %5286 = vst [vmem:[#allocation89_spill] sm:$0xff] %v4080_v42  ;;  %2949 = vmatmul.msk.f32.gmra.mxu0 %vm677_vm2, %v3375_v23  ;;  %v1091_v23 = vrot.slane %v3417_v55, 2 }
 0x116   : > { %2880 = vmatmul.msk.f32.gmra.mxu2 %vm677_vm2, %v4018_v17  ;;  %v1036_v51 = vpop.f32.mrf.mxu3  ;;  %v4107_v46 = vsel %vm1039_vm4, %v1090_v29, %v1091_v23 }
 0x119   : > { %v856_v53 = vpop.f32.mrf.mxu2  ;;  %v1524_v31 = vpop.f32.mrf.mxu0  ;;  %2984 = vmatmul.msk.f32.gmra.mxu1 %vm677_vm2, %v4092_v63 }
 0x11a   : > { %v4094_v42 = vadd.f32 %v1036_v51, %v856_v53  ;;  %v944_v51 = vadd.f32 %v3777_v33, %v3780_v59 }
 0x11b   : > { %2915 = vmatmul.msk.f32.gmra.mxu3 %vm677_vm2, %v3357_v10 }
 0x11c   : > { %5287 = vst [vmem:[#allocation90_spill] sm:$0xff] %v4094_v42  ;;  %2950 = vmatmul.msk.f32.gmra.mxu0 %vm677_vm2, %v3409_v48  ;;  %v1683_v42 = vpop.f32.mrf.mxu1  ;;  %v5288_v48 = vld [vmem:[#allocation18_spill] sm:$0xff] }
 0x11d   : > { %v1093_v17 = vrot.slane %v5288_v48, 2 }
 0x11e   : > { %2881 = vmatmul.msk.f32.gmra.mxu2 %vm677_vm2, %v4037_v2  ;;  %v1361_v43 = vpop.f32.mrf.mxu3 }
 0x11f   : > { %v4121_v59 = vsel %vm1039_vm4, %v1091_v23, %v1093_v17 }
 0x121   : > { %v1206_v53 = vpop.f32.mrf.mxu2  ;;  %v1527_v41 = vpop.f32.mrf.mxu0  ;;  %2985 = vmatmul.msk.f32.gmra.mxu1 %vm677_vm2, %v4107_v46 }
 0x122   : > { %v1302_v10 = vadd.f32 %v1206_v53, %v944_v51  ;;  %v947_v51 = vadd.f32 %v3795_v26, %v3798_v32  ;;  %v950_v32 = vadd.f32 %v3813_v6, %v3820_v57  ;;  %v953_v57 = vadd.f32 %v3834_v0, %v3841_v13 }
 0x123   : > { %2916 = vmatmul.msk.f32.gmra.mxu3 %vm677_vm2, %v3354_v9 }
 0x124   : > { %v1457_v2 = vadd.f32 %v1361_v43, %v1302_v10  ;;  %2951 = vmatmul.msk.f32.gmra.mxu0 %vm677_vm2, %v5289_v60  ;;  %v1686_v10 = vpop.f32.mrf.mxu1  ;;  %v5292_v43 = vld [vmem:[#allocation23_spill] sm:$0xff]  ;;  %v5293_v60 = vld [vmem:[#allocation22_spill] sm:$0xff] }
 0x125   : > { %v1096_v23 = vrot.slane %v5292_v43, 2 }
 0x126   : > { %v1617_v29 = vadd.f32 %v1521_v58, %v1457_v2  ;;  %2882 = vmatmul.msk.f32.gmra.mxu2 %vm677_vm2, %v4055_v12  ;;  %v1364_v33 = vpop.f32.mrf.mxu3  ;;  %v5291_v58 = vld [vmem:[#allocation24_spill] sm:$0xff] }
 0x127   : > { %v1095_v2 = vrot.slane %v5291_v58, 2 }
 0x128   : > { %v4125_v53 = vadd.f32 %v1680_v3, %v1617_v29 }
 0x129   : > { %v1209_v9 = vpop.f32.mrf.mxu2  ;;  %v1530_v48 = vpop.f32.mrf.mxu0  ;;  %2986 = vmatmul.msk.f32.gmra.mxu1 %vm677_vm2, %v4121_v59  ;;  %v4138_v26 = vsel %vm1039_vm4, %v1095_v2, %v1096_v23  ;;  %v5295_v2 = vld [vmem:[#allocation26_spill] sm:$0xff] }
 0x12a   : > { %5290 = vst [vmem:[#allocation18_spill] sm:$0xff] %v4125_v53  ;;  %v1303_v16 = vadd.f32 %v1209_v9, %v947_v51 }
 0x12b   : > { %2917 = vmatmul.msk.f32.gmra.mxu3 %vm677_vm2, %v3420_v56 }
 0x12c   : > { %v1458_v17 = vadd.f32 %v1364_v33, %v1303_v16  ;;  %2952 = vmatmul.msk.f32.gmra.mxu0 %vm677_vm2, %v5293_v60  ;;  %v5294_v16 = vld [vmem:[#allocation27_spill] sm:$0xff] }
 0x12e   : > { %v1618_v3 = vadd.f32 %v1524_v31, %v1458_v17  ;;  %2883 = vmatmul.msk.f32.gmra.mxu2 %vm677_vm2, %v4078_v62  ;;  %v1367_v9 = vpop.f32.mrf.mxu3  ;;  %v1098_v31 = vrot.slane %v5294_v16, 2  ;;  %v1689_v17 = vpop.f32.mrf.mxu1  ;;  %v5298_v16 = vld [vmem:[#allocation32_spill] sm:$0xff] }
 0x130   : > { %v4142_v29 = vadd.f32 %v1683_v42, %v1618_v3  ;;  %v4154_v42 = vsel %vm1039_vm4, %v1096_v23, %v1098_v31  ;;  %v5299_v31 = vld [vmem:[#allocation31_spill] sm:$0xff] }
 0x131   : > { %v1212_v51 = vpop.f32.mrf.mxu2  ;;  %v1533_v56 = vpop.f32.mrf.mxu0  ;;  %2987 = vmatmul.msk.f32.gmra.mxu1 %vm677_vm2, %v4138_v26 }
 0x132   : > { %v1304_v53 = vadd.f32 %v1212_v51, %v950_v32 }
 0x133   : > { %2918 = vmatmul.msk.f32.gmra.mxu3 %vm677_vm2, %v3417_v55 }
 0x134   : > { %v1459_v33 = vadd.f32 %v1367_v9, %v1304_v53  ;;  %2953 = vmatmul.msk.f32.gmra.mxu0 %vm677_vm2, %v5295_v2 }
 0x136   : > { %v1619_v60 = vadd.f32 %v1527_v41, %v1459_v33  ;;  %2884 = vmatmul.msk.f32.gmra.mxu2 %vm677_vm2, %v4092_v63  ;;  %v1370_v6 = vpop.f32.mrf.mxu3  ;;  %v5297_v41 = vld [vmem:[#allocation33_spill] sm:$0xff]  ;;  %v1101_v33 = vrot.slane %v5298_v16, 2 }
 0x137   : > { %v1100_v9 = vrot.slane %v5297_v41, 2 }
 0x138   : > { %v4158_v3 = vadd.f32 %v1686_v10, %v1619_v60  ;;  %v1692_v60 = vpop.f32.mrf.mxu1 }
 0x139   : > { %v1215_v32 = vpop.f32.mrf.mxu2  ;;  %v1536_v53 = vpop.f32.mrf.mxu0  ;;  %2988 = vmatmul.msk.f32.gmra.mxu1 %vm677_vm2, %v4154_v42  ;;  %v4171_v10 = vsel %vm1039_vm4, %v1100_v9, %v1101_v33 }
 0x13a   : > { %5296 = vst [vmem:[#allocation23_spill] sm:$0xff] %v4158_v3  ;;  %v1305_v51 = vadd.f32 %v1215_v32, %v953_v57  ;;  %v956_v57 = vadd.f32 %v3852_v5, %v3859_v37 }
 0x13b   : > { %2919 = vmatmul.msk.f32.gmra.mxu3 %vm677_vm2, %v5291_v58 }
 0x13c   : > { %v1460_v23 = vadd.f32 %v1370_v6, %v1305_v51  ;;  %2954 = vmatmul.msk.f32.gmra.mxu0 %vm677_vm2, %v5299_v31  ;;  %v5301_v31 = vld [vmem:[#allocation35_spill] sm:$0xff] }
 0x13e   : > { %v1620_v0 = vadd.f32 %v1530_v48, %v1460_v23  ;;  %2885 = vmatmul.msk.f32.gmra.mxu2 %vm677_vm2, %v4107_v46  ;;  %v1373_v13 = vpop.f32.mrf.mxu3  ;;  %v5300_v48 = vld [vmem:[#allocation36_spill] sm:$0xff] }
 0x13f   : > { %v1103_v51 = vrot.slane %v5300_v48, 2 }
 0x140   : > { %v4175_v32 = vadd.f32 %v1689_v17, %v1620_v0  ;;  %v959_v17 = vadd.f32 %v3869_v49, %v3876_v52 }
 0x141   : > { %v1218_v3 = vpop.f32.mrf.mxu2  ;;  %v1539_v6 = vpop.f32.mrf.mxu0  ;;  %2989 = vmatmul.msk.f32.gmra.mxu1 %vm677_vm2, %v4171_v10  ;;  %v4187_v5 = vsel %vm1039_vm4, %v1101_v33, %v1103_v51  ;;  %v1106_v33 = vrot.slane %v3609_v61, 2 }
 0x142   : > { %v1306_v58 = vadd.f32 %v1218_v3, %v956_v57  ;;  %v1695_v57 = vpop.f32.mrf.mxu1 }
 0x143   : > { %2920 = vmatmul.msk.f32.gmra.mxu3 %vm677_vm2, %v5292_v43 }
 0x144   : > { %v1461_v23 = vadd.f32 %v1373_v13, %v1306_v58  ;;  %2955 = vmatmul.msk.f32.gmra.mxu0 %vm677_vm2, %v5301_v31 }
 0x146   : > { %v1621_v9 = vadd.f32 %v1533_v56, %v1461_v23  ;;  %2886 = vmatmul.msk.f32.gmra.mxu2 %vm677_vm2, %v4121_v59  ;;  %v1376_v37 = vpop.f32.mrf.mxu3  ;;  %v5303_v56 = vld [vmem:[#allocation42_spill] sm:$0xff]  ;;  %v5304_v23 = vld [vmem:[#allocation40_spill] sm:$0xff] }
 0x147   : > { %v1105_v13 = vrot.slane %v5303_v56, 2 }
 0x148   : > { %v4191_v3 = vadd.f32 %v1692_v60, %v1621_v9  ;;  %v962_v9 = vadd.f32 %v3888_v50, %v3895_v15 }
 0x149   : > { %v1221_v0 = vpop.f32.mrf.mxu2  ;;  %v1542_v58 = vpop.f32.mrf.mxu0  ;;  %2990 = vmatmul.msk.f32.gmra.mxu1 %vm677_vm2, %v4187_v5  ;;  %v4204_v60 = vsel %vm1039_vm4, %v1105_v13, %v1106_v33  ;;  %v5306_v13 = vld [vmem:[#allocation44_spill] sm:$0xff] }
 0x14a   : > { %5302 = vst [vmem:[#allocation27_spill] sm:$0xff] %v4191_v3  ;;  %v1307_v48 = vadd.f32 %v1221_v0, %v959_v17 }
 0x14b   : > { %2921 = vmatmul.msk.f32.gmra.mxu3 %vm677_vm2, %v5297_v41 }
 0x14c   : > { %v1462_v51 = vadd.f32 %v1376_v37, %v1307_v48  ;;  %2956 = vmatmul.msk.f32.gmra.mxu0 %vm677_vm2, %v5304_v23  ;;  %v1698_v37 = vpop.f32.mrf.mxu1 }
 0x14e   : > { %v1622_v52 = vadd.f32 %v1536_v53, %v1462_v51  ;;  %2887 = vmatmul.msk.f32.gmra.mxu2 %vm677_vm2, %v4138_v26  ;;  %v1379_v49 = vpop.f32.mrf.mxu3  ;;  %v5305_v53 = vld [vmem:[#allocation45_spill] sm:$0xff] }
 0x14f   : > { %v1108_v48 = vrot.slane %v5305_v53, 2 }
 0x150   : > { %v4208_v17 = vadd.f32 %v1695_v57, %v1622_v52  ;;  %v965_v57 = vadd.f32 %v3906_v38, %v3913_v24 }
 0x151   : > { %v1224_v0 = vpop.f32.mrf.mxu2  ;;  %v1545_v41 = vpop.f32.mrf.mxu0  ;;  %2991 = vmatmul.msk.f32.gmra.mxu1 %vm677_vm2, %v4204_v60  ;;  %v4220_v50 = vsel %vm1039_vm4, %v1106_v33, %v1108_v48 }
 0x152   : > { %v1308_v3 = vadd.f32 %v1224_v0, %v962_v9 }
 0x153   : > { %2922 = vmatmul.msk.f32.gmra.mxu3 %vm677_vm2, %v5298_v16 }
 0x154   : > { %v1463_v51 = vadd.f32 %v1379_v49, %v1308_v3  ;;  %2957 = vmatmul.msk.f32.gmra.mxu0 %vm677_vm2, %v5306_v13  ;;  %v5308_v3 = vld [vmem:[#allocation50_spill] sm:$0xff]  ;;  %v1701_v48 = vpop.f32.mrf.mxu1 }
 0x155   : > { %v1111_v49 = vrot.slane %v5308_v3, 2 }
 0x156   : > { %v1623_v23 = vadd.f32 %v1539_v6, %v1463_v51  ;;  %2888 = vmatmul.msk.f32.gmra.mxu2 %vm677_vm2, %v4154_v42  ;;  %v1382_v15 = vpop.f32.mrf.mxu3  ;;  %v1110_v6 = vrot.slane %v3676_v35, 2  ;;  %v5309_v51 = vld [vmem:[#allocation49_spill] sm:$0xff] }
 0x158   : > { %v4224_v52 = vadd.f32 %v1698_v37, %v1623_v23  ;;  %v4237_v23 = vsel %vm1039_vm4, %v1110_v6, %v1111_v49  ;;  %v968_v37 = vadd.f32 %v3925_v36, %v3932_v20 }
 0x159   : > { %v1227_v9 = vpop.f32.mrf.mxu2  ;;  %v1548_v53 = vpop.f32.mrf.mxu0  ;;  %2992 = vmatmul.msk.f32.gmra.mxu1 %vm677_vm2, %v4220_v50 }
 0x15a   : > { %5307 = vst [vmem:[#allocation26_spill] sm:$0xff] %v4224_v52  ;;  %v1309_v0 = vadd.f32 %v1227_v9, %v965_v57  ;;  %v5312_v52 = vld [vmem:[#allocation53_spill] sm:$0xff] }
 0x15b   : > { %2923 = vmatmul.msk.f32.gmra.mxu3 %vm677_vm2, %v5303_v56 }
 0x15c   : > { %v1464_v33 = vadd.f32 %v1382_v15, %v1309_v0  ;;  %2958 = vmatmul.msk.f32.gmra.mxu0 %vm677_vm2, %v5309_v51 }
 0x15e   : > { %v1624_v24 = vadd.f32 %v1542_v58, %v1464_v33  ;;  %2889 = vmatmul.msk.f32.gmra.mxu2 %vm677_vm2, %v4171_v10  ;;  %v1385_v38 = vpop.f32.mrf.mxu3  ;;  %v5311_v58 = vld [vmem:[#allocation56_spill] sm:$0xff] }
 0x15f   : > { %v1113_v33 = vrot.slane %v5311_v58, 2  ;;  %v5315_v58 = vld [vmem:[#allocation59_spill] sm:$0xff] }
 0x160   : > { %v4241_v57 = vadd.f32 %v1701_v48, %v1624_v24  ;;  %v304_v48 = vld [vmem:[%s3253_s19 + $0xf0] sm:$0xff]  ;;  %v971_v24 = vadd.f32 %v3943_v14, %v3950_v21 }
 0x161   : > { %v1230_v9 = vpop.f32.mrf.mxu2  ;;  %v1551_v0 = vpop.f32.mrf.mxu0  ;;  %2993 = vmatmul.msk.f32.gmra.mxu1 %vm677_vm2, %v4237_v23  ;;  %v4255_v36 = vsel %vm1039_vm4, %v1111_v49, %v1113_v33  ;;  %v5314_v49 = vld [vmem:[#allocation60_spill] sm:$0xff]  ;;  %v1116_v33 = vrot.slane %v5315_v58, 2 }
 0x162   : > { %5310 = vst [vmem:[#allocation32_spill] sm:$0xff] %v4241_v57  ;;  %v1310_v15 = vadd.f32 %v1230_v9, %v968_v37 }
 0x163   : > { %2924 = vmatmul.msk.f32.gmra.mxu3 %vm677_vm2, %v3609_v61 }
 0x164   : > { %v1465_v51 = vadd.f32 %v1385_v38, %v1310_v15  ;;  %2959 = vmatmul.msk.f32.gmra.mxu0 %vm677_vm2, %v5312_v52  ;;  %v1115_v15 = vrot.slane %v5314_v49, 2 }
 0x166   : > { %v4250_v6 = vadd.f32 %v1545_v41, %v1465_v51  ;;  %2890 = vmatmul.msk.f32.gmra.mxu2 %vm677_vm2, %v4187_v5  ;;  %v1388_v20 = vpop.f32.mrf.mxu3  ;;  %v3153_v41 = vld [vmem:[%s5095_s1] ss:$0 sm:$0xff]  ;;  %v4280_v61 = vsel %vm1039_vm4, %v1115_v15, %v1116_v33 }
 0x167   : > { %v340_v51 = vmul.f32 %v3153_v41, %v304_v48  ;;  %v3154_v48 = vld [vmem:[%s5096_s2] ss:$0 sm:$0xff] }
 0x168   : > { %5313 = vst [vmem:[#allocation36_spill] sm:$0xff] %v4250_v6  ;;  %v305_v6 = vld [vmem:[%s3253_s19 + $0xf8] sm:$0xff]  ;;  %s4704_s19 = scalar_lea.vmem %s5099_s5, %s3137_s14 }
 0x169   : > { %v1233_v37 = vpop.f32.mrf.mxu2  ;;  %v1554_v38 = vpop.f32.mrf.mxu0  ;;  %2994 = vmatmul.msk.f32.gmra.mxu1 %vm677_vm2, %v4255_v36  ;;  %v341_v21 = vmul.f32 %v3153_v41, %v305_v6  ;;  %v974_v6 = vadd.f32 %v3962_v45, %v3969_v27 }
 0x16a   : > { %v1311_v9 = vadd.f32 %v1233_v37, %v971_v24  ;;  %v5316_v24 = vld [vmem:[#allocation58_spill] sm:$0xff] }
 0x16b   : > { %2925 = vmatmul.msk.f32.gmra.mxu3 %vm677_vm2, %v3676_v35  ;;  %v376_v35 = vadd.f32 %v3154_v48, %v340_v51  ;;  %v377_v57 = vadd.f32 %v3154_v48, %v341_v21  ;;  %v5319_v48 = vld [vmem:[#allocation62_spill] sm:$0xff] }
 0x16c   : > { %v1466_v14 = vadd.f32 %v1388_v20, %v1311_v9  ;;  %2960 = vmatmul.msk.f32.gmra.mxu0 %vm677_vm2, %v5316_v24 }
 0x16d   : > { %v408_v41 = vmax.f32 %v376_v35, 0.0 }
 0x16e   : > { %v4272_v37 = vadd.f32 %v1548_v53, %v1466_v14  ;;  %2891 = vmatmul.msk.f32.gmra.mxu2 %vm677_vm2, %v4204_v60  ;;  %v1391_v52 = vpop.f32.mrf.mxu3  ;;  %v409_v14 = vmax.f32 %v377_v57, 0.0  ;;  %v977_v57 = vadd.f32 %v3980_v19, %v3987_v30  ;;  %v5321_v30 = vld [vmem:[#allocation64_spill] sm:$0xff] }
 0x16f   : > { %v491_v45 = vrot.slane %v408_v41, 7 }
 0x170   : > { %5317 = vst [vmem:[#allocation35_spill] sm:$0xff] %v4272_v37  ;;  %v5318_v37 = vld [vmem:[#allocation63_spill] sm:$0xff] }
 0x171   : > { %v1236_v20 = vpop.f32.mrf.mxu2  ;;  %v1557_v53 = vpop.f32.mrf.mxu0  ;;  %2995 = vmatmul.msk.f32.gmra.mxu1 %vm677_vm2, %v4280_v61  ;;  %v1118_v51 = vrot.slane %v5318_v37, 2 }
 0x172   : > { %v1312_v9 = vadd.f32 %v1236_v20, %v974_v6  ;;  %v492_v6 = vrot.slane %v409_v14, 7 }
 0x173   : > { %2926 = vmatmul.msk.f32.gmra.mxu3 %vm677_vm2, %v5308_v3  ;;  %v4296_v35 = vsel %vm1039_vm4, %v1116_v33, %v1118_v51 }
 0x174   : > { %v1467_v21 = vadd.f32 %v1391_v52, %v1312_v9  ;;  %2961 = vmatmul.msk.f32.gmra.mxu0 %vm677_vm2, %v5319_v48  ;;  %v4301_v9 = vsel %vm443_vm1, 0.0, %v491_v45 }
 0x175   : > { %v1649_v33 = vrot.slane %v4301_v9, 2 }
 0x176   : > { %v4291_v15 = vadd.f32 %v1551_v0, %v1467_v21  ;;  %2892 = vmatmul.msk.f32.gmra.mxu2 %vm677_vm2, %v4220_v50  ;;  %v1394_v27 = vpop.f32.mrf.mxu3  ;;  %v4306_v0 = vsel %vm443_vm1, %v491_v45, %v492_v6  ;;  %v1490_v21 = vrot.slane %v4301_v9, 1 }
 0x177   : > { %v1650_v41 = vrot.slane %v4306_v0, 2  ;;  %v1491_v45 = vrot.slane %v4306_v0, 1 }
 0x178   : > { %5320 = vst [vmem:[#allocation42_spill] sm:$0xff] %v4291_v15 }
 0x179   : > { %v1239_v20 = vpop.f32.mrf.mxu2  ;;  %v1560_v52 = vpop.f32.mrf.mxu0  ;;  %2996 = vmatmul.msk.f32.gmra.mxu1 %vm677_vm2, %v4296_v35 }
 0x17a   : > { %v1313_v37 = vadd.f32 %v1239_v20, %v977_v57  ;;  %v4321_v57 = vsel %vm1039_vm4, %v1649_v33, %v1650_v41  ;;  %v980_v20 = vadd.f32 %v4002_v44, %v4006_v18 }
 0x17b   : > { %2927 = vmatmul.msk.f32.gmra.mxu3 %vm677_vm2, %v5314_v49  ;;  %5323 = vst [vmem:[#allocation44_spill] sm:$0xff] %v4321_v57 }
 0x17c   : > { %v1468_v19 = vadd.f32 %v1394_v27, %v1313_v37  ;;  %2962 = vmatmul.msk.f32.gmra.mxu0 %vm677_vm2, %v5321_v30 }
 0x17e   : > { %v4314_v14 = vadd.f32 %v1554_v38, %v1468_v19  ;;  %2893 = vmatmul.msk.f32.gmra.mxu2 %vm677_vm2, %v4237_v23  ;;  %v1397_v51 = vpop.f32.mrf.mxu3  ;;  %v4326_v38 = vsel %vm594_vm3, %v1490_v21, %v1491_v45  ;;  %v560_v19 = vsel %vm443_vm1, %v492_v6, 0.0  ;;  %v983_v6 = vadd.f32 %v4028_v8, %v4022_v4 }
 0x17f   : > { %v1493_v21 = vrot.slane %v560_v19, 1  ;;  %v986_v8 = vadd.f32 %v4048_v39, %v4041_v22 }
 0x180   : > { %5322 = vst [vmem:[#allocation45_spill] sm:$0xff] %v4314_v14  ;;  %v1652_v14 = vrot.slane %v560_v19, 2 }
 0x181   : > { %v1242_v27 = vpop.f32.mrf.mxu2  ;;  %v1563_v15 = vpop.f32.mrf.mxu0  ;;  %2997 = vmatmul.msk.f32.gmra.mxu1 %vm677_vm2, %v4321_v57 }
 0x182   : > { %v1314_v37 = vadd.f32 %v1242_v27, %v980_v20  ;;  %v4340_v20 = vsel %vm1039_vm4, %v1650_v41, %v1652_v14 }
 0x183   : > { %2928 = vmatmul.msk.f32.gmra.mxu3 %vm677_vm2, %v5315_v58 }
 0x184   : > { %v1469_v33 = vadd.f32 %v1397_v51, %v1314_v37  ;;  %2963 = vmatmul.msk.f32.gmra.mxu0 %vm677_vm2, %v4326_v38  ;;  %v4345_v51 = vsel %vm594_vm3, %v1491_v45, %v1493_v21 }
 0x186   : > { %v4335_v18 = vadd.f32 %v1557_v53, %v1469_v33  ;;  %2894 = vmatmul.msk.f32.gmra.mxu2 %vm677_vm2, %v4255_v36  ;;  %v1400_v44 = vpop.f32.mrf.mxu3  ;;  %v989_v33 = vadd.f32 %v4075_v54, %v4059_v1  ;;  %v5325_v54 = vld [vmem:[#allocation16_spill] sm:$0xff] }
 0x189   : > { %v1245_v27 = vpop.f32.mrf.mxu2  ;;  %v1566_v57 = vpop.f32.mrf.mxu0  ;;  %2998 = vmatmul.msk.f32.gmra.mxu1 %vm677_vm2, %v4340_v20 }
 0x18a   : > { %v1315_v58 = vadd.f32 %v1245_v27, %v983_v6  ;;  %v5324_v27 = vld [vmem:[#allocation66_spill] sm:$0xff] }
 0x18b   : > { %2929 = vmatmul.msk.f32.gmra.mxu3 %vm677_vm2, %v4301_v9 }
 0x18c   : > { %v1470_v53 = vadd.f32 %v1400_v44, %v1315_v58  ;;  %2964 = vmatmul.msk.f32.gmra.mxu0 %vm677_vm2, %v4345_v51 }
 0x18e   : > { %v4353_v41 = vadd.f32 %v1560_v52, %v1470_v53  ;;  %2895 = vmatmul.msk.f32.gmra.mxu2 %vm677_vm2, %v4280_v61  ;;  %v1403_v4 = vpop.f32.mrf.mxu3 }
 0x191   : > { %v1248_v14 = vpop.f32.mrf.mxu2  ;;  %v1569_v37 = vpop.f32.mrf.mxu0 }
 0x192   : > { %v1316_v45 = vadd.f32 %v1248_v14, %v986_v8  ;;  %v5326_v8 = vld [vmem:[#allocation69_spill] sm:$0xff] }
 0x193   : > { %2930 = vmatmul.msk.f32.gmra.mxu3 %vm677_vm2, %v4306_v0 }
 0x194   : > { %v1471_v19 = vadd.f32 %v1403_v4, %v1316_v45  ;;  %3069 = vmatmul.msk.f32.vlgmr.msra.gmra.mxu0 %vm677_vm2, %v3816_v28 }
 0x196   : > { %v4363_v58 = vadd.f32 %v1563_v15, %v1471_v19  ;;  %2896 = vmatmul.msk.f32.gmra.mxu2 %vm677_vm2, %v4296_v35  ;;  %v1406_v52 = vpop.f32.mrf.mxu3 }
 0x199   : > { %v1251_v39 = vpop.f32.mrf.mxu2  ;;  %v1572_v44 = vpop.f32.mrf.mxu0 }
 0x19a   : > { %v1317_v22 = vadd.f32 %v1251_v39, %v989_v33 }
 0x19b   : > { %3035 = vmatmul.msk.f32.vlgmr.msra.gmra.mxu3 %vm677_vm2, %v3404_v47 }
 0x19c   : > { %v1472_v21 = vadd.f32 %v1406_v52, %v1317_v22  ;;  %3070 = vmatmul.msk.f32.gmra.mxu0 %vm677_vm2, %v3837_v34  ;;  %v5327_v34 = vld [vmem:[#allocation13_spill] sm:$0xff]  ;;  %v5331_v22 = vld [vmem:[#allocation20_spill] sm:$0xff] }
 0x19d   : > { %v5329_v52 = vld [vmem:[#allocation21_spill] sm:$0xff] }
 0x19e   : > { %v4373_v28 = vadd.f32 %v1566_v57, %v1472_v21  ;;  %3001 = vmatmul.msk.f32.vlgmr.msra.gmra.mxu2 %vm677_vm2, %v3383_v25  ;;  %v1409_v15 = vpop.f32.mrf.mxu3  ;;  %v5328_v25 = vld [vmem:[#allocation68_spill] sm:$0xff] }
 0x1a1   : > { %v1254_v6 = vpop.f32.mrf.mxu2  ;;  %v1575_v1 = vpop.f32.mrf.mxu0 }
 0x1a2   : > { %v1318_v53 = vadd.f32 %v1254_v6, %v5324_v27 }
 0x1a3   : > { %3036 = vmatmul.msk.f32.gmra.mxu3 %vm677_vm2, %v5325_v54 }
 0x1a4   : > { %v1473_v4 = vadd.f32 %v1409_v15, %v1318_v53  ;;  %3071 = vmatmul.msk.f32.gmra.mxu0 %vm677_vm2, %v5326_v8  ;;  %v5332_v15 = vld [vmem:[#allocation70_spill] sm:$0xff]  ;;  %v5333_v53 = vld [vmem:[#allocation25_spill] sm:$0xff] }
 0x1a6   : > { %v4382_v47 = vadd.f32 %v1569_v37, %v1473_v4  ;;  %3002 = vmatmul.msk.f32.gmra.mxu2 %vm677_vm2, %v5327_v34  ;;  %v1412_v57 = vpop.f32.mrf.mxu3  ;;  %v5334_v4 = vld [vmem:[#allocation72_spill] sm:$0xff]  ;;  %v4404_v34 = vpop.f32.mrf.mxu1 }
 0x1a9   : > { %v1257_v14 = vpop.f32.mrf.mxu2  ;;  %v1578_v19 = vpop.f32.mrf.mxu0 }
 0x1aa   : > { %v1319_v45 = vadd.f32 %v1257_v14, %v5328_v25  ;;  %v5337_v14 = vld [vmem:[#allocation71_spill] sm:$0xff] }
 0x1ab   : > { %3037 = vmatmul.msk.f32.gmra.mxu3 %vm677_vm2, %v5329_v52  ;;  %v5338_v52 = vld [vmem:[#allocation30_spill] sm:$0xff] }
 0x1ac   : > { %v1474_v33 = vadd.f32 %v1412_v57, %v1319_v45  ;;  %3072 = vmatmul.msk.f32.gmra.mxu0 %vm677_vm2, %v3872_v11  ;;  %v5336_v11 = vld [vmem:[#allocation19_spill] sm:$0xff] }
 0x1ae   : > { %v4391_v39 = vadd.f32 %v1572_v44, %v1474_v33  ;;  %3003 = vmatmul.msk.f32.gmra.mxu2 %vm677_vm2, %v5331_v22  ;;  %v1415_v37 = vpop.f32.mrf.mxu3 }
 0x1b0   : > { %5330 = vst [vmem:[#allocation50_spill] sm:$0xff] %v4391_v39 }
 0x1b1   : > { %v1260_v21 = vpop.f32.mrf.mxu2  ;;  %v1581_v27 = vpop.f32.mrf.mxu0 }
 0x1b2   : > { %v1320_v6 = vadd.f32 %v1260_v21, %v5332_v15  ;;  %v5341_v15 = vld [vmem:[#allocation73_spill] sm:$0xff] }
 0x1b3   : > { %3038 = vmatmul.msk.f32.gmra.mxu3 %vm677_vm2, %v5333_v53 }
 0x1b4   : > { %v1475_v54 = vadd.f32 %v1415_v37, %v1320_v6  ;;  %3073 = vmatmul.msk.f32.gmra.mxu0 %vm677_vm2, %v5334_v4  ;;  %v5342_v4 = vld [vmem:[#allocation34_spill] sm:$0xff] }
 0x1b6   : > { %v4400_v8 = vadd.f32 %v1575_v1, %v1475_v54  ;;  %3004 = vmatmul.msk.f32.gmra.mxu2 %vm677_vm2, %v5336_v11  ;;  %v1418_v44 = vpop.f32.mrf.mxu3  ;;  %v5340_v1 = vld [vmem:[#allocation29_spill] sm:$0xff]  ;;  %v4416_v54 = vpop.f32.mrf.mxu1 }
 0x1b8   : > { %5335 = vst [vmem:[#allocation56_spill] sm:$0xff] %v4400_v8 }
 0x1b9   : > { %v1263_v57 = vpop.f32.mrf.mxu2  ;;  %v1584_v45 = vpop.f32.mrf.mxu0 }
 0x1ba   : > { %v1321_v25 = vadd.f32 %v1263_v57, %v5337_v14  ;;  %v5345_v14 = vld [vmem:[#allocation74_spill] sm:$0xff] }
 0x1bb   : > { %3039 = vmatmul.msk.f32.gmra.mxu3 %vm677_vm2, %v5338_v52 }
 0x1bc   : > { %v1476_v33 = vadd.f32 %v1418_v44, %v1321_v25  ;;  %3074 = vmatmul.msk.f32.gmra.mxu0 %vm677_vm2, %v3909_v7 }
 0x1be   : > { %v4411_v22 = vadd.f32 %v1578_v19, %v1476_v33  ;;  %3005 = vmatmul.msk.f32.gmra.mxu2 %vm677_vm2, %v5340_v1  ;;  %v1421_v37 = vpop.f32.mrf.mxu3  ;;  %v5344_v19 = vld [vmem:[#allocation28_spill] sm:$0xff]  ;;  %v5346_v33 = vld [vmem:[#allocation39_spill] sm:$0xff] }
 0x1c0   : > { %5339 = vst [vmem:[#allocation60_spill] sm:$0xff] %v4411_v22 }
 0x1c1   : > { %v1266_v21 = vpop.f32.mrf.mxu2  ;;  %v1587_v53 = vpop.f32.mrf.mxu0 }
 0x1c2   : > { %v1322_v6 = vadd.f32 %v1266_v21, %v5341_v15  ;;  %v4429_v21 = vpop.f32.mrf.mxu1 }
 0x1c3   : > { %3040 = vmatmul.msk.f32.gmra.mxu3 %vm677_vm2, %v5342_v4  ;;  %v5350_v4 = vld [vmem:[#allocation75_spill] sm:$0xff] }
 0x1c4   : > { %v1477_v11 = vadd.f32 %v1421_v37, %v1322_v6  ;;  %3075 = vmatmul.msk.f32.gmra.mxu0 %vm677_vm2, %v3928_v40  ;;  %v5347_v37 = vld [vmem:[#allocation76_spill] sm:$0xff] }
 0x1c6   : > { %v4422_v7 = vadd.f32 %v1581_v27, %v1477_v11  ;;  %3006 = vmatmul.msk.f32.gmra.mxu2 %vm677_vm2, %v5344_v19  ;;  %v1424_v44 = vpop.f32.mrf.mxu3  ;;  %v5349_v27 = vld [vmem:[#allocation38_spill] sm:$0xff] }
 0x1c8   : > { %5343 = vst [vmem:[#allocation58_spill] sm:$0xff] %v4422_v7 }
 0x1c9   : > { %v1269_v57 = vpop.f32.mrf.mxu2  ;;  %v1590_v52 = vpop.f32.mrf.mxu0 }
 0x1ca   : > { %v1323_v25 = vadd.f32 %v1269_v57, %v5345_v14  ;;  %v5351_v57 = vld [vmem:[#allocation43_spill] sm:$0xff] }
 0x1cb   : > { %3041 = vmatmul.msk.f32.gmra.mxu3 %vm677_vm2, %v5346_v33  ;;  %v5354_v33 = vld [vmem:[#allocation37_spill] sm:$0xff] }
 0x1cc   : > { %v1478_v1 = vadd.f32 %v1424_v44, %v1323_v25  ;;  %3076 = vmatmul.msk.f32.gmra.mxu0 %vm677_vm2, %v5347_v37  ;;  %v5352_v44 = vld [vmem:[#allocation78_spill] sm:$0xff] }
 0x1ce   : > { %v4433_v40 = vadd.f32 %v1584_v45, %v1478_v1  ;;  %3007 = vmatmul.msk.f32.gmra.mxu2 %vm677_vm2, %v5349_v27  ;;  %v1427_v15 = vpop.f32.mrf.mxu3  ;;  %v4446_v1 = vpop.f32.mrf.mxu1  ;;  %v5355_v27 = vld [vmem:[#allocation77_spill] sm:$0xff] }
 0x1d0   : > { %5348 = vst [vmem:[#allocation63_spill] sm:$0xff] %v4433_v40 }
 0x1d1   : > { %v1272_v6 = vpop.f32.mrf.mxu2  ;;  %v1593_v19 = vpop.f32.mrf.mxu0 }
 0x1d2   : > { %v1324_v11 = vadd.f32 %v1272_v6, %v5350_v4  ;;  %v5356_v4 = vld [vmem:[#allocation48_spill] sm:$0xff] }
 0x1d3   : > { %3042 = vmatmul.msk.f32.gmra.mxu3 %vm677_vm2, %v5351_v57 }
 0x1d4   : > { %v1479_v14 = vadd.f32 %v1427_v15, %v1324_v11  ;;  %3077 = vmatmul.msk.f32.gmra.mxu0 %vm677_vm2, %v5352_v44  ;;  %v5357_v15 = vld [vmem:[#allocation80_spill] sm:$0xff] }
 0x1d6   : > { %v4442_v25 = vadd.f32 %v1587_v53, %v1479_v14  ;;  %3008 = vmatmul.msk.f32.gmra.mxu2 %vm677_vm2, %v5354_v33  ;;  %v1430_v45 = vpop.f32.mrf.mxu3  ;;  %v5359_v53 = vld [vmem:[#allocation47_spill] sm:$0xff]  ;;  %v4457_v44 = vpop.f32.mrf.mxu1 }
 0x1d8   : > { %5353 = vst [vmem:[#allocation62_spill] sm:$0xff] %v4442_v25  ;;  %v5360_v25 = vld [vmem:[#allocation79_spill] sm:$0xff] }
 0x1d9   : > { %v1275_v37 = vpop.f32.mrf.mxu2  ;;  %v1596_v6 = vpop.f32.mrf.mxu0 }
 0x1da   : > { %v1325_v40 = vadd.f32 %v1275_v37, %v5355_v27  ;;  %v5361_v27 = vld [vmem:[#allocation52_spill] sm:$0xff] }
 0x1db   : > { %3043 = vmatmul.msk.f32.gmra.mxu3 %vm677_vm2, %v5356_v4 }
 0x1dc   : > { %v1480_v57 = vadd.f32 %v1430_v45, %v1325_v40  ;;  %3078 = vmatmul.msk.f32.gmra.mxu0 %vm677_vm2, %v5357_v15  ;;  %v5362_v40 = vld [vmem:[#allocation82_spill] sm:$0xff] }
 0x1de   : > { %v4453_v11 = vadd.f32 %v1590_v52, %v1480_v57  ;;  %3009 = vmatmul.msk.f32.gmra.mxu2 %vm677_vm2, %v5359_v53  ;;  %v1433_v14 = vpop.f32.mrf.mxu3  ;;  %v5364_v52 = vld [vmem:[#allocation46_spill] sm:$0xff]  ;;  %v5365_v53 = vld [vmem:[#allocation81_spill] sm:$0xff]  ;;  %v4469_v8 = vpop.f32.mrf.mxu1 }
 0x1e0   : > { %5358 = vst [vmem:[#allocation64_spill] sm:$0xff] %v4453_v11 }
 0x1e1   : > { %v1278_v33 = vpop.f32.mrf.mxu2  ;;  %v1599_v37 = vpop.f32.mrf.mxu0 }
 0x1e2   : > { %v1326_v7 = vadd.f32 %v1278_v33, %v5360_v25  ;;  %v5366_v25 = vld [vmem:[#allocation57_spill] sm:$0xff] }
 0x1e3   : > { %3044 = vmatmul.msk.f32.gmra.mxu3 %vm677_vm2, %v5361_v27 }
 0x1e4   : > { %v1481_v4 = vadd.f32 %v1433_v14, %v1326_v7  ;;  %3079 = vmatmul.msk.f32.gmra.mxu0 %vm677_vm2, %v5362_v40  ;;  %v5367_v7 = vld [vmem:[#allocation84_spill] sm:$0xff]  ;;  %v5370_v40 = vld [vmem:[#allocation83_spill] sm:$0xff] }
 0x1e6   : > { %v4464_v45 = vadd.f32 %v1593_v19, %v1481_v4  ;;  %3010 = vmatmul.msk.f32.gmra.mxu2 %vm677_vm2, %v5364_v52  ;;  %v1436_v57 = vpop.f32.mrf.mxu3  ;;  %v5369_v19 = vld [vmem:[#allocation55_spill] sm:$0xff]  ;;  %v4482_v39 = vpop.f32.mrf.mxu1 }
 0x1e8   : > { %5363 = vst [vmem:[#allocation66_spill] sm:$0xff] %v4464_v45 }
 0x1e9   : > { %v1281_v15 = vpop.f32.mrf.mxu2  ;;  %v1602_v22 = vpop.f32.mrf.mxu0 }
 0x1ea   : > { %v1327_v11 = vadd.f32 %v1281_v15, %v5365_v53  ;;  %v5371_v53 = vld [vmem:[#allocation61_spill] sm:$0xff] }
 0x1eb   : > { %3045 = vmatmul.msk.f32.gmra.mxu3 %vm677_vm2, %v5366_v25 }
 0x1ec   : > { %v1482_v33 = vadd.f32 %v1436_v57, %v1327_v11  ;;  %3080 = vmatmul.msk.f32.gmra.mxu0 %vm677_vm2, %v5367_v7  ;;  %v5372_v11 = vld [vmem:[#allocation86_spill] sm:$0xff]  ;;  %v5375_v7 = vld [vmem:[#allocation85_spill] sm:$0xff] }
 0x1ee   : > { %v4475_v14 = vadd.f32 %v1596_v6, %v1482_v33  ;;  %3011 = vmatmul.msk.f32.gmra.mxu2 %vm677_vm2, %v5369_v19  ;;  %v1439_v27 = vpop.f32.mrf.mxu3  ;;  %v5374_v6 = vld [vmem:[#allocation54_spill] sm:$0xff] }
 0x1f0   : > { %5368 = vst [vmem:[#allocation16_spill] sm:$0xff] %v4475_v14 }
 0x1f1   : > { %v1284_v4 = vpop.f32.mrf.mxu2  ;;  %v1605_v15 = vpop.f32.mrf.mxu0 }
 0x1f2   : > { %v1328_v52 = vadd.f32 %v1284_v4, %v5370_v40  ;;  %v5376_v40 = vld [vmem:[#allocation8_spill] sm:$0xff] }
 0x1f3   : > { %3046 = vmatmul.msk.f32.gmra.mxu3 %vm677_vm2, %v5371_v53 }
 0x1f4   : > { %v1483_v45 = vadd.f32 %v1439_v27, %v1328_v52  ;;  %3081 = vmatmul.msk.f32.gmra.mxu0 %vm677_vm2, %v5372_v11  ;;  %v5378_v52 = vld [vmem:[#allocation6_spill] sm:$0xff] }
 0x1f6   : > { %v4486_v57 = vadd.f32 %v1599_v37, %v1483_v45  ;;  %3012 = vmatmul.msk.f32.gmra.mxu2 %vm677_vm2, %v5374_v6  ;;  %v1442_v25 = vpop.f32.mrf.mxu3  ;;  %v4499_v45 = vpop.f32.mrf.mxu1  ;;  %v5379_v6 = vld [vmem:[#allocation87_spill] sm:$0xff] }
 0x1f8   : > { %5373 = vst [vmem:[#allocation69_spill] sm:$0xff] %v4486_v57 }
 0x1f9   : > { %v1287_v33 = vpop.f32.mrf.mxu2  ;;  %v1608_v4 = vpop.f32.mrf.mxu0 }
 0x1fa   : > { %v1329_v19 = vadd.f32 %v1287_v33, %v5375_v7  ;;  %v5380_v7 = vld [vmem:[#allocation9_spill] sm:$0xff] }
 0x1fb   : > { %3047 = vmatmul.msk.f32.gmra.mxu3 %vm677_vm2, %v5376_v40 }
 0x1fc   : > { %v1484_v53 = vadd.f32 %v1442_v25, %v1329_v19  ;;  %3082 = vmatmul.msk.f32.gmra.mxu0 %vm677_vm2, %v4055_v12 }
 0x1fe   : > { %v4495_v27 = vadd.f32 %v1602_v22, %v1484_v53  ;;  %3013 = vmatmul.msk.f32.gmra.mxu2 %vm677_vm2, %v5378_v52  ;;  %v1445_v37 = vpop.f32.mrf.mxu3  ;;  %v5382_v22 = vld [vmem:[#allocation5_spill] sm:$0xff]  ;;  %v4510_v19 = vpop.f32.mrf.mxu1  ;;  %v5383_v52 = vld [vmem:[#allocation88_spill] sm:$0xff] }
 0x200   : > { %5377 = vst [vmem:[#allocation13_spill] sm:$0xff] %v4495_v27 }
 0x201   : > { %v1290_v11 = vpop.f32.mrf.mxu2  ;;  %v1611_v33 = vpop.f32.mrf.mxu0 }
 0x202   : > { %v1330_v57 = vadd.f32 %v1290_v11, %v5379_v6  ;;  %v5384_v6 = vld [vmem:[#allocation12_spill] sm:$0xff] }
 0x203   : > { %3048 = vmatmul.msk.f32.gmra.mxu3 %vm677_vm2, %v5380_v7 }
 0x204   : > { %v1485_v40 = vadd.f32 %v1445_v37, %v1330_v57  ;;  %3083 = vmatmul.msk.f32.gmra.mxu0 %vm677_vm2, %v4078_v62 }
 0x206   : > { %v4506_v12 = vadd.f32 %v1605_v15, %v1485_v40  ;;  %3014 = vmatmul.msk.f32.gmra.mxu2 %vm677_vm2, %v5382_v22  ;;  %v1448_v25 = vpop.f32.mrf.mxu3  ;;  %v5386_v15 = vld [vmem:[#allocation11_spill] sm:$0xff]  ;;  %v5387_v40 = vld [vmem:[#allocation89_spill] sm:$0xff]  ;;  %v4522_v14 = vpop.f32.mrf.mxu1 }
 0x208   : > { %5381 = vst [vmem:[#allocation68_spill] sm:$0xff] %v4506_v12 }
 0x209   : > { %v1293_v53 = vpop.f32.mrf.mxu2  ;;  %v1614_v11 = vpop.f32.mrf.mxu0 }
 0x20a   : > { %v1331_v27 = vadd.f32 %v1293_v53, %v5383_v52  ;;  %v5388_v53 = vld [vmem:[#allocation14_spill] sm:$0xff] }
 0x20b   : > { %3049 = vmatmul.msk.f32.gmra.mxu3 %vm677_vm2, %v5384_v6  ;;  %v5390_v6 = vld [vmem:[#allocation90_spill] sm:$0xff] }
 0x20c   : > { %v1486_v7 = vadd.f32 %v1448_v25, %v1331_v27  ;;  %3084 = vmatmul.msk.f32.gmra.mxu0 %vm677_vm2, %v4092_v63 }
 0x20e   : > { %v4517_v62 = vadd.f32 %v1608_v4, %v1486_v7  ;;  %3015 = vmatmul.msk.f32.gmra.mxu2 %vm677_vm2, %v5386_v15  ;;  %v1451_v57 = vpop.f32.mrf.mxu3  ;;  %v5389_v4 = vld [vmem:[#allocation10_spill] sm:$0xff] }
 0x210   : > { %5385 = vst [vmem:[#allocation21_spill] sm:$0xff] %v4517_v62  ;;  %v4535_v62 = vpop.f32.mrf.mxu1 }
 0x211   : > { %v1296_v37 = vpop.f32.mrf.mxu2  ;;  %v2130_v12 = vpop.f32.mrf.mxu0 }
 0x212   : > { %v1332_v22 = vadd.f32 %v1296_v37, %v5387_v40  ;;  %v5391_v37 = vld [vmem:[#allocation17_spill] sm:$0xff] }
 0x213   : > { %3050 = vmatmul.msk.f32.gmra.mxu3 %vm677_vm2, %v5388_v53  ;;  %v5393_v53 = vld [vmem:[#allocation18_spill] sm:$0xff] }
 0x214   : > { %v1487_v52 = vadd.f32 %v1451_v57, %v1332_v22  ;;  %3085 = vmatmul.msk.f32.gmra.mxu0 %vm677_vm2, %v4107_v46 }
 0x216   : > { %v4528_v63 = vadd.f32 %v1611_v33, %v1487_v52  ;;  %3016 = vmatmul.msk.f32.gmra.mxu2 %vm677_vm2, %v5389_v4  ;;  %v1454_v27 = vpop.f32.mrf.mxu3  ;;  %v5392_v33 = vld [vmem:[#allocation15_spill] sm:$0xff] }
 0x219   : > { %v1299_v25 = vpop.f32.mrf.mxu2  ;;  %v2133_v15 = vpop.f32.mrf.mxu0 }
 0x21a   : > { %v1333_v7 = vadd.f32 %v1299_v25, %v5390_v6  ;;  %v5394_v25 = vld [vmem:[#allocation22_spill] sm:$0xff] }
 0x21b   : > { %3051 = vmatmul.msk.f32.gmra.mxu3 %vm677_vm2, %v5391_v37 }
 0x21c   : > { %v1488_v40 = vadd.f32 %v1454_v27, %v1333_v7  ;;  %3086 = vmatmul.msk.f32.gmra.mxu0 %vm677_vm2, %v4121_v59 }
 0x21e   : > { %v4539_v46 = vadd.f32 %v1614_v11, %v1488_v40  ;;  %3017 = vmatmul.msk.f32.gmra.mxu2 %vm677_vm2, %v5392_v33  ;;  %v1980_v57 = vpop.f32.mrf.mxu3  ;;  %v4550_v11 = vpop.f32.mrf.mxu1 }
 0x221   : > { %v1830_v22 = vpop.f32.mrf.mxu2  ;;  %v2136_v4 = vpop.f32.mrf.mxu0 }
 0x222   : > { %v1926_v52 = vadd.f32 %v1830_v22, %v5393_v53 }
 0x223   : > { %3052 = vmatmul.msk.f32.gmra.mxu3 %vm677_vm2, %v5394_v25 }
 0x224   : > { %v2076_v6 = vadd.f32 %v1980_v57, %v1926_v52  ;;  %3087 = vmatmul.msk.f32.gmra.mxu0 %vm677_vm2, %v4138_v26 }
 0x226   : > { %v2226_v27 = vadd.f32 %v2130_v12, %v2076_v6  ;;  %3018 = vmatmul.msk.f32.gmra.mxu2 %vm677_vm2, %v3417_v55  ;;  %v1983_v59 = vpop.f32.mrf.mxu3  ;;  %v5395_v12 = vld [vmem:[#allocation24_spill] sm:$0xff]  ;;  %v4560_v53 = vpop.f32.mrf.mxu1 }
 0x228   : > { %v2258_v7 = vmax.f32 %v2226_v27, 0.0  ;;  %v5397_v27 = vld [vmem:[#allocation31_spill] sm:$0xff] }
 0x229   : > { %v1833_v37 = vpop.f32.mrf.mxu2  ;;  %v2139_v33 = vpop.f32.mrf.mxu0 }
 0x22a   : > { %v1927_v40 = vadd.f32 %v1833_v37, %v4142_v29  ;;  %3102 = vmatmul.msk.f32.vlgmr.msra.gmra.mxu1 %vm677_vm2, %v2258_v7  ;;  %v5396_v29 = vld [vmem:[#allocation23_spill] sm:$0xff] }
 0x22b   : > { %3053 = vmatmul.msk.f32.gmra.mxu3 %vm677_vm2, %v5295_v2 }
 0x22c   : > { %v2077_v57 = vadd.f32 %v1983_v59, %v1927_v40  ;;  %3088 = vmatmul.msk.f32.gmra.mxu0 %vm677_vm2, %v4154_v42 }
 0x22e   : > { %v2227_v26 = vadd.f32 %v2133_v15, %v2077_v57  ;;  %3019 = vmatmul.msk.f32.gmra.mxu2 %vm677_vm2, %v5395_v12  ;;  %v1986_v55 = vpop.f32.mrf.mxu3  ;;  %v4572_v57 = vpop.f32.mrf.mxu1 }
 0x230   : > { %v2259_v22 = vmax.f32 %v2227_v26, 0.0 }
 0x231   : > { %v1836_v52 = vpop.f32.mrf.mxu2  ;;  %v2142_v6 = vpop.f32.mrf.mxu0 }
 0x232   : > { %v1928_v25 = vadd.f32 %v1836_v52, %v5396_v29  ;;  %3103 = vmatmul.msk.f32.gmra.mxu1 %vm677_vm2, %v2259_v22  ;;  %v5400_v29 = vld [vmem:[#allocation40_spill] sm:$0xff] }
 0x233   : > { %3054 = vmatmul.msk.f32.gmra.mxu3 %vm677_vm2, %v5397_v27 }
 0x234   : > { %v2078_v2 = vadd.f32 %v1986_v55, %v1928_v25  ;;  %3089 = vmatmul.msk.f32.gmra.mxu0 %vm677_vm2, %v4171_v10 }
 0x236   : > { %v2228_v42 = vadd.f32 %v2136_v4, %v2078_v2  ;;  %3020 = vmatmul.msk.f32.gmra.mxu2 %vm677_vm2, %v5292_v43  ;;  %v1989_v15 = vpop.f32.mrf.mxu3  ;;  %v5398_v4 = vld [vmem:[#allocation33_spill] sm:$0xff]  ;;  %v4584_v25 = vpop.f32.mrf.mxu1 }
 0x238   : > { %v2260_v59 = vmax.f32 %v2228_v42, 0.0 }
 0x239   : > { %v1839_v7 = vpop.f32.mrf.mxu2  ;;  %v2145_v40 = vpop.f32.mrf.mxu0 }
 0x23a   : > { %v1929_v37 = vadd.f32 %v1839_v7, %v4175_v32  ;;  %3104 = vmatmul.msk.f32.gmra.mxu1 %vm677_vm2, %v2260_v59  ;;  %v5399_v32 = vld [vmem:[#allocation27_spill] sm:$0xff] }
 0x23b   : > { %3055 = vmatmul.msk.f32.gmra.mxu3 %vm677_vm2, %v5301_v31 }
 0x23c   : > { %v2079_v26 = vadd.f32 %v1989_v15, %v1929_v37  ;;  %3090 = vmatmul.msk.f32.gmra.mxu0 %vm677_vm2, %v4187_v5 }
 0x23e   : > { %v2229_v10 = vadd.f32 %v2139_v33, %v2079_v26  ;;  %3021 = vmatmul.msk.f32.gmra.mxu2 %vm677_vm2, %v5398_v4  ;;  %v1992_v43 = vpop.f32.mrf.mxu3  ;;  %v5402_v4 = vld [vmem:[#allocation49_spill] sm:$0xff] }
 0x240   : > { %v2261_v12 = vmax.f32 %v2229_v10, 0.0 }
 0x241   : > { %v1842_v55 = vpop.f32.mrf.mxu2  ;;  %v2148_v52 = vpop.f32.mrf.mxu0 }
 0x242   : > { %v1930_v22 = vadd.f32 %v1842_v55, %v5399_v32  ;;  %3105 = vmatmul.msk.f32.gmra.mxu1 %vm677_vm2, %v2261_v12  ;;  %v5404_v32 = vld [vmem:[#allocation32_spill] sm:$0xff] }
 0x243   : > { %3056 = vmatmul.msk.f32.gmra.mxu3 %vm677_vm2, %v5400_v29 }
 0x244   : > { %v2080_v31 = vadd.f32 %v1992_v43, %v1930_v22  ;;  %3091 = vmatmul.msk.f32.gmra.mxu0 %vm677_vm2, %v4204_v60 }
 0x246   : > { %v2230_v5 = vadd.f32 %v2142_v6, %v2080_v31  ;;  %3022 = vmatmul.msk.f32.gmra.mxu2 %vm677_vm2, %v5298_v16  ;;  %v1995_v33 = vpop.f32.mrf.mxu3  ;;  %v4598_v6 = vpop.f32.mrf.mxu1  ;;  %v5405_v31 = vld [vmem:[#allocation53_spill] sm:$0xff] }
 0x248   : > { %v2262_v27 = vmax.f32 %v2230_v5, 0.0 }
 0x249   : > { %v1845_v2 = vpop.f32.mrf.mxu2  ;;  %v2151_v15 = vpop.f32.mrf.mxu0 }
 0x24a   : > { %v1931_v42 = vadd.f32 %v1845_v2, %v4208_v17  ;;  %3106 = vmatmul.msk.f32.gmra.mxu1 %vm677_vm2, %v2262_v27  ;;  %v5401_v17 = vld [vmem:[#allocation26_spill] sm:$0xff]  ;;  %v5407_v27 = vld [vmem:[#allocation36_spill] sm:$0xff] }
 0x24b   : > { %3057 = vmatmul.msk.f32.gmra.mxu3 %vm677_vm2, %v5306_v13  ;;  %v1784_v2 = vadd.f32 %v4404_v34, %v5407_v27 }
 0x24c   : > { %v2081_v59 = vadd.f32 %v1995_v33, %v1931_v42  ;;  %3092 = vmatmul.msk.f32.gmra.mxu0 %vm677_vm2, %v4220_v50 }
 0x24e   : > { %v2231_v60 = vadd.f32 %v2145_v40, %v2081_v59  ;;  %3023 = vmatmul.msk.f32.gmra.mxu2 %vm677_vm2, %v5303_v56  ;;  %v1998_v16 = vpop.f32.mrf.mxu3  ;;  %v5403_v40 = vld [vmem:[#allocation41_spill] sm:$0xff]  ;;  %v4608_v12 = vpop.f32.mrf.mxu1 }
 0x250   : > { %v2263_v7 = vmax.f32 %v2231_v60, 0.0 }
 0x251   : > { %v1848_v37 = vpop.f32.mrf.mxu2  ;;  %v2154_v10 = vpop.f32.mrf.mxu0 }
 0x252   : > { %v1932_v26 = vadd.f32 %v1848_v37, %v5401_v17  ;;  %3107 = vmatmul.msk.f32.gmra.mxu1 %vm677_vm2, %v2263_v7  ;;  %v5408_v37 = vld [vmem:[#allocation35_spill] sm:$0xff] }
 0x253   : > { %3058 = vmatmul.msk.f32.gmra.mxu3 %vm677_vm2, %v5402_v4  ;;  %v1785_v17 = vadd.f32 %v4416_v54, %v5408_v37  ;;  %v5409_v54 = vld [vmem:[#allocation42_spill] sm:$0xff] }
 0x254   : > { %v2082_v13 = vadd.f32 %v1998_v16, %v1932_v26  ;;  %3093 = vmatmul.msk.f32.gmra.mxu0 %vm677_vm2, %v4237_v23 }
 0x256   : > { %v2232_v50 = vadd.f32 %v2148_v52, %v2082_v13  ;;  %3024 = vmatmul.msk.f32.gmra.mxu2 %vm677_vm2, %v5403_v40  ;;  %v2001_v56 = vpop.f32.mrf.mxu3  ;;  %v5406_v52 = vld [vmem:[#allocation51_spill] sm:$0xff]  ;;  %v4621_v7 = vpop.f32.mrf.mxu1 }
 0x258   : > { %v2264_v43 = vmax.f32 %v2232_v50, 0.0 }
 0x259   : > { %v1851_v55 = vpop.f32.mrf.mxu2  ;;  %v2157_v29 = vpop.f32.mrf.mxu0 }
 0x25a   : > { %v1933_v22 = vadd.f32 %v1851_v55, %v5404_v32  ;;  %3108 = vmatmul.msk.f32.gmra.mxu1 %vm677_vm2, %v2264_v43 }
 0x25b   : > { %3059 = vmatmul.msk.f32.gmra.mxu3 %vm677_vm2, %v5405_v31 }
 0x25c   : > { %v2083_v5 = vadd.f32 %v2001_v56, %v1933_v22  ;;  %3094 = vmatmul.msk.f32.gmra.mxu0 %vm677_vm2, %v4255_v36  ;;  %v5410_v22 = vld [vmem:[#allocation44_spill] sm:$0xff] }
 0x25e   : > { %v2233_v23 = vadd.f32 %v2151_v15, %v2083_v5  ;;  %3025 = vmatmul.msk.f32.gmra.mxu2 %vm677_vm2, %v5406_v52  ;;  %v2004_v33 = vpop.f32.mrf.mxu3  ;;  %v4634_v40 = vpop.f32.mrf.mxu1 }
 0x260   : > { %v2265_v42 = vmax.f32 %v2233_v23, 0.0 }
 0x261   : > { %v1854_v59 = vpop.f32.mrf.mxu2  ;;  %v2160_v16 = vpop.f32.mrf.mxu0 }
 0x262   : > { %v1934_v60 = vadd.f32 %v1854_v59, %v1784_v2  ;;  %3109 = vmatmul.msk.f32.gmra.mxu1 %vm677_vm2, %v2265_v42 }
 0x263   : > { %3060 = vmatmul.msk.f32.gmra.mxu3 %vm677_vm2, %v5316_v24 }
 0x264   : > { %v2084_v36 = vadd.f32 %v2004_v33, %v1934_v60  ;;  %3095 = vmatmul.msk.f32.gmra.mxu0 %vm677_vm2, %v4280_v61 }
 0x266   : > { %v2234_v15 = vadd.f32 %v2154_v10, %v2084_v36  ;;  %3026 = vmatmul.msk.f32.gmra.mxu2 %vm677_vm2, %v5308_v3  ;;  %v2007_v34 = vpop.f32.mrf.mxu3  ;;  %v1786_v10 = vadd.f32 %v4429_v21, %v5409_v54  ;;  %v4649_v31 = vpop.f32.mrf.mxu1  ;;  %v5412_v21 = vld [vmem:[#allocation45_spill] sm:$0xff] }
 0x267   : > { %v1787_v5 = vadd.f32 %v4446_v1, %v5412_v21  ;;  %v1788_v1 = vadd.f32 %v4457_v44, %v4335_v18  ;;  %v1789_v44 = vadd.f32 %v4469_v8, %v4353_v41  ;;  %v1790_v8 = vadd.f32 %v4482_v39, %v4363_v58 }
 0x268   : > { %v2266_v26 = vmax.f32 %v2234_v15, 0.0  ;;  %v5413_v15 = vld [vmem:[#allocation65_spill] sm:$0xff]  ;;  %v1791_v58 = vadd.f32 %v4499_v45, %v4373_v28 }
 0x269   : > { %v1857_v4 = vpop.f32.mrf.mxu2  ;;  %v2163_v50 = vpop.f32.mrf.mxu0 }
 0x26a   : > { %v1935_v13 = vadd.f32 %v1857_v4, %v1785_v17  ;;  %3110 = vmatmul.msk.f32.gmra.mxu1 %vm677_vm2, %v2266_v26 }
 0x26b   : > { %3061 = vmatmul.msk.f32.gmra.mxu3 %vm677_vm2, %v5319_v48 }
 0x26c   : > { %v2085_v24 = vadd.f32 %v2007_v34, %v1935_v13  ;;  %3096 = vmatmul.msk.f32.gmra.mxu0 %vm677_vm2, %v4296_v35 }
 0x26e   : > { %v2235_v61 = vadd.f32 %v2157_v29, %v2085_v24  ;;  %3027 = vmatmul.msk.f32.gmra.mxu2 %vm677_vm2, %v5314_v49  ;;  %v2010_v3 = vpop.f32.mrf.mxu3  ;;  %v5411_v29 = vld [vmem:[#allocation59_spill] sm:$0xff]  ;;  %v4662_v60 = vpop.f32.mrf.mxu1 }
 0x26f   : > { %v5416_v24 = vld [vmem:[#allocation3_spill] sm:$0xff] }
 0x270   : > { %v2267_v56 = vmax.f32 %v2235_v61, 0.0 }
 0x271   : > { %v1860_v43 = vpop.f32.mrf.mxu2  ;;  %v2166_v48 = vpop.f32.mrf.mxu0 }
 0x272   : > { %v1936_v55 = vadd.f32 %v1860_v43, %v1786_v10  ;;  %3111 = vmatmul.msk.f32.gmra.mxu1 %vm677_vm2, %v2267_v56  ;;  %v5417_v56 = vld [vmem:[#allocation7_spill] sm:$0xff] }
 0x273   : > { %3062 = vmatmul.msk.f32.gmra.mxu3 %vm677_vm2, %v5321_v30 }
 0x274   : > { %v2086_v32 = vadd.f32 %v2010_v3, %v1936_v55  ;;  %3097 = vmatmul.msk.f32.gmra.mxu0 %vm677_vm2, %v5410_v22 }
 0x276   : > { %v2236_v35 = vadd.f32 %v2160_v16, %v2086_v32  ;;  %3028 = vmatmul.msk.f32.gmra.mxu2 %vm677_vm2, %v5411_v29  ;;  %v2013_v49 = vpop.f32.mrf.mxu3  ;;  %v4674_v4 = vpop.f32.mrf.mxu1  ;;  %v5418_v32 = vld [vmem:[#allocation2_spill] sm:$0xff] }
 0x278   : > { %v2268_v23 = vmax.f32 %v2236_v35, 0.0 }
 0x279   : > { %v1863_v52 = vpop.f32.mrf.mxu2  ;;  %v2169_v30 = vpop.f32.mrf.mxu0 }
 0x27a   : > { %v1937_v33 = vadd.f32 %v1863_v52, %v1787_v5  ;;  %3112 = vmatmul.msk.f32.gmra.mxu1 %vm677_vm2, %v2268_v23 }
 0x27b   : > { %3063 = vmatmul.msk.f32.gmra.mxu3 %vm677_vm2, %v4326_v38 }
 0x27c   : > { %v2087_v27 = vadd.f32 %v2013_v49, %v1937_v33  ;;  %3098 = vmatmul.msk.f32.gmra.mxu0 %vm677_vm2, %v4340_v20  ;;  %v1792_v33 = vadd.f32 %v4510_v19, %v4382_v47  ;;  %v5419_v47 = vld [vmem:[#allocation50_spill] sm:$0xff] }
 0x27d   : > { %v1793_v19 = vadd.f32 %v4522_v14, %v5419_v47  ;;  %v5424_v47 = vld [vmem:[#allocation62_spill] sm:$0xff] }
 0x27e   : > { %v2237_v2 = vadd.f32 %v2163_v50, %v2087_v27  ;;  %3029 = vmatmul.msk.f32.gmra.mxu2 %vm677_vm2, %v4301_v9  ;;  %v2016_v42 = vpop.f32.mrf.mxu3  ;;  %v5415_v50 = vld [vmem:[#allocation67_spill] sm:$0xff]  ;;  %v4687_v55 = vpop.f32.mrf.mxu1 }
 0x280   : > { %v2269_v59 = vmax.f32 %v2237_v2, 0.0 }
 0x281   : > { %v1866_v16 = vpop.f32.mrf.mxu2  ;;  %v2172_v38 = vpop.f32.mrf.mxu0 }
 0x282   : > { %v1938_v36 = vadd.f32 %v1866_v16, %v1788_v1  ;;  %3113 = vmatmul.msk.f32.gmra.mxu1 %vm677_vm2, %v2269_v59 }
 0x283   : > { %3064 = vmatmul.msk.f32.gmra.mxu3 %vm677_vm2, %v4345_v51  ;;  %v5414_v51 = vld [vmem:[#allocation4_spill] sm:$0xff] }
 0x284   : > { %v2088_v20 = vadd.f32 %v2016_v42, %v1938_v36  ;;  %3099 = vmatmul.msk.f32.gmra.mxu0 %vm677_vm2, %v5413_v15 }
 0x286   : > { %v2238_v9 = vadd.f32 %v2166_v48, %v2088_v20  ;;  %3030 = vmatmul.msk.f32.gmra.mxu2 %vm677_vm2, %v4306_v0  ;;  %v2019_v18 = vpop.f32.mrf.mxu3  ;;  %v4694_v52 = vpop.f32.mrf.mxu1 }
 0x288   : > { %v2270_v34 = vmax.f32 %v2238_v9, 0.0 }
 0x289   : > { %v1869_v37 = vpop.f32.mrf.mxu2  ;;  %v2175_v26 = vpop.f32.mrf.mxu0 }
 0x28a   : > { %v1939_v17 = vadd.f32 %v1869_v37, %v1789_v44  ;;  %3114 = vmatmul.msk.f32.gmra.mxu1 %vm677_vm2, %v2270_v34  ;;  %v5420_v34 = vld [vmem:[#allocation56_spill] sm:$0xff] }
 0x28b   : > { %3065 = vmatmul.msk.f32.gmra.mxu3 %vm677_vm2, %v5414_v51  ;;  %v1794_v37 = vadd.f32 %v4535_v62, %v5420_v34  ;;  %v5425_v34 = vld [vmem:[#allocation64_spill] sm:$0xff] }
 0x28c   : > { %v2089_v13 = vadd.f32 %v2019_v18, %v1939_v17  ;;  %3100 = vmatmul.msk.f32.gmra.mxu0 %vm677_vm2, %v5415_v50 }
 0x28e   : > { %v2239_v0 = vadd.f32 %v2169_v30, %v2089_v13  ;;  %3031 = vmatmul.msk.f32.gmra.mxu2 %vm677_vm2, %v5416_v24  ;;  %v2022_v41 = vpop.f32.mrf.mxu3 }
 0x290   : > { %v2271_v61 = vmax.f32 %v2239_v0, 0.0 }
 0x291   : > { %v1872_v3 = vpop.f32.mrf.mxu2  ;;  %v2178_v10 = vpop.f32.mrf.mxu0 }
 0x292   : > { %v1940_v54 = vadd.f32 %v1872_v3, %v1790_v8  ;;  %3115 = vmatmul.msk.f32.gmra.mxu1 %vm677_vm2, %v2271_v61 }
 0x293   : > { %3066 = vmatmul.msk.f32.gmra.mxu3 %vm677_vm2, %v5417_v56 }
 0x294   : > { %v2090_v43 = vadd.f32 %v2022_v41, %v1940_v54  ;;  %v5421_v41 = vld [vmem:[#allocation60_spill] sm:$0xff] }
 0x295   : > { %v1795_v8 = vadd.f32 %v4550_v11, %v5421_v41  ;;  %v5426_v41 = vld [vmem:[#allocation66_spill] sm:$0xff] }
 0x296   : > { %v2240_v48 = vadd.f32 %v2172_v38, %v2090_v43  ;;  %3032 = vmatmul.msk.f32.gmra.mxu2 %vm677_vm2, %v5418_v32  ;;  %v2025_v22 = vpop.f32.mrf.mxu3  ;;  %v5422_v32 = vld [vmem:[#allocation58_spill] sm:$0xff] }
 0x298   : > { %v2272_v39 = vmax.f32 %v2240_v48, 0.0 }
 0x299   : > { %v1875_v35 = vpop.f32.mrf.mxu2  ;;  %v2181_v49 = vpop.f32.mrf.mxu0 }
 0x29a   : > { %v1941_v29 = vadd.f32 %v1875_v35, %v1791_v58  ;;  %3116 = vmatmul.msk.f32.gmra.mxu1 %vm677_vm2, %v2272_v39 }
 0x29c   : > { %v2091_v21 = vadd.f32 %v2025_v22, %v1941_v29  ;;  %v1796_v22 = vadd.f32 %v4560_v53, %v5422_v32 }
 0x29e   : > { %v2241_v5 = vadd.f32 %v2175_v26, %v2091_v21  ;;  %v2028_v23 = vpop.f32.mrf.mxu3 }
 0x2a0   : > { %v2273_v30 = vmax.f32 %v2241_v5, 0.0 }
 0x2a1   : > { %v1878_v27 = vpop.f32.mrf.mxu2  ;;  %v2184_v28 = vpop.f32.mrf.mxu0 }
 0x2a2   : > { %v1942_v2 = vadd.f32 %v1878_v27, %v1792_v33  ;;  %3117 = vmatmul.msk.f32.gmra.mxu1 %vm677_vm2, %v2273_v30 }
 0x2a4   : > { %v2092_v45 = vadd.f32 %v2028_v23, %v1942_v2  ;;  %v5423_v23 = vld [vmem:[#allocation63_spill] sm:$0xff] }
 0x2a5   : > { %v1797_v33 = vadd.f32 %v4572_v57, %v5423_v23 }
 0x2a6   : > { %v2242_v42 = vadd.f32 %v2178_v10, %v2092_v45  ;;  %v2031_v1 = vpop.f32.mrf.mxu3 }
 0x2a7   : > { %v4706_v59 = vpop.f32.mrf.mxu1 }
 0x2a8   : > { %v2274_v16 = vmax.f32 %v2242_v42, 0.0  ;;  %2504 = vst.msk [vmem:[%s4704_s19] sm:$0xff] %vm2503_vm5, %v4706_v59 }
 0x2a9   : > { %v1881_v36 = vpop.f32.mrf.mxu2  ;;  %v2187_v20 = vpop.f32.mrf.mxu0 }
 0x2aa   : > { %v1943_v38 = vadd.f32 %v1881_v36, %v1793_v19  ;;  %3118 = vmatmul.msk.f32.gmra.mxu1 %vm677_vm2, %v2274_v16  ;;  %v1798_v19 = vadd.f32 %v4584_v25, %v5424_v47 }
 0x2ac   : > { %v2093_v15 = vadd.f32 %v2031_v1, %v1943_v38 }
 0x2ae   : > { %v2243_v9 = vadd.f32 %v2181_v49, %v2093_v15  ;;  %v2034_v18 = vpop.f32.mrf.mxu3 }
 0x2af   : > { %v4714_v44 = vpop.f32.mrf.mxu1 }
 0x2b0   : > { %v2275_v17 = vmax.f32 %v2243_v9, 0.0  ;;  %2505 = vst.msk [vmem:[%s4704_s19 + $0x8] sm:$0xff] %vm2503_vm5, %v4714_v44 }
 0x2b1   : > { %v1884_v14 = vpop.f32.mrf.mxu2  ;;  %v2190_v51 = vpop.f32.mrf.mxu0 }
 0x2b2   : > { %v1944_v26 = vadd.f32 %v1884_v14, %v1794_v37  ;;  %3119 = vmatmul.msk.f32.gmra.mxu1 %vm677_vm2, %v2275_v17  ;;  %v1799_v37 = vadd.f32 %v4598_v6, %v5425_v34 }
 0x2b4   : > { %v2094_v13 = vadd.f32 %v2034_v18, %v1944_v26 }
 0x2b6   : > { %v2244_v50 = vadd.f32 %v2184_v28, %v2094_v13  ;;  %v2037_v0 = vpop.f32.mrf.mxu3 }
 0x2b7   : > { %v4722_v24 = vpop.f32.mrf.mxu1 }
 0x2b8   : > { %v2276_v61 = vmax.f32 %v2244_v50, 0.0  ;;  %2506 = vst.msk [vmem:[%s4704_s19 + $0x10] sm:$0xff] %vm2503_vm5, %v4722_v24 }
 0x2b9   : > { %v1887_v62 = vpop.f32.mrf.mxu2  ;;  %v2193_v54 = vpop.f32.mrf.mxu0 }
 0x2ba   : > { %v1945_v3 = vadd.f32 %v1887_v62, %v1795_v8  ;;  %3120 = vmatmul.msk.f32.gmra.mxu1 %vm677_vm2, %v2276_v61  ;;  %v1800_v8 = vadd.f32 %v4608_v12, %v5426_v41 }
 0x2bc   : > { %v2095_v10 = vadd.f32 %v2037_v0, %v1945_v3 }
 0x2be   : > { %v2245_v56 = vadd.f32 %v2187_v20, %v2095_v10  ;;  %v2040_v43 = vpop.f32.mrf.mxu3 }
 0x2bf   : > { %v4730_v48 = vpop.f32.mrf.mxu1 }
 0x2c0   : > { %v2277_v58 = vmax.f32 %v2245_v56, 0.0  ;;  %2507 = vst.msk [vmem:[%s4704_s19 + $0x18] sm:$0xff] %vm2503_vm5, %v4730_v48 }
 0x2c1   : > { %v1890_v11 = vpop.f32.mrf.mxu2  ;;  %v2196_v35 = vpop.f32.mrf.mxu0 }
 0x2c2   : > { %v1946_v39 = vadd.f32 %v1890_v11, %v1796_v22  ;;  %3121 = vmatmul.msk.f32.gmra.mxu1 %vm677_vm2, %v2277_v58 }
 0x2c4   : > { %v2096_v29 = vadd.f32 %v2040_v43, %v1946_v39  ;;  %v5427_v43 = vld [vmem:[#allocation16_spill] sm:$0xff] }
 0x2c5   : > { %v1801_v32 = vadd.f32 %v4621_v7, %v5427_v43 }
 0x2c6   : > { %v2246_v49 = vadd.f32 %v2190_v51, %v2096_v29  ;;  %v2043_v21 = vpop.f32.mrf.mxu3 }
 0x2c7   : > { %v4738_v5 = vpop.f32.mrf.mxu1 }
 0x2c8   : > { %v2278_v30 = vmax.f32 %v2246_v49, 0.0  ;;  %2508 = vst.msk [vmem:[%s4704_s19 + $0x20] sm:$0xff] %vm2503_vm5, %v4738_v5 }
 0x2c9   : > { %v1893_v53 = vpop.f32.mrf.mxu2  ;;  %v2199_v2 = vpop.f32.mrf.mxu0 }
 0x2ca   : > { %v1947_v27 = vadd.f32 %v1893_v53, %v1797_v33  ;;  %3122 = vmatmul.msk.f32.gmra.mxu1 %vm677_vm2, %v2278_v30 }
 0x2cc   : > { %v2097_v28 = vadd.f32 %v2043_v21, %v1947_v27  ;;  %v5428_v21 = vld [vmem:[#allocation69_spill] sm:$0xff] }
 0x2cd   : > { %v1802_v23 = vadd.f32 %v4634_v40, %v5428_v21 }
 0x2ce   : > { %v2247_v45 = vadd.f32 %v2193_v54, %v2097_v28  ;;  %v2046_v42 = vpop.f32.mrf.mxu3 }
 0x2cf   : > { %v4746_v1 = vpop.f32.mrf.mxu1 }
 0x2d0   : > { %v2279_v16 = vmax.f32 %v2247_v45, 0.0  ;;  %2509 = vst.msk [vmem:[%s4704_s19 + $0x28] sm:$0xff] %vm2503_vm5, %v4746_v1 }
 0x2d1   : > { %v1896_v57 = vpop.f32.mrf.mxu2  ;;  %v2202_v20 = vpop.f32.mrf.mxu0 }
 0x2d2   : > { %v1948_v36 = vadd.f32 %v1896_v57, %v1798_v19  ;;  %3123 = vmatmul.msk.f32.gmra.mxu1 %vm677_vm2, %v2279_v16 }
 0x2d4   : > { %v2098_v38 = vadd.f32 %v2046_v42, %v1948_v36  ;;  %v5429_v42 = vld [vmem:[#allocation13_spill] sm:$0xff] }
 0x2d5   : > { %v1803_v47 = vadd.f32 %v4649_v31, %v5429_v42 }
 0x2d6   : > { %v2248_v15 = vadd.f32 %v2196_v35, %v2098_v38  ;;  %v2049_v9 = vpop.f32.mrf.mxu3 }
 0x2d7   : > { %v4754_v18 = vpop.f32.mrf.mxu1 }
 0x2d8   : > { %v2280_v17 = vmax.f32 %v2248_v15, 0.0  ;;  %2510 = vst.msk [vmem:[%s4704_s19 + $0x30] sm:$0xff] %vm2503_vm5, %v4754_v18 }
 0x2d9   : > { %v1899_v25 = vpop.f32.mrf.mxu2  ;;  %v2205_v0 = vpop.f32.mrf.mxu0 }
 0x2da   : > { %v1949_v14 = vadd.f32 %v1899_v25, %v1799_v37  ;;  %3124 = vmatmul.msk.f32.gmra.mxu1 %vm677_vm2, %v2280_v17 }
 0x2dc   : > { %v2099_v26 = vadd.f32 %v2049_v9, %v1949_v14  ;;  %v5430_v9 = vld [vmem:[#allocation68_spill] sm:$0xff] }
 0x2dd   : > { %v1804_v34 = vadd.f32 %v4662_v60, %v5430_v9 }
 0x2de   : > { %v2249_v51 = vadd.f32 %v2199_v2, %v2099_v26  ;;  %v2052_v13 = vpop.f32.mrf.mxu3 }
 0x2df   : > { %v4762_v50 = vpop.f32.mrf.mxu1 }
 0x2e0   : > { %v2281_v61 = vmax.f32 %v2249_v51, 0.0  ;;  %2511 = vst.msk [vmem:[%s4704_s19 + $0x38] sm:$0xff] %vm2503_vm5, %v4762_v50 }
 0x2e1   : > { %v1902_v6 = vpop.f32.mrf.mxu2  ;;  %v2208_v58 = vpop.f32.mrf.mxu0 }
 0x2e2   : > { %v1950_v62 = vadd.f32 %v1902_v6, %v1800_v8  ;;  %3125 = vmatmul.msk.f32.gmra.mxu1 %vm677_vm2, %v2281_v61 }
 0x2e4   : > { %v2100_v3 = vadd.f32 %v2052_v13, %v1950_v62 }
 0x2e6   : > { %v2250_v54 = vadd.f32 %v2202_v20, %v2100_v3  ;;  %v2055_v10 = vpop.f32.mrf.mxu3 }
 0x2e7   : > { %v4770_v56 = vpop.f32.mrf.mxu1 }
 0x2e8   : > { %v2282_v22 = vmax.f32 %v2250_v54, 0.0  ;;  %2512 = vst.msk [vmem:[%s4704_s19 + $0x40] sm:$0xff] %vm2503_vm5, %v4770_v56 }
 0x2e9   : > { %v1905_v12 = vpop.f32.mrf.mxu2  ;;  %v2211_v53 = vpop.f32.mrf.mxu0 }
 0x2ea   : > { %v1951_v11 = vadd.f32 %v1905_v12, %v1801_v32  ;;  %3126 = vmatmul.msk.f32.gmra.mxu1 %vm677_vm2, %v2282_v22 }
 0x2ec   : > { %v2101_v39 = vadd.f32 %v2055_v10, %v1951_v11  ;;  %v1806_v10 = vadd.f32 %v4687_v55, %v4528_v63 }
 0x2ee   : > { %v2251_v35 = vadd.f32 %v2205_v0, %v2101_v39  ;;  %v2058_v29 = vpop.f32.mrf.mxu3  ;;  %v5431_v0 = vld [vmem:[#allocation21_spill] sm:$0xff]  ;;  %v1807_v39 = vadd.f32 %v4694_v52, %v4539_v46 }
 0x2ef   : > { %v4778_v49 = vpop.f32.mrf.mxu1  ;;  %v1805_v41 = vadd.f32 %v4674_v4, %v5431_v0 }
 0x2f0   : > { %v2283_v33 = vmax.f32 %v2251_v35, 0.0  ;;  %2513 = vst.msk [vmem:[%s4704_s19 + $0x48] sm:$0xff] %vm2503_vm5, %v4778_v49 }
 0x2f1   : > { %v1908_v7 = vpop.f32.mrf.mxu2  ;;  %v2214_v36 = vpop.f32.mrf.mxu0 }
 0x2f2   : > { %v1952_v30 = vadd.f32 %v1908_v7, %v1802_v23  ;;  %3127 = vmatmul.msk.f32.gmra.mxu1 %vm677_vm2, %v2283_v33 }
 0x2f4   : > { %v2102_v27 = vadd.f32 %v2058_v29, %v1952_v30 }
 0x2f6   : > { %v2252_v2 = vadd.f32 %v2208_v58, %v2102_v27  ;;  %v2061_v28 = vpop.f32.mrf.mxu3 }
 0x2f7   : > { %v4786_v45 = vpop.f32.mrf.mxu1 }
 0x2f8   : > { %v2284_v19 = vmax.f32 %v2252_v2, 0.0  ;;  %2514 = vst.msk [vmem:[%s4704_s19 + $0x50] sm:$0xff] %vm2503_vm5, %v4786_v45 }
 0x2f9   : > { %v1911_v40 = vpop.f32.mrf.mxu2  ;;  %v2217_v13 = vpop.f32.mrf.mxu0 }
 0x2fa   : > { %v1953_v16 = vadd.f32 %v1911_v40, %v1803_v47  ;;  %3128 = vmatmul.msk.f32.gmra.mxu1 %vm677_vm2, %v2284_v19 }
 0x2fc   : > { %v2103_v57 = vadd.f32 %v2061_v28, %v1953_v16 }
 0x2fe   : > { %v2253_v38 = vadd.f32 %v2211_v53, %v2103_v57  ;;  %v2064_v20 = vpop.f32.mrf.mxu3 }
 0x2ff   : > { %v4794_v15 = vpop.f32.mrf.mxu1 }
 0x300   : > { %v2285_v37 = vmax.f32 %v2253_v38, 0.0  ;;  %2515 = vst.msk [vmem:[%s4704_s19 + $0x58] sm:$0xff] %vm2503_vm5, %v4794_v15 }
 0x301   : > { %v1914_v31 = vpop.f32.mrf.mxu2  ;;  %v2220_v32 = vpop.f32.mrf.mxu0 }
 0x302   : > { %v1954_v17 = vadd.f32 %v1914_v31, %v1804_v34  ;;  %3129 = vmatmul.msk.f32.gmra.mxu1 %vm677_vm2, %v2285_v37 }
 0x304   : > { %v2104_v25 = vadd.f32 %v2064_v20, %v1954_v17 }
 0x306   : > { %v2254_v14 = vadd.f32 %v2214_v36, %v2104_v25  ;;  %v2067_v26 = vpop.f32.mrf.mxu3 }
 0x307   : > { %v4802_v51 = vpop.f32.mrf.mxu1 }
 0x308   : > { %v2286_v8 = vmax.f32 %v2254_v14, 0.0  ;;  %2516 = vst.msk [vmem:[%s4704_s19 + $0x60] sm:$0xff] %vm2503_vm5, %v4802_v51 }
 0x309   : > { %v1917_v60 = vpop.f32.mrf.mxu2  ;;  %v2223_v21 = vpop.f32.mrf.mxu0 }
 0x30a   : > { %v1955_v61 = vadd.f32 %v1917_v60, %v1805_v41  ;;  %3130 = vmatmul.msk.f32.gmra.mxu1 %vm677_vm2, %v2286_v8 }
 0x30c   : > { %v2105_v6 = vadd.f32 %v2067_v26, %v1955_v61 }
 0x30e   : > { %v2255_v62 = vadd.f32 %v2217_v13, %v2105_v6  ;;  %v2070_v54 = vpop.f32.mrf.mxu3 }
 0x30f   : > { %v4810_v3 = vpop.f32.mrf.mxu1 }
 0x310   : > { %v2287_v43 = vmax.f32 %v2255_v62, 0.0  ;;  %2517 = vst.msk [vmem:[%s4704_s19 + $0x68] sm:$0xff] %vm2503_vm5, %v4810_v3 }
 0x311   : > { %v1920_v4 = vpop.f32.mrf.mxu2 }
 0x312   : > { %v1956_v22 = vadd.f32 %v1920_v4, %v1806_v10  ;;  %3131 = vmatmul.msk.f32.gmra.mxu1 %vm677_vm2, %v2287_v43 }
 0x314   : > { %v2106_v12 = vadd.f32 %v2070_v54, %v1956_v22 }
 0x316   : > { %v2256_v58 = vadd.f32 %v2220_v32, %v2106_v12  ;;  %v2073_v55 = vpop.f32.mrf.mxu3 }
 0x317   : > { %v4818_v11 = vpop.f32.mrf.mxu1 }
 0x318   : > { %v2288_v35 = vmax.f32 %v2256_v58, 0.0  ;;  %2518 = vst.msk [vmem:[%s4704_s19 + $0x70] sm:$0xff] %vm2503_vm5, %v4818_v11 }
 0x319   : > { %v1923_v63 = vpop.f32.mrf.mxu2 }
 0x31a   : > { %v1957_v29 = vadd.f32 %v1923_v63, %v1807_v39  ;;  %3132 = vmatmul.msk.f32.gmra.mxu1 %vm677_vm2, %v2288_v35 }
 0x31c   : > { %v2107_v23 = vadd.f32 %v2073_v55, %v1957_v29 }
 0x31e   : > { %v2257_v33 = vadd.f32 %v2223_v21, %v2107_v23 }
 0x31f   : > { %v4826_v7 = vpop.f32.mrf.mxu1 }
 0x320   : > { %v2289_v46 = vmax.f32 %v2257_v33, 0.0  ;;  %2519 = vst.msk [vmem:[%s4704_s19 + $0x78] sm:$0xff] %vm2503_vm5, %v4826_v7 }
 0x322   : > { %3133 = vmatmul.msk.f32.gmra.mxu1 %vm677_vm2, %v2289_v46 }
 0x327   : > { %v4832_v52 = vpop.f32.mrf.mxu1 }
 0x328   : > { %2520 = vst.msk [vmem:[%s4704_s19 + $0x80] sm:$0xff] %vm2503_vm5, %v4832_v52 }
 0x32f   : > { %v4837_v30 = vpop.f32.mrf.mxu1 }
 0x330   : > { %2521 = vst.msk [vmem:[%s4704_s19 + $0x88] sm:$0xff] %vm2503_vm5, %v4837_v30 }
 0x337   : > { %v4842_v53 = vpop.f32.mrf.mxu1 }
 0x338   : > { %2522 = vst.msk [vmem:[%s4704_s19 + $0x90] sm:$0xff] %vm2503_vm5, %v4842_v53 }
 0x33f   : > { %v4847_v27 = vpop.f32.mrf.mxu1 }
 0x340   : > { %2523 = vst.msk [vmem:[%s4704_s19 + $0x98] sm:$0xff] %vm2503_vm5, %v4847_v27 }
 0x347   : > { %v4852_v2 = vpop.f32.mrf.mxu1 }
 0x348   : > { %2524 = vst.msk [vmem:[%s4704_s19 + $0xa0] sm:$0xff] %vm2503_vm5, %v4852_v2 }
 0x34f   : > { %v4857_v28 = vpop.f32.mrf.mxu1 }
 0x350   : > { %2525 = vst.msk [vmem:[%s4704_s19 + $0xa8] sm:$0xff] %vm2503_vm5, %v4857_v28 }
 0x357   : > { %v4862_v42 = vpop.f32.mrf.mxu1 }
 0x358   : > { %2526 = vst.msk [vmem:[%s4704_s19 + $0xb0] sm:$0xff] %vm2503_vm5, %v4862_v42 }
 0x35f   : > { %v4867_v47 = vpop.f32.mrf.mxu1 }
 0x360   : > { %2527 = vst.msk [vmem:[%s4704_s19 + $0xb8] sm:$0xff] %vm2503_vm5, %v4867_v47 }
 0x367   : > { %v4872_v19 = vpop.f32.mrf.mxu1 }
 0x368   : > { %2528 = vst.msk [vmem:[%s4704_s19 + $0xc0] sm:$0xff] %vm2503_vm5, %v4872_v19 }
 0x36f   : > { %v4877_v40 = vpop.f32.mrf.mxu1 }
 0x370   : > { %2529 = vst.msk [vmem:[%s4704_s19 + $0xc8] sm:$0xff] %vm2503_vm5, %v4877_v40 }
 0x377   : > { %v4882_v16 = vpop.f32.mrf.mxu1 }
 0x378   : > { %2530 = vst.msk [vmem:[%s4704_s19 + $0xd0] sm:$0xff] %vm2503_vm5, %v4882_v16 }
 0x37f   : > { %v4887_v57 = vpop.f32.mrf.mxu1 }
 0x380   : > { %2531 = vst.msk [vmem:[%s4704_s19 + $0xd8] sm:$0xff] %vm2503_vm5, %v4887_v57 }
 0x387   : > { %v4892_v36 = vpop.f32.mrf.mxu1 }
 0x388   : > { %2532 = vst.msk [vmem:[%s4704_s19 + $0xe0] sm:$0xff] %vm2503_vm5, %v4892_v36 }
 0x38f   : > { %v4897_v38 = vpop.f32.mrf.mxu1 }
 0x390   : > { %2533 = vst.msk [vmem:[%s4704_s19 + $0xe8] sm:$0xff] %vm2503_vm5, %v4897_v38 }
 0x397   : > { %v4902_v20 = vpop.f32.mrf.mxu1 }
 0x398   : > { %2534 = vst.msk [vmem:[%s4704_s19 + $0xf0] sm:$0xff] %vm2503_vm5, %v4902_v20 }
 0x39c   : > { %2539 = sbr.rel (%p3134_p4) target bundleno = 932 (0x3a4), region = 44 }
 0x39f   : > { %v4907_v9 = vpop.f32.mrf.mxu1 }
 0x3a0   : > { %2535 = vst.msk [vmem:[%s4704_s19 + $0xf8] sm:$0xff] %vm2503_vm5, %v4907_v9 }
 0x3a1   : > { %vm2540_vm6 = vcmask 122880   ;;  %v3164_v34 = vmov 0.0  }
 0x3a2   : > { %2541 = vst.msk [vmem:[%s5100_s6] sm:$0x1] %vm2540_vm6, %v3164_v34 }
 0x3a3   : > { %2542 = vst.msk [vmem:[%s5101_s7] sm:$0x1] %vm2540_vm6, %v3164_v34 }
 0x3a4 PF: > { %v2544_v37 = vsel %vm2503_vm5, %v4706_v59, 0.0  ;;  %v2545_v31 = vsel %vm2503_vm5, %v4714_v44, 0.0  ;;  %v2547_v17 = vsel %vm2503_vm5, %v4722_v24, 0.0  ;;  %v2549_v14 = vsel %vm2503_vm5, %v4730_v48, 0.0 }
 0x3a5   : > { %v2546_v25 = vadd.f32 %v2545_v31, %v2544_v37  ;;  %v2551_v13 = vsel %vm2503_vm5, %v4738_v5, 0.0  ;;  %v2553_v41 = vsel %vm2503_vm5, %v4746_v1, 0.0  ;;  %v2555_v60 = vsel %vm2503_vm5, %v4754_v18, 0.0 }
 0x3a6   : > { %v2617_v61 = vmul.f32 %v4706_v59, %v4706_v59  ;;  %v2618_v62 = vmul.f32 %v4714_v44, %v4714_v44  ;;  %v2619_v54 = vmul.f32 %v4722_v24, %v4722_v24  ;;  %v2557_v10 = vsel %vm2503_vm5, %v4762_v50, 0.0 }
 0x3a7   : > { %v2548_v26 = vadd.f32 %v2547_v17, %v2546_v25  ;;  %v2620_v4 = vmul.f32 %v4730_v48, %v4730_v48  ;;  %v2559_v32 = vsel %vm2503_vm5, %v4770_v56, 0.0  ;;  %v2621_v12 = vmul.f32 %v4738_v5, %v4738_v5 }
 0x3a8   : > { %v2649_v22 = vsel %vm2503_vm5, %v2617_v61, 0.0  ;;  %v2650_v44 = vsel %vm2503_vm5, %v2618_v62, 0.0  ;;  %v2652_v24 = vsel %vm2503_vm5, %v2619_v54, 0.0  ;;  %v2561_v58 = vsel %vm2503_vm5, %v4778_v49, 0.0 }
 0x3a9   : > { %v2550_v0 = vadd.f32 %v2549_v14, %v2548_v26  ;;  %v2651_v39 = vadd.f32 %v2650_v44, %v2649_v22  ;;  %v2622_v48 = vmul.f32 %v4746_v1, %v4746_v1  ;;  %v2654_v63 = vsel %vm2503_vm5, %v2620_v4, 0.0 }
 0x3aa   : > { %v2563_v55 = vsel %vm2503_vm5, %v4786_v45, 0.0  ;;  %v2623_v5 = vmul.f32 %v4754_v18, %v4754_v18  ;;  %v2656_v23 = vsel %vm2503_vm5, %v2621_v12, 0.0  ;;  %v2565_v33 = vsel %vm2503_vm5, %v4794_v15, 0.0 }
 0x3ab   : > { %v2552_v8 = vadd.f32 %v2551_v13, %v2550_v0  ;;  %v2653_v29 = vadd.f32 %v2652_v24, %v2651_v39  ;;  %v2624_v1 = vmul.f32 %v4762_v50, %v4762_v50  ;;  %v2658_v37 = vsel %vm2503_vm5, %v2622_v48, 0.0 }
 0x3ac   : > { %v2567_v31 = vsel %vm2503_vm5, %v4802_v51, 0.0  ;;  %v2625_v18 = vmul.f32 %v4770_v56, %v4770_v56  ;;  %v2660_v14 = vsel %vm2503_vm5, %v2623_v5, 0.0  ;;  %v2569_v26 = vsel %vm2503_vm5, %v4810_v3, 0.0 }
 0x3ad   : > { %v2554_v6 = vadd.f32 %v2553_v41, %v2552_v8  ;;  %v2655_v46 = vadd.f32 %v2654_v63, %v2653_v29  ;;  %v2626_v50 = vmul.f32 %v4778_v49, %v4778_v49  ;;  %v2662_v41 = vsel %vm2503_vm5, %v2624_v1, 0.0 }
 0x3ae   : > { %v2571_v8 = vsel %vm2503_vm5, %v4818_v11, 0.0  ;;  %v2627_v56 = vmul.f32 %v4786_v45, %v4786_v45  ;;  %v2573_v62 = vsel %vm2503_vm5, %v4826_v7, 0.0  ;;  %v2628_v49 = vmul.f32 %v4794_v15, %v4794_v15 }
 0x3af   : > { %v2556_v43 = vadd.f32 %v2555_v60, %v2554_v6  ;;  %v2657_v17 = vadd.f32 %v2656_v23, %v2655_v46  ;;  %v2664_v6 = vsel %vm2503_vm5, %v2625_v18, 0.0  ;;  %v2575_v4 = vsel %vm2503_vm5, %v4832_v52, 0.0 }
 0x3b0   : > { %v2629_v45 = vmul.f32 %v4802_v51, %v4802_v51  ;;  %v2577_v12 = vsel %vm2503_vm5, %v4837_v30, 0.0  ;;  %v2630_v15 = vmul.f32 %v4810_v3, %v4810_v3  ;;  %v2579_v39 = vsel %vm2503_vm5, %v4842_v53, 0.0 }
 0x3b1   : > { %v2558_v59 = vadd.f32 %v2557_v10, %v2556_v43  ;;  %v2659_v13 = vadd.f32 %v2658_v37, %v2657_v17  ;;  %v2666_v43 = vsel %vm2503_vm5, %v2626_v50, 0.0  ;;  %v2631_v51 = vmul.f32 %v4818_v11, %v4818_v11 }
 0x3b2   : > { %v2672_v63 = vsel %vm2503_vm5, %v2629_v45, 0.0  ;;  %v2632_v3 = vmul.f32 %v4826_v7, %v4826_v7  ;;  %v2674_v5 = vsel %vm2503_vm5, %v2630_v15, 0.0  ;;  %v2583_v23 = vsel %vm2503_vm5, %v4852_v2, 0.0 }
 0x3b3   : > { %v2560_v35 = vadd.f32 %v2559_v32, %v2558_v59  ;;  %v2661_v60 = vadd.f32 %v2660_v14, %v2659_v13  ;;  %v2668_v59 = vsel %vm2503_vm5, %v2627_v56, 0.0  ;;  %v2633_v11 = vmul.f32 %v4832_v52, %v4832_v52 }
 0x3b4   : > { %v2585_v1 = vsel %vm2503_vm5, %v4857_v28, 0.0  ;;  %v2634_v7 = vmul.f32 %v4837_v30, %v4837_v30  ;;  %v2678_v17 = vsel %vm2503_vm5, %v2632_v3, 0.0  ;;  %v2635_v52 = vmul.f32 %v4842_v53, %v4842_v53 }
 0x3b5   : > { %v2562_v21 = vadd.f32 %v2561_v58, %v2560_v35  ;;  %v2663_v54 = vadd.f32 %v2662_v41, %v2661_v60  ;;  %v2670_v58 = vsel %vm2503_vm5, %v2628_v49, 0.0  ;;  %v2589_v13 = vsel %vm2503_vm5, %v4867_v47, 0.0 }
 0x3b6   : > { %v2636_v30 = vmul.f32 %v4847_v27, %v4847_v27  ;;  %v2682_v41 = vsel %vm2503_vm5, %v2634_v7, 0.0  ;;  %v2637_v53 = vmul.f32 %v4852_v2, %v4852_v2  ;;  %v2684_v56 = vsel %vm2503_vm5, %v2635_v52, 0.0 }
 0x3b7   : > { %v2564_v34 = vadd.f32 %v2563_v55, %v2562_v21  ;;  %v2665_v32 = vadd.f32 %v2664_v6, %v2663_v54  ;;  %v2581_v55 = vsel %vm2503_vm5, %v4847_v27, 0.0  ;;  %v2593_v6 = vsel %vm2503_vm5, %v4877_v40, 0.0 }
 0x3b8   : > { %v2638_v27 = vmul.f32 %v4857_v28, %v4857_v28  ;;  %v2595_v49 = vsel %vm2503_vm5, %v4882_v16, 0.0  ;;  %v2639_v2 = vmul.f32 %v4862_v42, %v4862_v42  ;;  %v2640_v28 = vmul.f32 %v4867_v47, %v4867_v47 }
 0x3b9   : > { %v2566_v25 = vadd.f32 %v2565_v33, %v2564_v34  ;;  %v2667_v44 = vadd.f32 %v2666_v43, %v2665_v32  ;;  %v2676_v34 = vsel %vm2503_vm5, %v2631_v51, 0.0  ;;  %v2688_v32 = vsel %vm2503_vm5, %v2637_v53, 0.0 }
 0x3ba   : > { %v2642_v47 = vmul.f32 %v4877_v40, %v4877_v40  ;;  %v2694_v51 = vsel %vm2503_vm5, %v2640_v28, 0.0  ;;  %v2605_v3 = vsel %vm2503_vm5, %v4907_v9, 0.0  ;;  %v2644_v40 = vmul.f32 %v4887_v57, %v4887_v57 }
 0x3bb   : > { %v2568_v0 = vadd.f32 %v2567_v31, %v2566_v25  ;;  %v2669_v35 = vadd.f32 %v2668_v59, %v2667_v44  ;;  %v2587_v25 = vsel %vm2503_vm5, %v4862_v42, 0.0  ;;  %v2599_v44 = vsel %vm2503_vm5, %v4892_v36, 0.0 }
 0x3bc   : > { %v2641_v42 = vmul.f32 %v4872_v19, %v4872_v19  ;;  %v2702_v7 = vsel %vm2503_vm5, %v2644_v40, 0.0  ;;  %vm2614_vm7 = vcmask 122880  }
 0x3bd   : > { %v2570_v61 = vadd.f32 %v2569_v26, %v2568_v0  ;;  %v2671_v29 = vadd.f32 %v2670_v58, %v2669_v35  ;;  %v2680_v26 = vsel %vm2503_vm5, %v2633_v11, 0.0  ;;  %v2692_v58 = vsel %vm2503_vm5, %v2639_v2, 0.0 }
 0x3bf   : > { %v2572_v10 = vadd.f32 %v2571_v8, %v2570_v61  ;;  %v2673_v33 = vadd.f32 %v2672_v63, %v2671_v29  ;;  %v2591_v8 = vsel %vm2503_vm5, %v4872_v19, 0.0  ;;  %v2603_v63 = vsel %vm2503_vm5, %v4902_v20, 0.0 }
 0x3c0   : > { %v2643_v19 = vmul.f32 %v4882_v16, %v4882_v16 }
 0x3c1   : > { %v2574_v22 = vadd.f32 %v2573_v62, %v2572_v10  ;;  %v2675_v37 = vadd.f32 %v2674_v5, %v2673_v33  ;;  %v2686_v10 = vsel %vm2503_vm5, %v2636_v30, 0.0  ;;  %v2698_v33 = vsel %vm2503_vm5, %v2642_v47, 0.0 }
 0x3c3   : > { %v2576_v24 = vadd.f32 %v2575_v4, %v2574_v22  ;;  %v2677_v18 = vadd.f32 %v2676_v34, %v2675_v37  ;;  %v2597_v22 = vsel %vm2503_vm5, %v4887_v57, 0.0  ;;  %v2645_v34 = vmul.f32 %v4892_v36, %v4892_v36 }
 0x3c4   : > { %v2647_v57 = vmul.f32 %v4902_v20, %v4902_v20  ;;  %v2648_v36 = vmul.f32 %v4907_v9, %v4907_v9  ;;  %v2543_v20 = vld [vmem:[%s5100_s6] sm:$0x1] }
 0x3c5   : > { %v2578_v48 = vadd.f32 %v2577_v12, %v2576_v24  ;;  %v2679_v0 = vadd.f32 %v2678_v17, %v2677_v18  ;;  %v2690_v12 = vsel %vm2503_vm5, %v2638_v27, 0.0  ;;  %v2704_v18 = vsel %vm2503_vm5, %v2645_v34, 0.0  ;;  %v2616_v27 = vld [vmem:[%s5101_s7] sm:$0x1] }
 0x3c7   : > { %v2580_v21 = vadd.f32 %v2579_v39, %v2578_v48  ;;  %v2681_v60 = vadd.f32 %v2680_v26, %v2679_v0  ;;  %v2601_v39 = vsel %vm2503_vm5, %v4897_v38, 0.0 }
 0x3c9   : > { %v2582_v46 = vadd.f32 %v2581_v55, %v2580_v21  ;;  %v2683_v62 = vadd.f32 %v2682_v41, %v2681_v60  ;;  %v2696_v21 = vsel %vm2503_vm5, %v2641_v42, 0.0  ;;  %v2710_v41 = vsel %vm2503_vm5, %v2648_v36, 0.0 }
 0x3cb   : > { %v2584_v31 = vadd.f32 %v2583_v23, %v2582_v46  ;;  %v2685_v43 = vadd.f32 %v2684_v56, %v2683_v62 }
 0x3cd   : > { %v2586_v14 = vadd.f32 %v2585_v1, %v2584_v31  ;;  %v2687_v45 = vadd.f32 %v2686_v10, %v2685_v43  ;;  %v2700_v1 = vsel %vm2503_vm5, %v2643_v19, 0.0  ;;  %v2646_v31 = vmul.f32 %v4897_v38, %v4897_v38 }
 0x3ce   : > { %v2708_v38 = vsel %vm2503_vm5, %v2647_v57, 0.0 }
 0x3cf   : > { %v2588_v50 = vadd.f32 %v2587_v25, %v2586_v14  ;;  %v2689_v24 = vadd.f32 %v2688_v32, %v2687_v45  ;;  %v2706_v26 = vsel %vm2503_vm5, %v2646_v31, 0.0 }
 0x3d1   : > { %v2590_v61 = vadd.f32 %v2589_v13, %v2588_v50  ;;  %v2691_v35 = vadd.f32 %v2690_v12, %v2689_v24 }
 0x3d3   : > { %v2592_v54 = vadd.f32 %v2591_v8, %v2590_v61  ;;  %v2693_v55 = vadd.f32 %v2692_v58, %v2691_v35 }
 0x3d5   : > { %v2594_v4 = vadd.f32 %v2593_v6, %v2592_v54  ;;  %v2695_v5 = vadd.f32 %v2694_v51, %v2693_v55 }
 0x3d7   : > { %v2596_v59 = vadd.f32 %v2595_v49, %v2594_v4  ;;  %v2697_v46 = vadd.f32 %v2696_v21, %v2695_v5 }
 0x3d9   : > { %v2598_v15 = vadd.f32 %v2597_v22, %v2596_v59  ;;  %v2699_v16 = vadd.f32 %v2698_v33, %v2697_v46 }
 0x3db   : > { %v2600_v48 = vadd.f32 %v2599_v44, %v2598_v15  ;;  %v2701_v17 = vadd.f32 %v2700_v1, %v2699_v16 }
 0x3dd   : > { %v2602_v29 = vadd.f32 %v2601_v39, %v2600_v48  ;;  %v2703_v14 = vadd.f32 %v2702_v7, %v2701_v17 }
 0x3df   : > { %v2604_v23 = vadd.f32 %v2603_v63, %v2602_v29  ;;  %v2705_v13 = vadd.f32 %v2704_v18, %v2703_v14 }
 0x3e1   : > { %v2606_v11 = vadd.f32 %v2605_v3, %v2604_v23  ;;  %v2707_v50 = vadd.f32 %v2706_v26, %v2705_v13 }
 0x3e3   : > { %v2607_v37 = vrot.slane %v2606_v11, 4  ;;  %v2709_v8 = vadd.f32 %v2708_v38, %v2707_v50 }
 0x3e5   : > { %v2608_v25 = vadd.f32 %v2607_v37, %v2606_v11  ;;  %v2711_v61 = vadd.f32 %v2710_v41, %v2709_v8 }
 0x3e7   : > { %v2609_v52 = vrot.slane %v2608_v25, 2  ;;  %v2712_v9 = vrot.slane %v2711_v61, 4 }
 0x3e9   : > { %v2610_v0 = vadd.f32 %v2609_v52, %v2608_v25  ;;  %v2713_v56 = vadd.f32 %v2712_v9, %v2711_v61 }
 0x3eb   : > { %v2611_v30 = vrot.slane %v2610_v0, 1  ;;  %v2714_v6 = vrot.slane %v2713_v56, 2 }
 0x3ed   : > { %v2612_v60 = vadd.f32 %v2611_v30, %v2610_v0  ;;  %v2715_v62 = vadd.f32 %v2714_v6, %v2713_v56 }
 0x3ef   : > { %v2613_v53 = vadd.f32 %v2612_v60, %v2543_v20  ;;  %v2716_v54 = vrot.slane %v2715_v62, 1 }
 0x3f1   : > { %2615 = vst.msk [vmem:[%s5100_s6] sm:$0x1] %vm2614_vm7, %v2613_v53  ;;  %v2717_v10 = vadd.f32 %v2716_v54, %v2715_v62 }
 0x3f3   : > { %v2718_v49 = vadd.f32 %v2717_v10, %v2616_v27 }
 0x3f5   : > { %2719 = vst.msk [vmem:[%s5101_s7] sm:$0x1] %vm2614_vm7, %v2718_v49 }
 0x3f6 PF: > { %s18_s24 = sadd.s32 1, %s3161_s24  }
 0x3f7   : > { %p15_p5 = scmp.ge.s32.totalorder %s18_s24, 4  }
 0x3f9   :  { %17 = sbr.rel (!%p15_p5) target bundleno = 1 (0x1), region = 98 }

</bundles_post_ra>
